<compile_context>
chip_gen: v5e
topology: v5e:2x2
jax: 0.10.0
libtpu: 0.0.40
codegen_flags: <defaults>
</compile_context>

<pallas_src>
import jax
import jax.numpy as jnp
from jax.experimental import pallas as pl
from jax.experimental.pallas import tpu as pltpu

NUM_CLASSES = 2
NUM_FEATURES = 2048   # resnet50.fc.in_features
HID1, HID2 = 512, 128
OUT_PAD = 128         # lane-dense padded logits width (>= NUM_CLASSES, multiple of 128)
MAX_TILE_B = 512      # batch tile upper bound (512x2048 bf16 tile = 2 MiB/step, near HBM roofline)


def _round_up(x, m):
    return ((x + m - 1) // m) * m


def _pick_tile_b(batch, max_tile=MAX_TILE_B):
    """Balanced batch tile: <= max_tile, multiple of 8, padding waste <= 7 rows."""
    n_tiles = pl.cdiv(batch, max_tile)
    return _round_up(pl.cdiv(batch, n_tiles), 8)


def defect_head_kernel(x_ref, w1_ref, b1_ref, w2_ref, b2_ref, w3_ref, b3_ref, out_ref):
    # x_ref:  [TB, 2048] bf16 pooled features (streamed batch tile)
    # w*_ref: bf16 weights (VMEM-resident: constant index_map, single-buffered)
    # b*_ref: f32 biases
    # out_ref:[TB, OUT_PAD] bf16 lane-dense logits slab
    feat = x_ref[...]

    # Linear(2048 -> 512) + ReLU   (Dropout(0.5) is identity at inference)
    h1 = jnp.dot(feat, w1_ref[...], preferred_element_type=jnp.float32) + b1_ref[...]
    h1 = jnp.maximum(h1, 0.0).astype(jnp.bfloat16)

    # Linear(512 -> 128) + ReLU    (Dropout(0.3) is identity at inference)
    h2 = jnp.dot(h1, w2_ref[...], preferred_element_type=jnp.float32) + b2_ref[...]
    h2 = jnp.maximum(h2, 0.0).astype(jnp.bfloat16)

    # Linear(128 -> NUM_CLASSES), zero-padded to OUT_PAD lanes for an unmasked bf16 store.
    h3 = jnp.dot(h2, w3_ref[...], preferred_element_type=jnp.float32) + b3_ref[...]
    out_ref[...] = h3.astype(jnp.bfloat16)


def defect_detection_forward(x_nchw, params):
    """x_nchw: [B, 2048, H, W] backbone feature map (f32 or bf16) -> logits [B, NUM_CLASSES] f32."""
    B, C, H, W = x_nchw.shape
    assert C == NUM_FEATURES
    w1, b1, w2, b2, w3, b3 = params

    # --- Global average pool in XLA (== nn.AdaptiveAvgPool2d(1); backbone.fc is Identity).
    # f32 accumulation regardless of the feature-map dtype (backbone should emit bf16 to
    # halve this — the GAP read, not the head kernel, is the end-to-end HBM bottleneck).
    feat = jnp.mean(x_nchw, axis=(2, 3), dtype=jnp.float32)            # [B, 2048]

    # --- Balanced batch tiling (padding waste <= 7 rows), tile <= 512.
    tile_b = _pick_tile_b(B)
    b_pad = _round_up(B, tile_b)
    feat = jnp.pad(feat, ((0, b_pad - B), (0, 0))).astype(jnp.bfloat16)

    # --- bf16 weights for DMA/MXU; f32 biases for the f32 accumulators.
    # PyTorch stores nn.Linear bias as (H,); reshape to (1, H) for broadcasting in the kernel.
    w1b = w1.astype(jnp.bfloat16)
    w2b = w2.astype(jnp.bfloat16)
    w3p = jnp.zeros((HID2, OUT_PAD), jnp.bfloat16).at[:, :NUM_CLASSES].set(
        w3.astype(jnp.bfloat16))
    b1f = b1.reshape(1, HID1).astype(jnp.float32)
    b2f = b2.reshape(1, HID2).astype(jnp.float32)
    b3p = jnp.zeros((1, OUT_PAD), jnp.float32).at[:, :NUM_CLASSES].set(
        b3.reshape(1, NUM_CLASSES).astype(jnp.float32))

    grid = (b_pad // tile_b,)

    def resident(shape):
        # Weight / bias blocks: constant block index -> DMA'd once, stay in VMEM.
        # Single-buffered (Buffered(1)): no second copy reserved for a block that never changes.
        return pl.BlockSpec(shape, lambda i: (0,) * len(shape),
                            pipeline_mode=pl.Buffered(1))

    # v7x megacore gating: only shard the batch grid across TensorCores when the per-core
    # streamed feature traffic clearly exceeds the duplicated ~2.25 MiB weight footprint.
    semantics = ("parallel",) if b_pad >= 1024 else ("arbitrary",)

    flops = 2 * b_pad * (NUM_FEATURES * HID1 + HID1 * HID2 + HID2 * OUT_PAD)
    bytes_accessed = (
        feat.size * 2
        + w1b.size * 2 + w2b.size * 2 + w3p.size * 2
        + b1f.size * 4 + b2f.size * 4 + b3p.size * 4
        + b_pad * OUT_PAD * 2
    )

    out_padded = pl.pallas_call(
        defect_head_kernel,
        out_shape=jax.ShapeDtypeStruct((b_pad, OUT_PAD), jnp.bfloat16),
        grid=grid,
        in_specs=[
            pl.BlockSpec((tile_b, NUM_FEATURES), lambda i: (i, 0)),   # streamed activations
            resident((NUM_FEATURES, HID1)), resident((1, HID1)),      # Linear 1
            resident((HID1, HID2)),         resident((1, HID2)),      # Linear 2
            resident((HID2, OUT_PAD)),      resident((1, OUT_PAD)),   # Linear 3 (padded)
        ],
        out_specs=pl.BlockSpec((tile_b, OUT_PAD), lambda i: (i, 0)),
        compiler_params=pltpu.CompilerParams(
            dimension_semantics=semantics,
            vmem_limit_bytes=32 * 1024 * 1024,   # ~6.5 MiB peak at tile_b=512; safe everywhere
        ),
        cost_estimate=pl.CostEstimate(
            flops=flops, transcendentals=0, bytes_accessed=bytes_accessed),
    )(feat, w1b, b1f, w2b, b2f, w3p, b3p)

    return out_padded[:B, :NUM_CLASSES].astype(jnp.float32)


def init_params(key):
    # PyTorch-convention shapes: weights stored as (in, out) here; biases as (H,).
    ks = jax.random.split(key, 6)
    w1 = jax.random.normal(ks[0], (NUM_FEATURES, HID1), jnp.float32) * 0.02
    b1 = jax.random.normal(ks[1], (HID1,), jnp.float32) * 0.01
    w2 = jax.random.normal(ks[2], (HID1, HID2), jnp.float32) * 0.02
    b2 = jax.random.normal(ks[3], (HID2,), jnp.float32) * 0.01
    w3 = jax.random.normal(ks[4], (HID2, NUM_CLASSES), jnp.float32) * 0.02
    b3 = jax.random.normal(ks[5], (NUM_CLASSES,), jnp.float32) * 0.01
    return (w1, b1, w2, b2, w3, b3)


def reference_forward(x_nchw, params, mixed_precision=True):
    """Pure-JAX reference. mixed_precision=True mirrors the kernel's bf16-in/f32-acc/bf16-out path."""
    w1, b1, w2, b2, w3, b3 = params
    feat = jnp.mean(x_nchw, axis=(2, 3), dtype=jnp.float32)           # [B, C]
    cast = (lambda a: a.astype(jnp.bfloat16)) if mixed_precision else (lambda a: a)
    h1 = jnp.maximum(
        jnp.dot(cast(feat), cast(w1), preferred_element_type=jnp.float32) + b1[None, :], 0.0)
    h2 = jnp.maximum(
        jnp.dot(cast(h1), cast(w2), preferred_element_type=jnp.float32) + b2[None, :], 0.0)
    out = jnp.dot(cast(h2), cast(w3), preferred_element_type=jnp.float32) + b3[None, :]
    if mixed_precision:
        out = out.astype(jnp.bfloat16).astype(jnp.float32)            # mirror bf16 logits store
    return out


if __name__ == "__main__":
    key = jax.random.PRNGKey(0)
    k_x, k_p = jax.random.split(key)

    # Small, architecture-consistent shapes: B=2, backbone layer4 output [2048, 7, 7].
    B, H, W = 2, 7, 7
    x = jax.random.normal(k_x, (B, NUM_FEATURES, H, W), jnp.float32)
    params = init_params(k_p)

    logits = defect_detection_forward(x, params)
    logits = jax.block_until_ready(logits)
    assert logits.shape == (B, NUM_CLASSES)

    # Tight check vs a bf16-mirrored reference, loose check vs the pure-f32 module semantics.
    ref_mp = reference_forward(x, params, mixed_precision=True)
    ref_f32 = reference_forward(x, params, mixed_precision=False)
    assert jnp.allclose(logits, ref_mp, rtol=1e-2, atol=1e-2), (logits, ref_mp)
    assert jnp.allclose(logits, ref_f32, rtol=5e-2, atol=2e-2), (logits, ref_f32)

    print("KERNEL_OK")
</pallas_src>

<mosaic_0001>
module attributes {stable_mosaic.version = 11 : i64} {
  func.func @defect_head_kernel(%arg0: i32, %arg1: memref<8x2048xbf16, #tpu.memory_space<vmem>>, %arg2: memref<2048x512xbf16, #tpu.memory_space<vmem>>, %arg3: memref<1x512xf32, #tpu.memory_space<vmem>>, %arg4: memref<512x128xbf16, #tpu.memory_space<vmem>>, %arg5: memref<1x128xf32, #tpu.memory_space<vmem>>, %arg6: memref<128x128xbf16, #tpu.memory_space<vmem>>, %arg7: memref<1x128xf32, #tpu.memory_space<vmem>>, %arg8: memref<8x128xbf16, #tpu.memory_space<vmem>>) attributes {dimension_semantics = [#tpu.dimension_semantics<arbitrary>], iteration_bounds = array<i64: 1>, scalar_prefetch = 0 : i64, scratch_operands = 0 : i64, tpu.core_type = #tpu.core_type<tc>, window_params = [{transform_indices = @transform_0, window_bounds = array<i64: 8, 2048>}, {pipeline_mode = #tpu.pipeline_mode<synchronous>, transform_indices = @transform_1, window_bounds = array<i64: 2048, 512>}, {pipeline_mode = #tpu.pipeline_mode<synchronous>, transform_indices = @transform_2, window_bounds = array<i64: 1, 512>}, {pipeline_mode = #tpu.pipeline_mode<synchronous>, transform_indices = @transform_3, window_bounds = array<i64: 512, 128>}, {pipeline_mode = #tpu.pipeline_mode<synchronous>, transform_indices = @transform_4, window_bounds = array<i64: 1, 128>}, {pipeline_mode = #tpu.pipeline_mode<synchronous>, transform_indices = @transform_5, window_bounds = array<i64: 128, 128>}, {pipeline_mode = #tpu.pipeline_mode<synchronous>, transform_indices = @transform_6, window_bounds = array<i64: 1, 128>}, {transform_indices = @transform_7, window_bounds = array<i64: 8, 128>}]} {
    %c0 = arith.constant 0 : index
    %c0_0 = arith.constant 0 : index
    %0 = vector.load %arg1[%c0, %c0_0] : memref<8x2048xbf16, #tpu.memory_space<vmem>>, vector<8x2048xbf16>
    %c0_1 = arith.constant 0 : index
    %c0_2 = arith.constant 0 : index
    %1 = vector.load %arg2[%c0_1, %c0_2] : memref<2048x512xbf16, #tpu.memory_space<vmem>>, vector<2048x512xbf16>
    %cst = arith.constant dense<0.000000e+00> : vector<8x512xf32>
    %2 = tpu.matmul %0, %1, %cst {dimension_numbers = #tpu.dot_dimension_numbers<[1], [0], [0], [1], [0, 0, 1, 1], [], []>} : vector<8x2048xbf16>, vector<2048x512xbf16>, vector<8x512xf32> -> vector<8x512xf32>
    %c0_3 = arith.constant 0 : index
    %c0_4 = arith.constant 0 : index
    %3 = vector.load %arg3[%c0_3, %c0_4] : memref<1x512xf32, #tpu.memory_space<vmem>>, vector<1x512xf32>
    %4 = vector.broadcast %3 : vector<1x512xf32> to vector<8x512xf32>
    %5 = arith.addf %2, %4 : vector<8x512xf32>
    %cst_5 = arith.constant 0.000000e+00 : f32
    %6 = vector.broadcast %cst_5 : f32 to vector<8x512xf32>
    %7 = arith.maximumf %5, %6 : vector<8x512xf32>
    %8 = arith.truncf %7 : vector<8x512xf32> to vector<8x512xbf16>
    %c0_6 = arith.constant 0 : index
    %c0_7 = arith.constant 0 : index
    %9 = vector.load %arg4[%c0_6, %c0_7] : memref<512x128xbf16, #tpu.memory_space<vmem>>, vector<512x128xbf16>
    %cst_8 = arith.constant dense<0.000000e+00> : vector<8x128xf32>
    %10 = tpu.matmul %8, %9, %cst_8 {dimension_numbers = #tpu.dot_dimension_numbers<[1], [0], [0], [1], [0, 0, 1, 1], [], []>} : vector<8x512xbf16>, vector<512x128xbf16>, vector<8x128xf32> -> vector<8x128xf32>
    %c0_9 = arith.constant 0 : index
    %c0_10 = arith.constant 0 : index
    %11 = vector.load %arg5[%c0_9, %c0_10] : memref<1x128xf32, #tpu.memory_space<vmem>>, vector<1x128xf32>
    %12 = vector.broadcast %11 : vector<1x128xf32> to vector<8x128xf32>
    %13 = arith.addf %10, %12 : vector<8x128xf32>
    %cst_11 = arith.constant 0.000000e+00 : f32
    %14 = vector.broadcast %cst_11 : f32 to vector<8x128xf32>
    %15 = arith.maximumf %13, %14 : vector<8x128xf32>
    %16 = arith.truncf %15 : vector<8x128xf32> to vector<8x128xbf16>
    %c0_12 = arith.constant 0 : index
    %c0_13 = arith.constant 0 : index
    %17 = vector.load %arg6[%c0_12, %c0_13] : memref<128x128xbf16, #tpu.memory_space<vmem>>, vector<128x128xbf16>
    %cst_14 = arith.constant dense<0.000000e+00> : vector<8x128xf32>
    %18 = tpu.matmul %16, %17, %cst_14 {dimension_numbers = #tpu.dot_dimension_numbers<[1], [0], [0], [1], [0, 0, 1, 1], [], []>} : vector<8x128xbf16>, vector<128x128xbf16>, vector<8x128xf32> -> vector<8x128xf32>
    %c0_15 = arith.constant 0 : index
    %c0_16 = arith.constant 0 : index
    %19 = vector.load %arg7[%c0_15, %c0_16] : memref<1x128xf32, #tpu.memory_space<vmem>>, vector<1x128xf32>
    %20 = vector.broadcast %19 : vector<1x128xf32> to vector<8x128xf32>
    %21 = arith.addf %18, %20 : vector<8x128xf32>
    %22 = arith.truncf %21 : vector<8x128xf32> to vector<8x128xbf16>
    %c0_17 = arith.constant 0 : index
    %c0_18 = arith.constant 0 : index
    %23 = vector.load %arg8[%c0_17, %c0_18] : memref<8x128xbf16, #tpu.memory_space<vmem>>, vector<8x128xbf16>
    tpu.vector_store %arg8[%c0_17, %c0_18], %22 {strides = array<i32>} : memref<8x128xbf16, #tpu.memory_space<vmem>>, vector<8x128xbf16>,
    return
  }
  func.func @transform_0(%arg0: i32) -> (i32, i32) {
    %c0_i32 = arith.constant 0 : i32
    %c0_i32_0 = arith.constant 0 : i32
    return %arg0, %c0_i32 : i32, i32
  }
  func.func @transform_1(%arg0: i32) -> (i32, i32) {
    %c0_i32 = arith.constant 0 : i32
    %c0_i32_0 = arith.constant 0 : i32
    %c0_i32_1 = arith.constant 0 : i32
    return %c0_i32, %c0_i32_0 : i32, i32
  }
  func.func @transform_2(%arg0: i32) -> (i32, i32) {
    %c0_i32 = arith.constant 0 : i32
    %c0_i32_0 = arith.constant 0 : i32
    %c0_i32_1 = arith.constant 0 : i32
    return %c0_i32, %c0_i32_0 : i32, i32
  }
  func.func @transform_3(%arg0: i32) -> (i32, i32) {
    %c0_i32 = arith.constant 0 : i32
    %c0_i32_0 = arith.constant 0 : i32
    %c0_i32_1 = arith.constant 0 : i32
    return %c0_i32, %c0_i32_0 : i32, i32
  }
  func.func @transform_4(%arg0: i32) -> (i32, i32) {
    %c0_i32 = arith.constant 0 : i32
    %c0_i32_0 = arith.constant 0 : i32
    %c0_i32_1 = arith.constant 0 : i32
    return %c0_i32, %c0_i32_0 : i32, i32
  }
  func.func @transform_5(%arg0: i32) -> (i32, i32) {
    %c0_i32 = arith.constant 0 : i32
    %c0_i32_0 = arith.constant 0 : i32
    %c0_i32_1 = arith.constant 0 : i32
    return %c0_i32, %c0_i32_0 : i32, i32
  }
  func.func @transform_6(%arg0: i32) -> (i32, i32) {
    %c0_i32 = arith.constant 0 : i32
    %c0_i32_0 = arith.constant 0 : i32
    %c0_i32_1 = arith.constant 0 : i32
    return %c0_i32, %c0_i32_0 : i32, i32
  }
  func.func @transform_7(%arg0: i32) -> (i32, i32) {
    %c0_i32 = arith.constant 0 : i32
    %c0_i32_0 = arith.constant 0 : i32
    return %arg0, %c0_i32 : i32, i32
  }
}

</mosaic_0001>

<bundles_post_ra>
// kernel: tpu_custom_call.1
= control target key start
LH: loop header
LB: loop body
LE: loop exit
PB: predicated region body
PF: predicated region fallthrough
CT: control target
= control target key end

     0   :  { %12 = vsyncpa [#allocation3], 0  ;;  %s7736_s0 = inlined_call_operand.hbm [shape: bf16[8,2048], index: 0, kind: input, shape index: {}]   ;;  %s7737_s1 = inlined_call_operand.hbm [shape: bf16[2048,512], index: 1, kind: input, shape index: {}]   ;;  %s7738_s2 = inlined_call_operand.hbm [shape: f32[1,512], index: 2, kind: input, shape index: {}]   ;;  %s7739_s3 = inlined_call_operand.hbm [shape: bf16[512,128], index: 3, kind: input, shape index: {}]   ;;  %s7740_s4 = inlined_call_operand.hbm [shape: f32[1,128], index: 4, kind: input, shape index: {}]   ;;  %s7741_s5 = inlined_call_operand.hbm [shape: bf16[128,128], index: 5, kind: input, shape index: {}]   ;;  %s7742_s6 = inlined_call_operand.hbm [shape: f32[1,128], index: 6, kind: input, shape index: {}]   ;;  %s7743_s7 = inlined_call_operand.hbm [shape: bf16[8,128], index: 7, kind: output, shape index: {}]  }
   0x1   :  { %13 = vsyncpa [#allocation6], 0 }
   0x2   :  { %14 = vsyncpa [#allocation9], 0 }
   0x3   :  { %15 = vsyncpa [#allocation12], 0  ;;  %s32_s26 = sshll.u32 %s7737_s1, 4  ;;  %s33_s26 = int_to_ptr.hbm [resolvable:$true] %s32_s26 }
   0x4   :  { %16 = vsyncpa [#allocation4], 0  ;;  %s7509_s27 = smov [#allocation5]   ;;  %s56_s8 = sshll.u32 %s7739_s3, 4  ;;  %s57_s8 = int_to_ptr.hbm [resolvable:$true] %s56_s8 }
   0x5   :  { %s34_s28 = sshll.u32 %s7509_s27, 4  ;;  %s7510_s9 = smov 256   ;;  %s35_s28 = int_to_ptr.vmem [resolvable:$true] %s34_s28 }
   0x6   :  { %s7511_s10 = smov 16   ;;  %s7512_s11 = smov [#allocation8]  }
   0x7   :  { %40 = dma.hbm_to_vmem [thread:$0]  %s33_s26, 65536, %s35_s28, [#allocation6], %s7510_s9, %s7510_s9, %s7511_s10  }
   0x8   :  { %s58_s12 = sshll.u32 %s7512_s11, 4  ;;  %s7513_s13 = smov 64   ;;  %s59_s12 = int_to_ptr.vmem [resolvable:$true] %s58_s12 }
   0x9   :  { %s7514_s14 = smov 4   ;;  %s80_s16 = sshll.u32 %s7741_s5, 4  ;;  %s81_s16 = int_to_ptr.hbm [resolvable:$true] %s80_s16 }
   0xa   :  { %64 = dma.hbm_to_vmem [thread:$0]  %s57_s8, 4096, %s59_s12, [#allocation9], %s7513_s13, %s7513_s13, %s7514_s14  }
   0xb   :  { %s7515_s17 = smov [#allocation11]   ;;  %s22_s20 = sshll.u32 %s7736_s0, 4  ;;  %s23_s20 = int_to_ptr.hbm [resolvable:$true] %s22_s20 }
   0xc   :  { %s82_s18 = sshll.u32 %s7515_s17, 4  ;;  %s7516_s21 = smov [#allocation2]   ;;  %s83_s18 = int_to_ptr.vmem [resolvable:$true] %s82_s18 }
   0xd   :  { %88 = dma.hbm_to_vmem [thread:$0]  %s81_s16, 1024, %s83_s18, [#allocation12], %s7513_s13, %s7513_s13, %s7514_s14  }
   0xe   :  { %s24_s22 = sshll.u32 %s7516_s21, 4  ;;  %s46_s25 = sshll.u32 %s7738_s2, 4  ;;  %s25_s22 = int_to_ptr.vmem [resolvable:$true] %s24_s22  ;;  %s47_s25 = int_to_ptr.hbm [resolvable:$true] %s46_s25 }
   0xf   :  { %27 = dma.hbm_to_vmem [thread:$0]  %s23_s20, 1024, %s25_s22, [#allocation3]  }
  0x10   :  { %s70_s27 = sshll.u32 %s7740_s4, 4  ;;  %s7517_s28 = smov [#allocation7]   ;;  %s71_s27 = int_to_ptr.hbm [resolvable:$true] %s70_s27 }
  0x11   :  { %s48_s29 = sshll.u32 %s7517_s28, 4  ;;  %s7518_s0 = smov [#allocation10]   ;;  %s49_s29 = int_to_ptr.vmem [resolvable:$true] %s48_s29 }
  0x12   :  { %51 = dma.hbm_to_vmem [thread:$0]  %s47_s25, 64, %s49_s29, [#allocation6]  }
  0x13   :  { %s72_s30 = sshll.u32 %s7518_s0, 4  ;;  %s94_s10 = sshll.u32 %s7742_s6, 4  ;;  %s73_s30 = int_to_ptr.vmem [resolvable:$true] %s72_s30  ;;  %s95_s10 = int_to_ptr.hbm [resolvable:$true] %s94_s10 }
  0x14   :  { %75 = dma.hbm_to_vmem [thread:$0]  %s71_s27, 16, %s73_s30, [#allocation9]  }
  0x15   :  { %s7519_s2 = smov [#allocation13]  }
  0x16   :  { %s96_s11 = sshll.u32 %s7519_s2, 4  ;;  %s97_s11 = int_to_ptr.vmem [resolvable:$true] %s96_s11 }
  0x17   :  { %99 = dma.hbm_to_vmem [thread:$0]  %s95_s10, 16, %s97_s11, [#allocation12]  }
  0x18   :  { %7499 = dma.done.wait [#allocation3], 1024  }
  0x19   :  { %7500 = vsyncadd [#allocation3], 4294966272 }
  0x1a   :  { %7501 = dma.done.wait [#allocation6], 65600  }
  0x1b   :  { %7502 = vsyncadd [#allocation6], 4294901696 }
  0x1c   :  { %7503 = dma.done.wait [#allocation9], 4112  }
  0x1d   :  { %7504 = vsyncadd [#allocation9], 4294963184 }
  0x1e   :  { %7505 = dma.done.wait [#allocation12], 1040  }
  0x1f   :  { %7506 = vsyncadd [#allocation12], 4294966256  ;;  %v4645_v0 = vld [vmem:[#allocation5 + $0xe0] sm:$0xf]  ;;  %v6769_v1 = vld [vmem:[#allocation5 + $0xec] sm:$0xf0] }
  0x20   :  { %v4773_v2 = vld [vmem:[#allocation5 + $0x1e0] sm:$0xf]  ;;  %v4646_v3 = vor.u32 %v6769_v1, %v4645_v0  ;;  %v6801_v4 = vld [vmem:[#allocation5 + $0x1ec] sm:$0xf0]  ;;  %s7520_s4 = smov [#allocation14]   ;;  %s4518_s14 = sshll.u32 %s7743_s7, 4  ;;  %s4519_s14 = int_to_ptr.hbm [resolvable:$true] %s4518_s14 }
  0x21   :  { %v4901_v5 = vld [vmem:[#allocation5 + $0x2e0] sm:$0xf]  ;;  %v6833_v6 = vld [vmem:[#allocation5 + $0x2ec] sm:$0xf0]  ;;  %v4774_v7 = vor.u32 %v6801_v4, %v4773_v2  ;;  %s4516_s6 = sshll.u32 %s7520_s4, 4  ;;  %s4517_s6 = int_to_ptr.vmem [resolvable:$true] %s4516_s6 }
  0x22   :  { %v4902_v8 = vor.u32 %v6833_v6, %v4901_v5  ;;  %v5029_v9 = vld [vmem:[#allocation5 + $0x3e0] sm:$0xf]  ;;  %v6865_v10 = vld [vmem:[#allocation5 + $0x3ec] sm:$0xf0]  ;;  %3274 = vmatpush.bf16.msra.mxu0 %v4646_v3 }
  0x23   :  { %v4629_v11 = vld [vmem:[#allocation5 + $0xc0] sm:$0xf]  ;;  %v5030_v12 = vor.u32 %v6865_v10, %v5029_v9  ;;  %v6765_v13 = vld [vmem:[#allocation5 + $0xcc] sm:$0xf0]  ;;  %3287 = vmatpush.bf16.msra.mxu1 %v4774_v7 }
  0x24   :  { %v4757_v14 = vld [vmem:[#allocation5 + $0x1c0] sm:$0xf]  ;;  %v6797_v15 = vld [vmem:[#allocation5 + $0x1cc] sm:$0xf0]  ;;  %3300 = vmatpush.bf16.msra.mxu2 %v4902_v8  ;;  %v4630_v16 = vor.u32 %v6765_v13, %v4629_v11 }
  0x25   :  { %v4758_v17 = vor.u32 %v6797_v15, %v4757_v14  ;;  %v4885_v18 = vld [vmem:[#allocation5 + $0x2c0] sm:$0xf]  ;;  %v6829_v19 = vld [vmem:[#allocation5 + $0x2cc] sm:$0xf0]  ;;  %3313 = vmatpush.bf16.msra.mxu3 %v5030_v12 }
  0x26   :  { %v5013_v20 = vld [vmem:[#allocation5 + $0x3c0] sm:$0xf]  ;;  %v4886_v21 = vor.u32 %v6829_v19, %v4885_v18  ;;  %v6861_v22 = vld [vmem:[#allocation5 + $0x3cc] sm:$0xf0]  ;;  %3275 = vmatpush.bf16.msra.mxu0 %v4630_v16 }
  0x27   :  { %v4613_v23 = vld [vmem:[#allocation5 + $0xa0] sm:$0xf]  ;;  %v6761_v24 = vld [vmem:[#allocation5 + $0xac] sm:$0xf0]  ;;  %v5014_v25 = vor.u32 %v6861_v22, %v5013_v20  ;;  %3288 = vmatpush.bf16.msra.mxu1 %v4758_v17 }
  0x28   :  { %v4741_v26 = vld [vmem:[#allocation5 + $0x1a0] sm:$0xf]  ;;  %v6793_v27 = vld [vmem:[#allocation5 + $0x1ac] sm:$0xf0]  ;;  %v4614_v29 = vor.u32 %v6761_v24, %v4613_v23  ;;  %3301 = vmatpush.bf16.msra.mxu2 %v4886_v21 }
  0x29   :  { %v4869_v28 = vld [vmem:[#allocation5 + $0x2a0] sm:$0xf]  ;;  %v6825_v30 = vld [vmem:[#allocation5 + $0x2ac] sm:$0xf0]  ;;  %v4742_v33 = vor.u32 %v6793_v27, %v4741_v26  ;;  %3314 = vmatpush.bf16.msra.mxu3 %v5014_v25 }
  0x2a   :  { %v4997_v31 = vld [vmem:[#allocation5 + $0x3a0] sm:$0xf]  ;;  %v6857_v32 = vld [vmem:[#allocation5 + $0x3ac] sm:$0xf0]  ;;  %v4870_v34 = vor.u32 %v6825_v30, %v4869_v28  ;;  %3276 = vmatpush.bf16.msra.mxu0 %v4614_v29 }
  0x2b   :  { %v4597_v35 = vld [vmem:[#allocation5 + $0x80] sm:$0xf]  ;;  %v6757_v36 = vld [vmem:[#allocation5 + $0x8c] sm:$0xf0]  ;;  %v4998_v38 = vor.u32 %v6857_v32, %v4997_v31  ;;  %3289 = vmatpush.bf16.msra.mxu1 %v4742_v33 }
  0x2c   :  { %v4725_v37 = vld [vmem:[#allocation5 + $0x180] sm:$0xf]  ;;  %v6789_v39 = vld [vmem:[#allocation5 + $0x18c] sm:$0xf0]  ;;  %v4598_v44 = vor.u32 %v6757_v36, %v4597_v35  ;;  %3302 = vmatpush.bf16.msra.mxu2 %v4870_v34 }
  0x2d   :  { %v4853_v40 = vld [vmem:[#allocation5 + $0x280] sm:$0xf]  ;;  %v6821_v41 = vld [vmem:[#allocation5 + $0x28c] sm:$0xf0]  ;;  %v4726_v45 = vor.u32 %v6789_v39, %v4725_v37  ;;  %3315 = vmatpush.bf16.msra.mxu3 %v4998_v38 }
  0x2e   :  { %v4981_v42 = vld [vmem:[#allocation5 + $0x380] sm:$0xf]  ;;  %v6853_v43 = vld [vmem:[#allocation5 + $0x38c] sm:$0xf0]  ;;  %v4854_v46 = vor.u32 %v6821_v41, %v4853_v40  ;;  %3277 = vmatpush.bf16.msra.mxu0 %v4598_v44 }
  0x2f   :  { %v4581_v47 = vld [vmem:[#allocation5 + $0x60] sm:$0xf]  ;;  %v6753_v48 = vld [vmem:[#allocation5 + $0x6c] sm:$0xf0]  ;;  %v4982_v50 = vor.u32 %v6853_v43, %v4981_v42  ;;  %3290 = vmatpush.bf16.msra.mxu1 %v4726_v45 }
  0x30   :  { %v4709_v49 = vld [vmem:[#allocation5 + $0x160] sm:$0xf]  ;;  %v6785_v51 = vld [vmem:[#allocation5 + $0x16c] sm:$0xf0]  ;;  %v4582_v56 = vor.u32 %v6753_v48, %v4581_v47  ;;  %3303 = vmatpush.bf16.msra.mxu2 %v4854_v46 }
  0x31   :  { %v4837_v52 = vld [vmem:[#allocation5 + $0x260] sm:$0xf]  ;;  %v6817_v53 = vld [vmem:[#allocation5 + $0x26c] sm:$0xf0]  ;;  %v4710_v57 = vor.u32 %v6785_v51, %v4709_v49  ;;  %3316 = vmatpush.bf16.msra.mxu3 %v4982_v50 }
  0x32   :  { %v4965_v54 = vld [vmem:[#allocation5 + $0x360] sm:$0xf]  ;;  %v6849_v55 = vld [vmem:[#allocation5 + $0x36c] sm:$0xf0]  ;;  %v4838_v58 = vor.u32 %v6817_v53, %v4837_v52  ;;  %3278 = vmatpush.bf16.msra.mxu0 %v4582_v56 }
  0x33   :  { %v4565_v59 = vld [vmem:[#allocation5 + $0x40] sm:$0xf]  ;;  %v6749_v60 = vld [vmem:[#allocation5 + $0x4c] sm:$0xf0]  ;;  %v4966_v62 = vor.u32 %v6849_v55, %v4965_v54  ;;  %3291 = vmatpush.bf16.msra.mxu1 %v4710_v57 }
  0x34   :  { %v4693_v61 = vld [vmem:[#allocation5 + $0x140] sm:$0xf]  ;;  %v6781_v63 = vld [vmem:[#allocation5 + $0x14c] sm:$0xf0]  ;;  %v4566_v4 = vor.u32 %v6749_v60, %v4565_v59  ;;  %3304 = vmatpush.bf16.msra.mxu2 %v4838_v58 }
  0x35   :  { %v4821_v0 = vld [vmem:[#allocation5 + $0x240] sm:$0xf]  ;;  %v6813_v1 = vld [vmem:[#allocation5 + $0x24c] sm:$0xf0]  ;;  %v4694_v5 = vor.u32 %v6781_v63, %v4693_v61  ;;  %3317 = vmatpush.bf16.msra.mxu3 %v4966_v62 }
  0x36   :  { %v4949_v2 = vld [vmem:[#allocation5 + $0x340] sm:$0xf]  ;;  %v6845_v3 = vld [vmem:[#allocation5 + $0x34c] sm:$0xf0]  ;;  %v4822_v6 = vor.u32 %v6813_v1, %v4821_v0  ;;  %3279 = vmatpush.bf16.msra.mxu0 %v4566_v4 }
  0x37   :  { %v4549_v7 = vld [vmem:[#allocation5 + $0x20] sm:$0xf]  ;;  %v6745_v8 = vld [vmem:[#allocation5 + $0x2c] sm:$0xf0]  ;;  %v4950_v10 = vor.u32 %v6845_v3, %v4949_v2  ;;  %3292 = vmatpush.bf16.msra.mxu1 %v4694_v5  ;;  %v129_v2 = vld [vmem:[#allocation2 + $0x8] sm:$0xff] }
  0x38   :  { %v4677_v9 = vld [vmem:[#allocation5 + $0x120] sm:$0xf]  ;;  %v6777_v11 = vld [vmem:[#allocation5 + $0x12c] sm:$0xf0]  ;;  %v4550_v16 = vor.u32 %v6745_v8, %v4549_v7  ;;  %3305 = vmatpush.bf16.msra.mxu2 %v4822_v6  ;;  %v668_v8 = vunpack.c.l.b16 %v129_v2 }
  0x39   :  { %v4805_v12 = vld [vmem:[#allocation5 + $0x220] sm:$0xf]  ;;  %v6809_v13 = vld [vmem:[#allocation5 + $0x22c] sm:$0xf0]  ;;  %v4678_v19 = vor.u32 %v6777_v11, %v4677_v9  ;;  %3318 = vmatpush.bf16.msra.mxu3 %v4950_v10  ;;  %v669_v10 = vunpack.c.h.b16 %v129_v2 }
  0x3a   :  { %v4933_v14 = vld [vmem:[#allocation5 + $0x320] sm:$0xf]  ;;  %v6841_v15 = vld [vmem:[#allocation5 + $0x32c] sm:$0xf0]  ;;  %v4806_v20 = vor.u32 %v6809_v13, %v4805_v12  ;;  %3280 = vmatpush.bf16.msra.mxu0 %v4550_v16 }
  0x3b   :  { %v4533_v17 = vld [vmem:[#allocation5] sm:$0xf]  ;;  %v6741_v18 = vld [vmem:[#allocation5 + $0xc] sm:$0xf0]  ;;  %v4934_v24 = vor.u32 %v6841_v15, %v4933_v14  ;;  %3293 = vmatpush.bf16.msra.mxu1 %v4678_v19 }
  0x3c   :  { %v4661_v21 = vld [vmem:[#allocation5 + $0x100] sm:$0xf]  ;;  %v6773_v22 = vld [vmem:[#allocation5 + $0x10c] sm:$0xf0]  ;;  %v4534_v31 = vor.u32 %v6741_v18, %v4533_v17  ;;  %3306 = vmatpush.bf16.msra.mxu2 %v4806_v20  ;;  %v7582_v18 = vpack.c.b16 %v668_v8, %v668_v8  ;;  %v7586_v20 = vpack.c.b16 %v669_v10, %v669_v10 }
  0x3d   :  { %v4789_v23 = vld [vmem:[#allocation5 + $0x200] sm:$0xf]  ;;  %v6805_v25 = vld [vmem:[#allocation5 + $0x20c] sm:$0xf0]  ;;  %v4662_v35 = vor.u32 %v6773_v22, %v4661_v21  ;;  %3319 = vmatpush.bf16.msra.mxu3 %v4934_v24 }
  0x3e   :  { %v4917_v26 = vld [vmem:[#allocation5 + $0x300] sm:$0xf]  ;;  %v6837_v27 = vld [vmem:[#allocation5 + $0x30c] sm:$0xf0]  ;;  %v4790_v36 = vor.u32 %v6805_v25, %v4789_v23  ;;  %3281 = vmatpush.bf16.msra.mxu0 %v4534_v31 }
  0x3f   :  { %v5157_v28 = vld [vmem:[#allocation5 + $0x4e0] sm:$0xf]  ;;  %v6897_v29 = vld [vmem:[#allocation5 + $0x4ec] sm:$0xf0]  ;;  %v4918_v39 = vor.u32 %v6837_v27, %v4917_v26  ;;  %3294 = vmatpush.bf16.msra.mxu1 %v4662_v35 }
  0x40   :  { %v5285_v30 = vld [vmem:[#allocation5 + $0x5e0] sm:$0xf]  ;;  %v6929_v32 = vld [vmem:[#allocation5 + $0x5ec] sm:$0xf0]  ;;  %v5158_v40 = vor.u32 %v6897_v29, %v5157_v28  ;;  %3307 = vmatpush.bf16.msra.mxu2 %v4790_v36 }
  0x41   :  { %v5413_v33 = vld [vmem:[#allocation5 + $0x6e0] sm:$0xf]  ;;  %v6961_v34 = vld [vmem:[#allocation5 + $0x6ec] sm:$0xf0]  ;;  %v5286_v41 = vor.u32 %v6929_v32, %v5285_v30  ;;  %3320 = vmatpush.bf16.msra.mxu3 %v4918_v39 }
  0x42   :  { %v5541_v37 = vld [vmem:[#allocation5 + $0x7e0] sm:$0xf]  ;;  %v6993_v38 = vld [vmem:[#allocation5 + $0x7ec] sm:$0xf0]  ;;  %v5414_v42 = vor.u32 %v6961_v34, %v5413_v33  ;;  %3326 = vmatpush.bf16.msrb.mxu0 %v5158_v40 }
  0x43   :  { %v5141_v43 = vld [vmem:[#allocation5 + $0x4c0] sm:$0xf]  ;;  %v6893_v44 = vld [vmem:[#allocation5 + $0x4cc] sm:$0xf0]  ;;  %v5542_v46 = vor.u32 %v6993_v38, %v5541_v37  ;;  %3339 = vmatpush.bf16.msrb.mxu1 %v5286_v41  ;;  %3308 = vmatmul.bf16.vlgmr.msra.gmra.mxu2 %v7582_v18 }
  0x44   :  { %v5269_v45 = vld [vmem:[#allocation5 + $0x5c0] sm:$0xf]  ;;  %v6925_v47 = vld [vmem:[#allocation5 + $0x5cc] sm:$0xf0]  ;;  %v5142_v52 = vor.u32 %v6893_v44, %v5141_v43  ;;  %3352 = vmatpush.bf16.msrb.mxu2 %v5414_v42  ;;  %3321 = vmatmul.bf16.vlgmr.msra.gmra.mxu3 %v7586_v20 }
  0x45   :  { %v5397_v48 = vld [vmem:[#allocation5 + $0x6c0] sm:$0xf]  ;;  %v6957_v49 = vld [vmem:[#allocation5 + $0x6cc] sm:$0xf0]  ;;  %v5270_v54 = vor.u32 %v6925_v47, %v5269_v45  ;;  %3365 = vmatpush.bf16.msrb.mxu3 %v5542_v46 }
  0x46   :  { %v5525_v50 = vld [vmem:[#allocation5 + $0x7c0] sm:$0xf]  ;;  %v6989_v51 = vld [vmem:[#allocation5 + $0x7cc] sm:$0xf0]  ;;  %v5398_v55 = vor.u32 %v6957_v49, %v5397_v48  ;;  %3327 = vmatpush.bf16.msrb.mxu0 %v5142_v52 }
  0x47   :  { %v5125_v53 = vld [vmem:[#allocation5 + $0x4a0] sm:$0xf]  ;;  %v6889_v56 = vld [vmem:[#allocation5 + $0x4ac] sm:$0xf0]  ;;  %v5526_v59 = vor.u32 %v6989_v51, %v5525_v50  ;;  %3340 = vmatpush.bf16.msrb.mxu1 %v5270_v54 }
  0x48   :  { %v5253_v57 = vld [vmem:[#allocation5 + $0x5a0] sm:$0xf]  ;;  %v6921_v58 = vld [vmem:[#allocation5 + $0x5ac] sm:$0xf0]  ;;  %v5126_v0 = vor.u32 %v6889_v56, %v5125_v53  ;;  %3353 = vmatpush.bf16.msrb.mxu2 %v5398_v55 }
  0x49   :  { %v5381_v60 = vld [vmem:[#allocation5 + $0x6a0] sm:$0xf]  ;;  %v6953_v61 = vld [vmem:[#allocation5 + $0x6ac] sm:$0xf0]  ;;  %v5254_v1 = vor.u32 %v6921_v58, %v5253_v57  ;;  %3366 = vmatpush.bf16.msrb.mxu3 %v5526_v59 }
  0x4a   :  { %v5509_v62 = vld [vmem:[#allocation5 + $0x7a0] sm:$0xf]  ;;  %v6985_v63 = vld [vmem:[#allocation5 + $0x7ac] sm:$0xf0]  ;;  %v5382_v4 = vor.u32 %v6953_v61, %v5381_v60  ;;  %3328 = vmatpush.bf16.msrb.mxu0 %v5126_v0 }
  0x4b   :  { %v128_v3 = vld [vmem:[#allocation2] sm:$0xff]  ;;  %v6885_v6 = vld [vmem:[#allocation5 + $0x48c] sm:$0xf0]  ;;  %v5510_v11 = vor.u32 %v6985_v63, %v5509_v62  ;;  %3341 = vmatpush.bf16.msrb.mxu1 %v5254_v1 }
  0x4c   :  { %v5109_v5 = vld [vmem:[#allocation5 + $0x480] sm:$0xf]  ;;  %v666_v9 = vunpack.c.l.b16 %v128_v3  ;;  %v6917_v12 = vld [vmem:[#allocation5 + $0x58c] sm:$0xf0]  ;;  %v667_v15 = vunpack.c.h.b16 %v128_v3  ;;  %3354 = vmatpush.bf16.msrb.mxu2 %v5382_v4  ;;  %v131_v3 = vld [vmem:[#allocation2 + $0x18] sm:$0xff] }
  0x4d   :  { %v5237_v7 = vld [vmem:[#allocation5 + $0x580] sm:$0xf]  ;;  %v6949_v14 = vld [vmem:[#allocation5 + $0x68c] sm:$0xf0]  ;;  %v5110_v21 = vor.u32 %v6885_v6, %v5109_v5  ;;  %3367 = vmatpush.bf16.msrb.mxu3 %v5510_v11 }
  0x4e   :  { %v5365_v13 = vld [vmem:[#allocation5 + $0x680] sm:$0xf]  ;;  %v6981_v17 = vld [vmem:[#allocation5 + $0x78c] sm:$0xf0]  ;;  %v7584_v19 = vpack.c.b16 %v666_v9, %v666_v9  ;;  %v7588_v22 = vpack.c.b16 %v667_v15, %v667_v15  ;;  %v5238_v23 = vor.u32 %v6917_v12, %v5237_v7  ;;  %v672_v15 = vunpack.c.l.b16 %v131_v3 }
  0x4f   :  { %v5493_v16 = vld [vmem:[#allocation5 + $0x780] sm:$0xf]  ;;  %v5366_v24 = vor.u32 %v6949_v14, %v5365_v13  ;;  %v6881_v26 = vld [vmem:[#allocation5 + $0x46c] sm:$0xf0]  ;;  %3329 = vmatpush.bf16.msrb.mxu0 %v5110_v21 }
  0x50   :  { %v5093_v25 = vld [vmem:[#allocation5 + $0x460] sm:$0xf]  ;;  %v5494_v28 = vor.u32 %v6981_v17, %v5493_v16  ;;  %v6913_v29 = vld [vmem:[#allocation5 + $0x56c] sm:$0xf0]  ;;  %3282 = vmatmul.bf16.vlgmr.msra.gmra.mxu0 %v7584_v19  ;;  %3295 = vmatmul.bf16.vlgmr.msra.gmra.mxu1 %v7588_v22 }
  0x51   :  { %v5221_v27 = vld [vmem:[#allocation5 + $0x560] sm:$0xf]  ;;  %v6945_v31 = vld [vmem:[#allocation5 + $0x66c] sm:$0xf0]  ;;  %v5094_v34 = vor.u32 %v6881_v26, %v5093_v25  ;;  %3342 = vmatpush.bf16.msrb.mxu1 %v5238_v23  ;;  %3355 = vmatpush.bf16.msrb.mxu2 %v5366_v24  ;;  %v673_v25 = vunpack.c.h.b16 %v131_v3 }
  0x52   :  { %v5349_v30 = vld [vmem:[#allocation5 + $0x660] sm:$0xf]  ;;  %v6977_v33 = vld [vmem:[#allocation5 + $0x76c] sm:$0xf0]  ;;  %v5222_v35 = vor.u32 %v6913_v29, %v5221_v27  ;;  %3368 = vmatpush.bf16.msrb.mxu3 %v5494_v28 }
  0x53   :  { %v5477_v32 = vld [vmem:[#allocation5 + $0x760] sm:$0xf]  ;;  %v5350_v36 = vor.u32 %v6945_v31, %v5349_v30  ;;  %v6877_v38 = vld [vmem:[#allocation5 + $0x44c] sm:$0xf0]  ;;  %3330 = vmatpush.bf16.msrb.mxu0 %v5094_v34 }
  0x54   :  { %v5077_v37 = vld [vmem:[#allocation5 + $0x440] sm:$0xf]  ;;  %v5478_v40 = vor.u32 %v6977_v33, %v5477_v32  ;;  %v6909_v41 = vld [vmem:[#allocation5 + $0x54c] sm:$0xf0] }
  0x55   :  { %v5205_v39 = vld [vmem:[#allocation5 + $0x540] sm:$0xf]  ;;  %v6941_v43 = vld [vmem:[#allocation5 + $0x64c] sm:$0xf0]  ;;  %v5078_v46 = vor.u32 %v6877_v38, %v5077_v37  ;;  %3343 = vmatpush.bf16.msrb.mxu1 %v5222_v35  ;;  %3356 = vmatpush.bf16.msrb.mxu2 %v5350_v36  ;;  %v7594_v38 = vpack.c.b16 %v672_v15, %v672_v15 }
  0x56   :  { %v5333_v42 = vld [vmem:[#allocation5 + $0x640] sm:$0xf]  ;;  %v6973_v45 = vld [vmem:[#allocation5 + $0x74c] sm:$0xf0]  ;;  %v5206_v47 = vor.u32 %v6909_v41, %v5205_v39  ;;  %3369 = vmatpush.bf16.msrb.mxu3 %v5478_v40 }
  0x57   :  { %v5461_v44 = vld [vmem:[#allocation5 + $0x740] sm:$0xf]  ;;  %v5334_v48 = vor.u32 %v6941_v43, %v5333_v42  ;;  %v6873_v50 = vld [vmem:[#allocation5 + $0x42c] sm:$0xf0]  ;;  %3331 = vmatpush.bf16.msrb.mxu0 %v5078_v46  ;;  %v7598_v42 = vpack.c.b16 %v673_v25, %v673_v25 }
  0x58   :  { %v5061_v49 = vld [vmem:[#allocation5 + $0x420] sm:$0xf]  ;;  %v5462_v52 = vor.u32 %v6973_v45, %v5461_v44  ;;  %v6905_v53 = vld [vmem:[#allocation5 + $0x52c] sm:$0xf0] }
  0x59   :  { %v5189_v51 = vld [vmem:[#allocation5 + $0x520] sm:$0xf]  ;;  %v6937_v55 = vld [vmem:[#allocation5 + $0x62c] sm:$0xf0]  ;;  %v5062_v59 = vor.u32 %v6873_v50, %v5061_v49  ;;  %3344 = vmatpush.bf16.msrb.mxu1 %v5206_v47  ;;  %3357 = vmatpush.bf16.msrb.mxu2 %v5334_v48 }
  0x5a   :  { %v5317_v54 = vld [vmem:[#allocation5 + $0x620] sm:$0xf]  ;;  %v6969_v57 = vld [vmem:[#allocation5 + $0x72c] sm:$0xf0]  ;;  %v5190_v63 = vor.u32 %v6905_v53, %v5189_v51  ;;  %3370 = vmatpush.bf16.msrb.mxu3 %v5462_v52 }
  0x5b   :  { %v5445_v56 = vld [vmem:[#allocation5 + $0x720] sm:$0xf]  ;;  %v6869_v60 = vld [vmem:[#allocation5 + $0x40c] sm:$0xf0]  ;;  %v5318_v0 = vor.u32 %v6937_v55, %v5317_v54  ;;  %3332 = vmatpush.bf16.msrb.mxu0 %v5062_v59 }
  0x5c   :  { %v5045_v58 = vld [vmem:[#allocation5 + $0x400] sm:$0xf]  ;;  %v6901_v62 = vld [vmem:[#allocation5 + $0x50c] sm:$0xf0]  ;;  %v5446_v4 = vor.u32 %v6969_v57, %v5445_v56 }
  0x5d   :  { %v5173_v61 = vld [vmem:[#allocation5 + $0x500] sm:$0xf]  ;;  %v6933_v2 = vld [vmem:[#allocation5 + $0x60c] sm:$0xf0]  ;;  %v5046_v11 = vor.u32 %v6869_v60, %v5045_v58  ;;  %3345 = vmatpush.bf16.msrb.mxu1 %v5190_v63  ;;  %3358 = vmatpush.bf16.msrb.mxu2 %v5318_v0 }
  0x5e   :  { %v5301_v1 = vld [vmem:[#allocation5 + $0x600] sm:$0xf]  ;;  %v6965_v6 = vld [vmem:[#allocation5 + $0x70c] sm:$0xf0]  ;;  %v5174_v16 = vor.u32 %v6901_v62, %v5173_v61  ;;  %3371 = vmatpush.bf16.msrb.mxu3 %v5446_v4 }
  0x5f   :  { %v5429_v5 = vld [vmem:[#allocation5 + $0x700] sm:$0xf]  ;;  %v130_v7 = vld [vmem:[#allocation2 + $0x10] sm:$0xff]  ;;  %v5302_v17 = vor.u32 %v6933_v2, %v5301_v1  ;;  %3333 = vmatpush.bf16.msrb.mxu0 %v5046_v11 }
  0x60   :  { %v5669_v8 = vld [vmem:[#allocation5 + $0x8e0] sm:$0xf]  ;;  %v7025_v9 = vld [vmem:[#allocation5 + $0x8ec] sm:$0xf0]  ;;  %v670_v24 = vunpack.c.l.b16 %v130_v7  ;;  %v5430_v26 = vor.u32 %v6965_v6, %v5429_v5  ;;  %v671_v28 = vunpack.c.h.b16 %v130_v7 }
  0x61   :  { %v5797_v10 = vld [vmem:[#allocation5 + $0x9e0] sm:$0xf]  ;;  %v7057_v12 = vld [vmem:[#allocation5 + $0x9ec] sm:$0xf0]  ;;  %v5670_v27 = vor.u32 %v7025_v9, %v5669_v8  ;;  %3346 = vmatpush.bf16.msrb.mxu1 %v5174_v16  ;;  %3359 = vmatpush.bf16.msrb.mxu2 %v5302_v17 }
  0x62   :  { %v5925_v13 = vld [vmem:[#allocation5 + $0xae0] sm:$0xf]  ;;  %v7089_v14 = vld [vmem:[#allocation5 + $0xaec] sm:$0xf0]  ;;  %v5798_v29 = vor.u32 %v7057_v12, %v5797_v10  ;;  %v7596_v41 = vpack.c.b16 %v670_v24, %v670_v24  ;;  %3372 = vmatpush.bf16.msrb.mxu3 %v5430_v26  ;;  %v7600_v44 = vpack.c.b16 %v671_v28, %v671_v28 }
  0x63   :  { %v6053_v21 = vld [vmem:[#allocation5 + $0xbe0] sm:$0xf]  ;;  %v7121_v23 = vld [vmem:[#allocation5 + $0xbec] sm:$0xf0]  ;;  %v5926_v30 = vor.u32 %v7089_v14, %v5925_v13  ;;  %3378 = vmatpush.bf16.msra.mxu0 %v5670_v27 }
  0x64   :  { %v5653_v31 = vld [vmem:[#allocation5 + $0x8c0] sm:$0xf]  ;;  %v7021_v32 = vld [vmem:[#allocation5 + $0x8cc] sm:$0xf0]  ;;  %v6054_v34 = vor.u32 %v7121_v23, %v6053_v21  ;;  %3360 = vmatmul.bf16.vlgmr.msrb.gmra.mxu2 %v7594_v38  ;;  %3334 = vmatmul.bf16.vlgmr.msrb.gmra.mxu0 %v7596_v41 }
  0x65   :  { %v5781_v33 = vld [vmem:[#allocation5 + $0x9c0] sm:$0xf]  ;;  %v7053_v35 = vld [vmem:[#allocation5 + $0x9cc] sm:$0xf0]  ;;  %v5654_v43 = vor.u32 %v7021_v32, %v5653_v31  ;;  %3391 = vmatpush.bf16.msra.mxu1 %v5798_v29  ;;  %3404 = vmatpush.bf16.msra.mxu2 %v5926_v30 }
  0x66   :  { %v5909_v36 = vld [vmem:[#allocation5 + $0xac0] sm:$0xf]  ;;  %v7085_v37 = vld [vmem:[#allocation5 + $0xacc] sm:$0xf0]  ;;  %v5782_v45 = vor.u32 %v7053_v35, %v5781_v33  ;;  %3417 = vmatpush.bf16.msra.mxu3 %v6054_v34  ;;  %3347 = vmatmul.bf16.vlgmr.msrb.gmra.mxu1 %v7600_v44 }
  0x67   :  { %v6037_v39 = vld [vmem:[#allocation5 + $0xbc0] sm:$0xf]  ;;  %v7117_v40 = vld [vmem:[#allocation5 + $0xbcc] sm:$0xf0]  ;;  %v5910_v46 = vor.u32 %v7085_v37, %v5909_v36  ;;  %3373 = vmatmul.bf16.vlgmr.msrb.gmra.mxu3 %v7598_v42  ;;  %3379 = vmatpush.bf16.msra.mxu0 %v5654_v43 }
  0x68   :  { %v5637_v47 = vld [vmem:[#allocation5 + $0x8a0] sm:$0xf]  ;;  %v7017_v48 = vld [vmem:[#allocation5 + $0x8ac] sm:$0xf0]  ;;  %v6038_v50 = vor.u32 %v7117_v40, %v6037_v39 }
  0x69   :  { %v5765_v49 = vld [vmem:[#allocation5 + $0x9a0] sm:$0xf]  ;;  %v7049_v51 = vld [vmem:[#allocation5 + $0x9ac] sm:$0xf0]  ;;  %v5638_v56 = vor.u32 %v7017_v48, %v5637_v47  ;;  %3392 = vmatpush.bf16.msra.mxu1 %v5782_v45  ;;  %3405 = vmatpush.bf16.msra.mxu2 %v5910_v46 }
  0x6a   :  { %v5893_v52 = vld [vmem:[#allocation5 + $0xaa0] sm:$0xf]  ;;  %v7081_v53 = vld [vmem:[#allocation5 + $0xaac] sm:$0xf0]  ;;  %v5766_v57 = vor.u32 %v7049_v51, %v5765_v49  ;;  %3418 = vmatpush.bf16.msra.mxu3 %v6038_v50 }
  0x6b   :  { %v6021_v54 = vld [vmem:[#allocation5 + $0xba0] sm:$0xf]  ;;  %v7113_v55 = vld [vmem:[#allocation5 + $0xbac] sm:$0xf0]  ;;  %v5894_v58 = vor.u32 %v7081_v53, %v5893_v52  ;;  %3380 = vmatpush.bf16.msra.mxu0 %v5638_v56 }
  0x6c   :  { %v5621_v59 = vld [vmem:[#allocation5 + $0x880] sm:$0xf]  ;;  %v7013_v60 = vld [vmem:[#allocation5 + $0x88c] sm:$0xf0]  ;;  %v6022_v62 = vor.u32 %v7113_v55, %v6021_v54 }
  0x6d   :  { %v5749_v61 = vld [vmem:[#allocation5 + $0x980] sm:$0xf]  ;;  %v7045_v63 = vld [vmem:[#allocation5 + $0x98c] sm:$0xf0]  ;;  %v5622_v4 = vor.u32 %v7013_v60, %v5621_v59  ;;  %3393 = vmatpush.bf16.msra.mxu1 %v5766_v57  ;;  %3406 = vmatpush.bf16.msra.mxu2 %v5894_v58 }
  0x6e   :  { %v5877_v0 = vld [vmem:[#allocation5 + $0xa80] sm:$0xf]  ;;  %v7077_v1 = vld [vmem:[#allocation5 + $0xa8c] sm:$0xf0]  ;;  %v5750_v5 = vor.u32 %v7045_v63, %v5749_v61  ;;  %3419 = vmatpush.bf16.msra.mxu3 %v6022_v62  ;;  %v133_v61 = vld [vmem:[#allocation2 + $0x28] sm:$0xff] }
  0x6f   :  { %v6005_v2 = vld [vmem:[#allocation5 + $0xb80] sm:$0xf]  ;;  %v7109_v3 = vld [vmem:[#allocation5 + $0xb8c] sm:$0xf0]  ;;  %v5878_v6 = vor.u32 %v7077_v1, %v5877_v0  ;;  %3381 = vmatpush.bf16.msra.mxu0 %v5622_v4 }
  0x70   :  { %v5605_v7 = vld [vmem:[#allocation5 + $0x860] sm:$0xf]  ;;  %v7009_v8 = vld [vmem:[#allocation5 + $0x86c] sm:$0xf0]  ;;  %v6006_v10 = vor.u32 %v7109_v3, %v6005_v2 }
  0x71   :  { %v5733_v9 = vld [vmem:[#allocation5 + $0x960] sm:$0xf]  ;;  %v7041_v11 = vld [vmem:[#allocation5 + $0x96c] sm:$0xf0]  ;;  %v5606_v16 = vor.u32 %v7009_v8, %v5605_v7  ;;  %3394 = vmatpush.bf16.msra.mxu1 %v5750_v5  ;;  %3407 = vmatpush.bf16.msra.mxu2 %v5878_v6 }
  0x72   :  { %v5861_v12 = vld [vmem:[#allocation5 + $0xa60] sm:$0xf]  ;;  %v7073_v13 = vld [vmem:[#allocation5 + $0xa6c] sm:$0xf0]  ;;  %v5734_v17 = vor.u32 %v7041_v11, %v5733_v9  ;;  %3420 = vmatpush.bf16.msra.mxu3 %v6006_v10  ;;  %v676_v10 = vunpack.c.l.b16 %v133_v61 }
  0x73   :  { %v5989_v14 = vld [vmem:[#allocation5 + $0xb60] sm:$0xf]  ;;  %v7105_v15 = vld [vmem:[#allocation5 + $0xb6c] sm:$0xf0]  ;;  %v5862_v21 = vor.u32 %v7073_v13, %v5861_v12  ;;  %3382 = vmatpush.bf16.msra.mxu0 %v5606_v16 }
  0x74   :  { %v5589_v23 = vld [vmem:[#allocation5 + $0x840] sm:$0xf]  ;;  %v7005_v24 = vld [vmem:[#allocation5 + $0x84c] sm:$0xf0]  ;;  %v5990_v26 = vor.u32 %v7105_v15, %v5989_v14  ;;  %v677_v14 = vunpack.c.h.b16 %v133_v61 }
  0x75   :  { %v5717_v25 = vld [vmem:[#allocation5 + $0x940] sm:$0xf]  ;;  %v7037_v27 = vld [vmem:[#allocation5 + $0x94c] sm:$0xf0]  ;;  %v5590_v32 = vor.u32 %v7005_v24, %v5589_v23  ;;  %3395 = vmatpush.bf16.msra.mxu1 %v5734_v17  ;;  %3408 = vmatpush.bf16.msra.mxu2 %v5862_v21 }
  0x76   :  { %v5845_v28 = vld [vmem:[#allocation5 + $0xa40] sm:$0xf]  ;;  %v7069_v29 = vld [vmem:[#allocation5 + $0xa4c] sm:$0xf0]  ;;  %v5718_v35 = vor.u32 %v7037_v27, %v5717_v25  ;;  %3421 = vmatpush.bf16.msra.mxu3 %v5990_v26 }
  0x77   :  { %v5973_v30 = vld [vmem:[#allocation5 + $0xb40] sm:$0xf]  ;;  %v7101_v31 = vld [vmem:[#allocation5 + $0xb4c] sm:$0xf0]  ;;  %v5846_v36 = vor.u32 %v7069_v29, %v5845_v28  ;;  %3383 = vmatpush.bf16.msra.mxu0 %v5590_v32  ;;  %v7608_v29 = vpack.c.b16 %v676_v10, %v676_v10 }
  0x78   :  { %v5573_v33 = vld [vmem:[#allocation5 + $0x820] sm:$0xf]  ;;  %v7001_v34 = vld [vmem:[#allocation5 + $0x82c] sm:$0xf0]  ;;  %v5974_v43 = vor.u32 %v7101_v31, %v5973_v30 }
  0x79   :  { %v5701_v37 = vld [vmem:[#allocation5 + $0x920] sm:$0xf]  ;;  %v7033_v39 = vld [vmem:[#allocation5 + $0x92c] sm:$0xf0]  ;;  %v5574_v49 = vor.u32 %v7001_v34, %v5573_v33  ;;  %3396 = vmatpush.bf16.msra.mxu1 %v5718_v35  ;;  %3409 = vmatpush.bf16.msra.mxu2 %v5846_v36  ;;  %v7612_v33 = vpack.c.b16 %v677_v14, %v677_v14 }
  0x7a   :  { %v5829_v40 = vld [vmem:[#allocation5 + $0xa20] sm:$0xf]  ;;  %v7065_v45 = vld [vmem:[#allocation5 + $0xa2c] sm:$0xf0]  ;;  %v5702_v53 = vor.u32 %v7033_v39, %v5701_v37  ;;  %3422 = vmatpush.bf16.msra.mxu3 %v5974_v43 }
  0x7b   :  { %v5957_v46 = vld [vmem:[#allocation5 + $0xb20] sm:$0xf]  ;;  %v7097_v47 = vld [vmem:[#allocation5 + $0xb2c] sm:$0xf0]  ;;  %v5830_v54 = vor.u32 %v7065_v45, %v5829_v40  ;;  %3384 = vmatpush.bf16.msra.mxu0 %v5574_v49 }
  0x7c   :  { %v5557_v48 = vld [vmem:[#allocation5 + $0x800] sm:$0xf]  ;;  %v6997_v50 = vld [vmem:[#allocation5 + $0x80c] sm:$0xf0]  ;;  %v5958_v58 = vor.u32 %v7097_v47, %v5957_v46 }
  0x7d   :  { %v5685_v51 = vld [vmem:[#allocation5 + $0x900] sm:$0xf]  ;;  %v7029_v52 = vld [vmem:[#allocation5 + $0x90c] sm:$0xf0]  ;;  %v5558_v1 = vor.u32 %v6997_v50, %v5557_v48  ;;  %3397 = vmatpush.bf16.msra.mxu1 %v5702_v53  ;;  %3410 = vmatpush.bf16.msra.mxu2 %v5830_v54 }
  0x7e   :  { %v5813_v55 = vld [vmem:[#allocation5 + $0xa00] sm:$0xf]  ;;  %v7061_v56 = vld [vmem:[#allocation5 + $0xa0c] sm:$0xf0]  ;;  %v5686_v6 = vor.u32 %v7029_v52, %v5685_v51  ;;  %3423 = vmatpush.bf16.msra.mxu3 %v5958_v58 }
  0x7f   :  { %v132_v57 = vld [vmem:[#allocation2 + $0x20] sm:$0xff]  ;;  %v7093_v60 = vld [vmem:[#allocation5 + $0xb0c] sm:$0xf0]  ;;  %v5814_v7 = vor.u32 %v7061_v56, %v5813_v55  ;;  %3385 = vmatpush.bf16.msra.mxu0 %v5558_v1 }
  0x80   :  { %v5941_v59 = vld [vmem:[#allocation5 + $0xb00] sm:$0xf]  ;;  %v7153_v63 = vld [vmem:[#allocation5 + $0xcec] sm:$0xf0]  ;;  %v674_v5 = vunpack.c.l.b16 %v132_v57  ;;  %v675_v11 = vunpack.c.h.b16 %v132_v57 }
  0x81   :  { %v6181_v62 = vld [vmem:[#allocation5 + $0xce0] sm:$0xf]  ;;  %v7185_v2 = vld [vmem:[#allocation5 + $0xdec] sm:$0xf0]  ;;  %v5942_v12 = vor.u32 %v7093_v60, %v5941_v59  ;;  %3398 = vmatpush.bf16.msra.mxu1 %v5686_v6  ;;  %3411 = vmatpush.bf16.msra.mxu2 %v5814_v7 }
  0x82   :  { %v6309_v0 = vld [vmem:[#allocation5 + $0xde0] sm:$0xf]  ;;  %v7217_v4 = vld [vmem:[#allocation5 + $0xeec] sm:$0xf0]  ;;  %v6182_v13 = vor.u32 %v7153_v63, %v6181_v62  ;;  %v7606_v25 = vpack.c.b16 %v674_v5, %v674_v5  ;;  %v7610_v30 = vpack.c.b16 %v675_v11, %v675_v11 }
  0x83   :  { %v6437_v3 = vld [vmem:[#allocation5 + $0xee0] sm:$0xf]  ;;  %v7249_v9 = vld [vmem:[#allocation5 + $0xfec] sm:$0xf0]  ;;  %v6310_v15 = vor.u32 %v7185_v2, %v6309_v0  ;;  %3424 = vmatpush.bf16.msra.mxu3 %v5942_v12 }
  0x84   :  { %v6565_v8 = vld [vmem:[#allocation5 + $0xfe0] sm:$0xf]  ;;  %v6438_v16 = vor.u32 %v7217_v4, %v6437_v3  ;;  %v7149_v21 = vld [vmem:[#allocation5 + $0xccc] sm:$0xf0]  ;;  %3430 = vmatpush.bf16.msrb.mxu0 %v6182_v13  ;;  %3412 = vmatmul.bf16.vlgmr.msra.gmra.mxu2 %v7608_v29 }
  0x85   :  { %v6165_v17 = vld [vmem:[#allocation5 + $0xcc0] sm:$0xf]  ;;  %v6566_v24 = vor.u32 %v7249_v9, %v6565_v8  ;;  %v7181_v26 = vld [vmem:[#allocation5 + $0xdcc] sm:$0xf0]  ;;  %3443 = vmatpush.bf16.msrb.mxu1 %v6310_v15  ;;  %3386 = vmatmul.bf16.vlgmr.msra.gmra.mxu0 %v7606_v25 }
  0x86   :  { %v6293_v23 = vld [vmem:[#allocation5 + $0xdc0] sm:$0xf]  ;;  %v7213_v28 = vld [vmem:[#allocation5 + $0xecc] sm:$0xf0]  ;;  %v6166_v34 = vor.u32 %v7149_v21, %v6165_v17  ;;  %3456 = vmatpush.bf16.msrb.mxu2 %v6438_v16  ;;  %3399 = vmatmul.bf16.vlgmr.msra.gmra.mxu1 %v7610_v30 }
  0x87   :  { %v6421_v27 = vld [vmem:[#allocation5 + $0xec0] sm:$0xf]  ;;  %v7245_v32 = vld [vmem:[#allocation5 + $0xfcc] sm:$0xf0]  ;;  %v6294_v35 = vor.u32 %v7181_v26, %v6293_v23  ;;  %3469 = vmatpush.bf16.msrb.mxu3 %v6566_v24 }
  0x88   :  { %v6549_v31 = vld [vmem:[#allocation5 + $0xfc0] sm:$0xf]  ;;  %v6422_v36 = vor.u32 %v7213_v28, %v6421_v27  ;;  %v7145_v39 = vld [vmem:[#allocation5 + $0xcac] sm:$0xf0]  ;;  %3425 = vmatmul.bf16.vlgmr.msra.gmra.mxu3 %v7612_v33  ;;  %3431 = vmatpush.bf16.msrb.mxu0 %v6166_v34 }
  0x89   :  { %v6149_v37 = vld [vmem:[#allocation5 + $0xca0] sm:$0xf]  ;;  %v6550_v43 = vor.u32 %v7245_v32, %v6549_v31  ;;  %v7177_v45 = vld [vmem:[#allocation5 + $0xdac] sm:$0xf0]  ;;  %3444 = vmatpush.bf16.msrb.mxu1 %v6294_v35 }
  0x8a   :  { %v6277_v40 = vld [vmem:[#allocation5 + $0xda0] sm:$0xf]  ;;  %v7209_v47 = vld [vmem:[#allocation5 + $0xeac] sm:$0xf0]  ;;  %v6150_v50 = vor.u32 %v7145_v39, %v6149_v37  ;;  %3457 = vmatpush.bf16.msrb.mxu2 %v6422_v36 }
  0x8b   :  { %v6405_v46 = vld [vmem:[#allocation5 + $0xea0] sm:$0xf]  ;;  %v7241_v49 = vld [vmem:[#allocation5 + $0xfac] sm:$0xf0]  ;;  %v6278_v51 = vor.u32 %v7177_v45, %v6277_v40  ;;  %3470 = vmatpush.bf16.msrb.mxu3 %v6550_v43 }
  0x8c   :  { %v6533_v48 = vld [vmem:[#allocation5 + $0xfa0] sm:$0xf]  ;;  %v6406_v52 = vor.u32 %v7209_v47, %v6405_v46  ;;  %v7141_v54 = vld [vmem:[#allocation5 + $0xc8c] sm:$0xf0]  ;;  %3432 = vmatpush.bf16.msrb.mxu0 %v6150_v50 }
  0x8d   :  { %v6133_v53 = vld [vmem:[#allocation5 + $0xc80] sm:$0xf]  ;;  %v6534_v56 = vor.u32 %v7241_v49, %v6533_v48  ;;  %v7173_v57 = vld [vmem:[#allocation5 + $0xd8c] sm:$0xf0]  ;;  %3445 = vmatpush.bf16.msrb.mxu1 %v6278_v51 }
  0x8e   :  { %v6261_v55 = vld [vmem:[#allocation5 + $0xd80] sm:$0xf]  ;;  %v7205_v59 = vld [vmem:[#allocation5 + $0xe8c] sm:$0xf0]  ;;  %v6134_v62 = vor.u32 %v7141_v54, %v6133_v53  ;;  %3458 = vmatpush.bf16.msrb.mxu2 %v6406_v52 }
  0x8f   :  { %v6389_v58 = vld [vmem:[#allocation5 + $0xe80] sm:$0xf]  ;;  %v7237_v61 = vld [vmem:[#allocation5 + $0xf8c] sm:$0xf0]  ;;  %v6262_v63 = vor.u32 %v7173_v57, %v6261_v55  ;;  %3471 = vmatpush.bf16.msrb.mxu3 %v6534_v56 }
  0x90   :  { %v6517_v60 = vld [vmem:[#allocation5 + $0xf80] sm:$0xf]  ;;  %v6390_v0 = vor.u32 %v7205_v59, %v6389_v58  ;;  %v7137_v2 = vld [vmem:[#allocation5 + $0xc6c] sm:$0xf0]  ;;  %3433 = vmatpush.bf16.msrb.mxu0 %v6134_v62  ;;  %v135_v59 = vld [vmem:[#allocation2 + $0x38] sm:$0xff] }
  0x91   :  { %v6117_v1 = vld [vmem:[#allocation5 + $0xc60] sm:$0xf]  ;;  %v6518_v4 = vor.u32 %v7237_v61, %v6517_v60  ;;  %v7169_v5 = vld [vmem:[#allocation5 + $0xd6c] sm:$0xf0]  ;;  %3446 = vmatpush.bf16.msrb.mxu1 %v6262_v63  ;;  %v6767_v60 = vld [vmem:[#allocation5 + $0xe4] sm:$0xf] }
  0x92   :  { %v6245_v3 = vld [vmem:[#allocation5 + $0xd60] sm:$0xf]  ;;  %v7201_v7 = vld [vmem:[#allocation5 + $0xe6c] sm:$0xf0]  ;;  %v6118_v10 = vor.u32 %v7137_v2, %v6117_v1  ;;  %3459 = vmatpush.bf16.msrb.mxu2 %v6390_v0  ;;  %v4647_v61 = vld [vmem:[#allocation5 + $0xf0] sm:$0xf0] }
  0x93   :  { %v6373_v6 = vld [vmem:[#allocation5 + $0xe60] sm:$0xf]  ;;  %v7233_v9 = vld [vmem:[#allocation5 + $0xf6c] sm:$0xf0]  ;;  %v6246_v11 = vor.u32 %v7169_v5, %v6245_v3  ;;  %3472 = vmatpush.bf16.msrb.mxu3 %v6518_v4  ;;  %v6799_v62 = vld [vmem:[#allocation5 + $0x1e4] sm:$0xf] }
  0x94   :  { %v6501_v8 = vld [vmem:[#allocation5 + $0xf60] sm:$0xf]  ;;  %v6374_v12 = vor.u32 %v7201_v7, %v6373_v6  ;;  %v7133_v14 = vld [vmem:[#allocation5 + $0xc4c] sm:$0xf0]  ;;  %3434 = vmatpush.bf16.msrb.mxu0 %v6118_v10  ;;  %v4775_v0 = vld [vmem:[#allocation5 + $0x1f0] sm:$0xf0] }
  0x95   :  { %v6101_v13 = vld [vmem:[#allocation5 + $0xc40] sm:$0xf]  ;;  %v6502_v16 = vor.u32 %v7233_v9, %v6501_v8  ;;  %v7165_v17 = vld [vmem:[#allocation5 + $0xd4c] sm:$0xf0]  ;;  %3447 = vmatpush.bf16.msrb.mxu1 %v6246_v11  ;;  %v6831_v1 = vld [vmem:[#allocation5 + $0x2e4] sm:$0xf]  ;;  %v680_v8 = vunpack.c.l.b16 %v135_v59  ;;  %v4650_v11 = vor.u32 %v6767_v60, %v4647_v61 }
  0x96   :  { %v6229_v15 = vld [vmem:[#allocation5 + $0xd40] sm:$0xf]  ;;  %v7197_v23 = vld [vmem:[#allocation5 + $0xe4c] sm:$0xf0]  ;;  %v6102_v27 = vor.u32 %v7133_v14, %v6101_v13  ;;  %3460 = vmatpush.bf16.msrb.mxu2 %v6374_v12  ;;  %v4903_v2 = vld [vmem:[#allocation5 + $0x2f0] sm:$0xf0]  ;;  %v681_v12 = vunpack.c.h.b16 %v135_v59  ;;  %v4778_v13 = vor.u32 %v6799_v62, %v4775_v0 }
  0x97   :  { %v6357_v21 = vld [vmem:[#allocation5 + $0xe40] sm:$0xf]  ;;  %v7229_v26 = vld [vmem:[#allocation5 + $0xf4c] sm:$0xf0]  ;;  %v6230_v28 = vor.u32 %v7165_v17, %v6229_v15  ;;  %3473 = vmatpush.bf16.msrb.mxu3 %v6502_v16  ;;  %v6863_v6 = vld [vmem:[#allocation5 + $0x3e4] sm:$0xf]  ;;  %v4906_v14 = vor.u32 %v6831_v1, %v4903_v2 }
  0x98   :  { %v6485_v24 = vld [vmem:[#allocation5 + $0xf40] sm:$0xf]  ;;  %v6358_v31 = vor.u32 %v7197_v23, %v6357_v21  ;;  %v7129_v34 = vld [vmem:[#allocation5 + $0xc2c] sm:$0xf0]  ;;  %3435 = vmatpush.bf16.msrb.mxu0 %v6102_v27  ;;  %v5031_v7 = vld [vmem:[#allocation5 + $0x3f0] sm:$0xf0] }
  0x99   :  { %v6085_v32 = vld [vmem:[#allocation5 + $0xc20] sm:$0xf]  ;;  %v6486_v36 = vor.u32 %v7229_v26, %v6485_v24  ;;  %v7161_v37 = vld [vmem:[#allocation5 + $0xd2c] sm:$0xf0]  ;;  %3448 = vmatpush.bf16.msrb.mxu1 %v6230_v28  ;;  %v6763_v15 = vld [vmem:[#allocation5 + $0xc4] sm:$0xf]  ;;  %v5034_v21 = vor.u32 %v6863_v6, %v5031_v7  ;;  %v7620_v28 = vpack.c.b16 %v680_v8, %v680_v8 }
  0x9a   :  { %v6213_v35 = vld [vmem:[#allocation5 + $0xd20] sm:$0xf]  ;;  %v7193_v40 = vld [vmem:[#allocation5 + $0xe2c] sm:$0xf0]  ;;  %v6086_v47 = vor.u32 %v7129_v34, %v6085_v32  ;;  %3461 = vmatpush.bf16.msrb.mxu2 %v6358_v31  ;;  %v4631_v16 = vld [vmem:[#allocation5 + $0xd0] sm:$0xf0] }
  0x9b   :  { %v6341_v39 = vld [vmem:[#allocation5 + $0xe20] sm:$0xf]  ;;  %v7225_v45 = vld [vmem:[#allocation5 + $0xf2c] sm:$0xf0]  ;;  %v6214_v51 = vor.u32 %v7161_v37, %v6213_v35  ;;  %3474 = vmatpush.bf16.msrb.mxu3 %v6486_v36  ;;  %v6795_v17 = vld [vmem:[#allocation5 + $0x1c4] sm:$0xf]  ;;  %v7624_v35 = vpack.c.b16 %v681_v12, %v681_v12  ;;  %v4634_v36 = vor.u32 %v6763_v15, %v4631_v16 }
  0x9c   :  { %v6469_v43 = vld [vmem:[#allocation5 + $0xf20] sm:$0xf]  ;;  %v7125_v48 = vld [vmem:[#allocation5 + $0xc0c] sm:$0xf0]  ;;  %v6342_v52 = vor.u32 %v7193_v40, %v6341_v39  ;;  %3436 = vmatpush.bf16.msrb.mxu0 %v6086_v47  ;;  %v4759_v24 = vld [vmem:[#allocation5 + $0x1d0] sm:$0xf0] }
  0x9d   :  { %v6069_v46 = vld [vmem:[#allocation5 + $0xc00] sm:$0xf]  ;;  %v7157_v50 = vld [vmem:[#allocation5 + $0xd0c] sm:$0xf0]  ;;  %v6470_v56 = vor.u32 %v7225_v45, %v6469_v43  ;;  %3449 = vmatpush.bf16.msrb.mxu1 %v6214_v51  ;;  %v6827_v26 = vld [vmem:[#allocation5 + $0x2c4] sm:$0xf]  ;;  %v4762_v37 = vor.u32 %v6795_v17, %v4759_v24 }
  0x9e   :  { %v6197_v49 = vld [vmem:[#allocation5 + $0xd00] sm:$0xf]  ;;  %v7189_v54 = vld [vmem:[#allocation5 + $0xe0c] sm:$0xf0]  ;;  %v6070_v63 = vor.u32 %v7125_v48, %v6069_v46  ;;  %3462 = vmatpush.bf16.msrb.mxu2 %v6342_v52  ;;  %v4887_v27 = vld [vmem:[#allocation5 + $0x2d0] sm:$0xf0] }
  0x9f   :  { %v6325_v53 = vld [vmem:[#allocation5 + $0xe00] sm:$0xf]  ;;  %v134_v55 = vld [vmem:[#allocation2 + $0x30] sm:$0xff]  ;;  %v6198_v4 = vor.u32 %v7157_v50, %v6197_v49  ;;  %3475 = vmatpush.bf16.msrb.mxu3 %v6470_v56  ;;  %v6859_v32 = vld [vmem:[#allocation5 + $0x3c4] sm:$0xf]  ;;  %v4890_v39 = vor.u32 %v6827_v26, %v4887_v27 }
  0xa0   :  { %v6453_v57 = vld [vmem:[#allocation5 + $0xf00] sm:$0xf]  ;;  %v7221_v58 = vld [vmem:[#allocation5 + $0xf0c] sm:$0xf0]  ;;  %v678_v3 = vunpack.c.l.b16 %v134_v55  ;;  %v6326_v5 = vor.u32 %v7189_v54, %v6325_v53  ;;  %v679_v9 = vunpack.c.h.b16 %v134_v55  ;;  %3437 = vmatpush.bf16.msrb.mxu0 %v6070_v63  ;;  %v5015_v34 = vld [vmem:[#allocation5 + $0x3d0] sm:$0xf0] }
  0xa1   :  { %v6454_v10 = vor.u32 %v7221_v58, %v6453_v57  ;;  %3450 = vmatpush.bf16.msrb.mxu1 %v6198_v4  ;;  %v6759_v40 = vld [vmem:[#allocation5 + $0xa4] sm:$0xf]  ;;  %v4615_v43 = vld [vmem:[#allocation5 + $0xb0] sm:$0xf0]  ;;  %v5018_v46 = vor.u32 %v6859_v32, %v5015_v34 }
  0xa2   :  { %v7618_v23 = vpack.c.b16 %v678_v3, %v678_v3  ;;  %3463 = vmatpush.bf16.msrb.mxu2 %v6326_v5  ;;  %v7622_v31 = vpack.c.b16 %v679_v9, %v679_v9  ;;  %v6791_v45 = vld [vmem:[#allocation5 + $0x1a4] sm:$0xf]  ;;  %v4743_v47 = vld [vmem:[#allocation5 + $0x1b0] sm:$0xf0]  ;;  %v4618_v52 = vor.u32 %v6759_v40, %v4615_v43 }
  0xa3   :  { %3476 = vmatpush.bf16.msrb.mxu3 %v6454_v10  ;;  %v6823_v48 = vld [vmem:[#allocation5 + $0x2a4] sm:$0xf]  ;;  %v4871_v49 = vld [vmem:[#allocation5 + $0x2b0] sm:$0xf0]  ;;  %v4746_v53 = vor.u32 %v6791_v45, %v4743_v47 }
  0xa4   :  { %3482 = vmatpush.bf16.msra.mxu0 %v4650_v11  ;;  %3451 = vmatmul.bf16.vlgmr.msrb.gmra.mxu1 %v7622_v31  ;;  %v6855_v50 = vld [vmem:[#allocation5 + $0x3a4] sm:$0xf]  ;;  %v4999_v51 = vld [vmem:[#allocation5 + $0x3b0] sm:$0xf0]  ;;  %v4874_v54 = vor.u32 %v6823_v48, %v4871_v49 }
  0xa5   :  { %3495 = vmatpush.bf16.msra.mxu1 %v4778_v13  ;;  %3438 = vmatmul.bf16.vlgmr.msrb.gmra.mxu0 %v7618_v23  ;;  %v6755_v55 = vld [vmem:[#allocation5 + $0x84] sm:$0xf]  ;;  %v4599_v56 = vld [vmem:[#allocation5 + $0x90] sm:$0xf0]  ;;  %v5002_v58 = vor.u32 %v6855_v50, %v4999_v51 }
  0xa6   :  { %3508 = vmatpush.bf16.msra.mxu2 %v4906_v14  ;;  %3477 = vmatmul.bf16.vlgmr.msrb.gmra.mxu3 %v7624_v35  ;;  %v6787_v57 = vld [vmem:[#allocation5 + $0x184] sm:$0xf]  ;;  %v4727_v59 = vld [vmem:[#allocation5 + $0x190] sm:$0xf0]  ;;  %v4602_v0 = vor.u32 %v6755_v55, %v4599_v56 }
  0xa7   :  { %3521 = vmatpush.bf16.msra.mxu3 %v5034_v21  ;;  %3464 = vmatmul.bf16.vlgmr.msrb.gmra.mxu2 %v7620_v28  ;;  %v6819_v60 = vld [vmem:[#allocation5 + $0x284] sm:$0xf]  ;;  %v4855_v61 = vld [vmem:[#allocation5 + $0x290] sm:$0xf0]  ;;  %v4730_v1 = vor.u32 %v6787_v57, %v4727_v59 }
  0xa8   :  { %3483 = vmatpush.bf16.msra.mxu0 %v4634_v36  ;;  %v6851_v62 = vld [vmem:[#allocation5 + $0x384] sm:$0xf]  ;;  %v4983_v63 = vld [vmem:[#allocation5 + $0x390] sm:$0xf0]  ;;  %v4858_v2 = vor.u32 %v6819_v60, %v4855_v61 }
  0xa9   :  { %3496 = vmatpush.bf16.msra.mxu1 %v4762_v37  ;;  %v6751_v3 = vld [vmem:[#allocation5 + $0x64] sm:$0xf]  ;;  %v4583_v4 = vld [vmem:[#allocation5 + $0x70] sm:$0xf0]  ;;  %v4986_v6 = vor.u32 %v6851_v62, %v4983_v63 }
  0xaa   :  { %3509 = vmatpush.bf16.msra.mxu2 %v4890_v39  ;;  %v6783_v5 = vld [vmem:[#allocation5 + $0x164] sm:$0xf]  ;;  %v4711_v7 = vld [vmem:[#allocation5 + $0x170] sm:$0xf0]  ;;  %v4586_v12 = vor.u32 %v6751_v3, %v4583_v4 }
  0xab   :  { %3522 = vmatpush.bf16.msra.mxu3 %v5018_v46  ;;  %v6815_v8 = vld [vmem:[#allocation5 + $0x264] sm:$0xf]  ;;  %v4839_v9 = vld [vmem:[#allocation5 + $0x270] sm:$0xf0]  ;;  %v4714_v13 = vor.u32 %v6783_v5, %v4711_v7 }
  0xac   :  { %3484 = vmatpush.bf16.msra.mxu0 %v4618_v52  ;;  %v6847_v10 = vld [vmem:[#allocation5 + $0x364] sm:$0xf]  ;;  %v4967_v11 = vld [vmem:[#allocation5 + $0x370] sm:$0xf0]  ;;  %v4842_v14 = vor.u32 %v6815_v8, %v4839_v9 }
  0xad   :  { %3497 = vmatpush.bf16.msra.mxu1 %v4746_v53  ;;  %v6747_v15 = vld [vmem:[#allocation5 + $0x44] sm:$0xf]  ;;  %v4567_v16 = vld [vmem:[#allocation5 + $0x50] sm:$0xf0]  ;;  %v4970_v21 = vor.u32 %v6847_v10, %v4967_v11 }
  0xae   :  { %3510 = vmatpush.bf16.msra.mxu2 %v4874_v54  ;;  %v6779_v17 = vld [vmem:[#allocation5 + $0x144] sm:$0xf]  ;;  %v4695_v24 = vld [vmem:[#allocation5 + $0x150] sm:$0xf0]  ;;  %v4570_v36 = vor.u32 %v6747_v15, %v4567_v16 }
  0xaf   :  { %3523 = vmatpush.bf16.msra.mxu3 %v5002_v58  ;;  %v6811_v26 = vld [vmem:[#allocation5 + $0x244] sm:$0xf]  ;;  %v4823_v27 = vld [vmem:[#allocation5 + $0x250] sm:$0xf0]  ;;  %v4698_v37 = vor.u32 %v6779_v17, %v4695_v24 }
  0xb0   :  { %3485 = vmatpush.bf16.msra.mxu0 %v4602_v0  ;;  %v6843_v32 = vld [vmem:[#allocation5 + $0x344] sm:$0xf]  ;;  %v4951_v34 = vld [vmem:[#allocation5 + $0x350] sm:$0xf0]  ;;  %v4826_v39 = vor.u32 %v6811_v26, %v4823_v27 }
  0xb1   :  { %3498 = vmatpush.bf16.msra.mxu1 %v4730_v1  ;;  %v6743_v40 = vld [vmem:[#allocation5 + $0x24] sm:$0xf]  ;;  %v4551_v43 = vld [vmem:[#allocation5 + $0x30] sm:$0xf0]  ;;  %v4954_v46 = vor.u32 %v6843_v32, %v4951_v34 }
  0xb2   :  { %3511 = vmatpush.bf16.msra.mxu2 %v4858_v2  ;;  %v6775_v45 = vld [vmem:[#allocation5 + $0x124] sm:$0xf]  ;;  %v4679_v47 = vld [vmem:[#allocation5 + $0x130] sm:$0xf0]  ;;  %v4554_v52 = vor.u32 %v6743_v40, %v4551_v43 }
  0xb3   :  { %3524 = vmatpush.bf16.msra.mxu3 %v4986_v6  ;;  %v6807_v48 = vld [vmem:[#allocation5 + $0x224] sm:$0xf]  ;;  %v4807_v49 = vld [vmem:[#allocation5 + $0x230] sm:$0xf0]  ;;  %v4682_v55 = vor.u32 %v6775_v45, %v4679_v47 }
  0xb4   :  { %3486 = vmatpush.bf16.msra.mxu0 %v4586_v12  ;;  %v6839_v50 = vld [vmem:[#allocation5 + $0x324] sm:$0xf]  ;;  %v4935_v51 = vld [vmem:[#allocation5 + $0x330] sm:$0xf0]  ;;  %v4810_v56 = vor.u32 %v6807_v48, %v4807_v49 }
  0xb5   :  { %3499 = vmatpush.bf16.msra.mxu1 %v4714_v13  ;;  %v6739_v53 = vld [vmem:[#allocation5 + $0x4] sm:$0xf]  ;;  %v4535_v54 = vld [vmem:[#allocation5 + $0x10] sm:$0xf0]  ;;  %v4938_v60 = vor.u32 %v6839_v50, %v4935_v51 }
  0xb6   :  { %3512 = vmatpush.bf16.msra.mxu2 %v4842_v14  ;;  %v6771_v57 = vld [vmem:[#allocation5 + $0x104] sm:$0xf]  ;;  %v4663_v58 = vld [vmem:[#allocation5 + $0x110] sm:$0xf0]  ;;  %v4538_v3 = vor.u32 %v6739_v53, %v4535_v54 }
  0xb7   :  { %3525 = vmatpush.bf16.msra.mxu3 %v4970_v21  ;;  %v6803_v59 = vld [vmem:[#allocation5 + $0x204] sm:$0xf]  ;;  %v4791_v61 = vld [vmem:[#allocation5 + $0x210] sm:$0xf0]  ;;  %v4666_v7 = vor.u32 %v6771_v57, %v4663_v58 }
  0xb8   :  { %3487 = vmatpush.bf16.msra.mxu0 %v4570_v36  ;;  %v6835_v62 = vld [vmem:[#allocation5 + $0x304] sm:$0xf]  ;;  %v4919_v63 = vld [vmem:[#allocation5 + $0x310] sm:$0xf0]  ;;  %v4794_v8 = vor.u32 %v6803_v59, %v4791_v61 }
  0xb9   :  { %3500 = vmatpush.bf16.msra.mxu1 %v4698_v37  ;;  %v6895_v0 = vld [vmem:[#allocation5 + $0x4e4] sm:$0xf]  ;;  %v5159_v1 = vld [vmem:[#allocation5 + $0x4f0] sm:$0xf0]  ;;  %v4922_v11 = vor.u32 %v6835_v62, %v4919_v63 }
  0xba   :  { %3513 = vmatpush.bf16.msra.mxu2 %v4826_v39  ;;  %v6927_v2 = vld [vmem:[#allocation5 + $0x5e4] sm:$0xf]  ;;  %v5287_v4 = vld [vmem:[#allocation5 + $0x5f0] sm:$0xf0]  ;;  %v5162_v12 = vor.u32 %v6895_v0, %v5159_v1 }
  0xbb   :  { %3526 = vmatpush.bf16.msra.mxu3 %v4954_v46  ;;  %v6959_v5 = vld [vmem:[#allocation5 + $0x6e4] sm:$0xf]  ;;  %v5415_v6 = vld [vmem:[#allocation5 + $0x6f0] sm:$0xf0]  ;;  %v5290_v13 = vor.u32 %v6927_v2, %v5287_v4 }
  0xbc   :  { %3488 = vmatpush.bf16.msra.mxu0 %v4554_v52  ;;  %v6991_v9 = vld [vmem:[#allocation5 + $0x7e4] sm:$0xf]  ;;  %v5543_v10 = vld [vmem:[#allocation5 + $0x7f0] sm:$0xf0]  ;;  %v5418_v14 = vor.u32 %v6959_v5, %v5415_v6 }
  0xbd   :  { %3501 = vmatpush.bf16.msra.mxu1 %v4682_v55  ;;  %v6891_v15 = vld [vmem:[#allocation5 + $0x4c4] sm:$0xf]  ;;  %v5143_v16 = vld [vmem:[#allocation5 + $0x4d0] sm:$0xf0]  ;;  %v5546_v21 = vor.u32 %v6991_v9, %v5543_v10  ;;  %v648_v10 = vld [vmem:[#allocation7] sm:$0xf] }
  0xbe   :  { %3514 = vmatpush.bf16.msra.mxu2 %v4810_v56  ;;  %v6923_v17 = vld [vmem:[#allocation5 + $0x5c4] sm:$0xf]  ;;  %v5271_v24 = vld [vmem:[#allocation5 + $0x5d0] sm:$0xf0]  ;;  %v5146_v36 = vor.u32 %v6891_v15, %v5143_v16 }
  0xbf   :  { %3527 = vmatpush.bf16.msra.mxu3 %v4938_v60  ;;  %v6955_v26 = vld [vmem:[#allocation5 + $0x6c4] sm:$0xf]  ;;  %v5399_v27 = vld [vmem:[#allocation5 + $0x6d0] sm:$0xf0]  ;;  %v5274_v37 = vor.u32 %v6923_v17, %v5271_v24  ;;  %v650_v24 = vperm.slane %v648_v10, 0 }
  0xc0   :  { %3489 = vmatpush.bf16.msra.mxu0 %v4538_v3  ;;  %v6987_v32 = vld [vmem:[#allocation5 + $0x7c4] sm:$0xf]  ;;  %v5527_v34 = vld [vmem:[#allocation5 + $0x7d0] sm:$0xf0]  ;;  %v5402_v39 = vor.u32 %v6955_v26, %v5399_v27 }
  0xc1   :  { %3502 = vmatpush.bf16.msra.mxu1 %v4666_v7  ;;  %v6887_v40 = vld [vmem:[#allocation5 + $0x4a4] sm:$0xf]  ;;  %v5127_v43 = vld [vmem:[#allocation5 + $0x4b0] sm:$0xf0]  ;;  %v5530_v46 = vor.u32 %v6987_v32, %v5527_v34 }
  0xc2   :  { %3515 = vmatpush.bf16.msra.mxu2 %v4794_v8  ;;  %v6919_v45 = vld [vmem:[#allocation5 + $0x5a4] sm:$0xf]  ;;  %v5255_v47 = vld [vmem:[#allocation5 + $0x5b0] sm:$0xf0]  ;;  %v5130_v52 = vor.u32 %v6887_v40, %v5127_v43 }
  0xc3   :  { %3528 = vmatpush.bf16.msra.mxu3 %v4922_v11  ;;  %v6951_v48 = vld [vmem:[#allocation5 + $0x6a4] sm:$0xf]  ;;  %v5383_v49 = vld [vmem:[#allocation5 + $0x6b0] sm:$0xf0]  ;;  %3490 = vmatmul.bf16.vlgmr.msra.gmra.mxu0 %v7584_v19  ;;  %v5258_v53 = vor.u32 %v6919_v45, %v5255_v47 }
  0xc4   :  { %3534 = vmatpush.bf16.msrb.mxu0 %v5162_v12  ;;  %v6983_v50 = vld [vmem:[#allocation5 + $0x7a4] sm:$0xf]  ;;  %v5511_v51 = vld [vmem:[#allocation5 + $0x7b0] sm:$0xf0]  ;;  %3503 = vmatmul.bf16.vlgmr.msra.gmra.mxu1 %v7588_v22  ;;  %v5386_v54 = vor.u32 %v6951_v48, %v5383_v49 }
  0xc5   :  { %3547 = vmatpush.bf16.msrb.mxu1 %v5290_v13  ;;  %3516 = vmatmul.bf16.vlgmr.msra.gmra.mxu2 %v7582_v18  ;;  %v6883_v55 = vld [vmem:[#allocation5 + $0x484] sm:$0xf]  ;;  %v5111_v56 = vld [vmem:[#allocation5 + $0x490] sm:$0xf0]  ;;  %v5514_v58 = vor.u32 %v6983_v50, %v5511_v51 }
  0xc6   :  { %3560 = vmatpush.bf16.msrb.mxu2 %v5418_v14  ;;  %3529 = vmatmul.bf16.vlgmr.msra.gmra.mxu3 %v7586_v20  ;;  %v6915_v57 = vld [vmem:[#allocation5 + $0x584] sm:$0xf]  ;;  %v5239_v59 = vld [vmem:[#allocation5 + $0x590] sm:$0xf0]  ;;  %v5114_v0 = vor.u32 %v6883_v55, %v5111_v56 }
  0xc7   :  { %3573 = vmatpush.bf16.msrb.mxu3 %v5546_v21  ;;  %v6947_v60 = vld [vmem:[#allocation5 + $0x684] sm:$0xf]  ;;  %v5367_v61 = vld [vmem:[#allocation5 + $0x690] sm:$0xf0]  ;;  %v5242_v2 = vor.u32 %v6915_v57, %v5239_v59 }
  0xc8   :  { %3535 = vmatpush.bf16.msrb.mxu0 %v5146_v36  ;;  %v6979_v62 = vld [vmem:[#allocation5 + $0x784] sm:$0xf]  ;;  %v5495_v63 = vld [vmem:[#allocation5 + $0x790] sm:$0xf0]  ;;  %v5370_v3 = vor.u32 %v6947_v60, %v5367_v61 }
  0xc9   :  { %3548 = vmatpush.bf16.msrb.mxu1 %v5274_v37  ;;  %v6879_v1 = vld [vmem:[#allocation5 + $0x464] sm:$0xf]  ;;  %v5095_v4 = vld [vmem:[#allocation5 + $0x470] sm:$0xf0]  ;;  %v5498_v7 = vor.u32 %v6979_v62, %v5495_v63 }
  0xca   :  { %3561 = vmatpush.bf16.msrb.mxu2 %v5402_v39  ;;  %v6911_v5 = vld [vmem:[#allocation5 + $0x564] sm:$0xf]  ;;  %v5223_v6 = vld [vmem:[#allocation5 + $0x570] sm:$0xf0]  ;;  %v5098_v13 = vor.u32 %v6879_v1, %v5095_v4 }
  0xcb   :  { %3574 = vmatpush.bf16.msrb.mxu3 %v5530_v46  ;;  %v6943_v8 = vld [vmem:[#allocation5 + $0x664] sm:$0xf]  ;;  %v5351_v9 = vld [vmem:[#allocation5 + $0x670] sm:$0xf0]  ;;  %v5226_v15 = vor.u32 %v6911_v5, %v5223_v6 }
  0xcc   :  { %3536 = vmatpush.bf16.msrb.mxu0 %v5130_v52  ;;  %v6975_v11 = vld [vmem:[#allocation5 + $0x764] sm:$0xf]  ;;  %v5479_v12 = vld [vmem:[#allocation5 + $0x770] sm:$0xf0]  ;;  %v5354_v16 = vor.u32 %v6943_v8, %v5351_v9  ;;  %v3322_v8 = vpop.f32.mrf.mxu3 }
  0xcd   :  { %3549 = vmatpush.bf16.msrb.mxu1 %v5258_v53  ;;  %v6875_v14 = vld [vmem:[#allocation5 + $0x444] sm:$0xf]  ;;  %v5079_v17 = vld [vmem:[#allocation5 + $0x450] sm:$0xf0]  ;;  %v5482_v26 = vor.u32 %v6975_v11, %v5479_v12  ;;  %v3283_v40 = vpop.f32.mrf.mxu0  ;;  %v3296_v50 = vpop.f32.mrf.mxu1 }
  0xce   :  { %3562 = vmatpush.bf16.msrb.mxu2 %v5386_v54  ;;  %v6907_v21 = vld [vmem:[#allocation5 + $0x544] sm:$0xf]  ;;  %v5207_v27 = vld [vmem:[#allocation5 + $0x550] sm:$0xf0]  ;;  %v5082_v39 = vor.u32 %v6875_v14, %v5079_v17  ;;  %v3284_v49 = vadd.f32 %v3283_v40, %v650_v24 }
  0xcf   :  { %3575 = vmatpush.bf16.msrb.mxu3 %v5514_v58  ;;  %v6939_v32 = vld [vmem:[#allocation5 + $0x644] sm:$0xf]  ;;  %v5335_v34 = vld [vmem:[#allocation5 + $0x650] sm:$0xf0]  ;;  %v5210_v43 = vor.u32 %v6907_v21, %v5207_v27 }
  0xd0   :  { %3537 = vmatpush.bf16.msrb.mxu0 %v5114_v0  ;;  %v6971_v36 = vld [vmem:[#allocation5 + $0x744] sm:$0xf]  ;;  %v5463_v37 = vld [vmem:[#allocation5 + $0x750] sm:$0xf0]  ;;  %v5338_v45 = vor.u32 %v6939_v32, %v5335_v34  ;;  %v3297_v57 = vadd.f32 %v3296_v50, %v3284_v49 }
  0xd1   :  { %3550 = vmatpush.bf16.msrb.mxu1 %v5242_v2  ;;  %v6871_v46 = vld [vmem:[#allocation5 + $0x424] sm:$0xf]  ;;  %v5063_v47 = vld [vmem:[#allocation5 + $0x430] sm:$0xf0]  ;;  %v5466_v51 = vor.u32 %v6971_v36, %v5463_v37  ;;  %v3309_v2 = vpop.f32.mrf.mxu2 }
  0xd2   :  { %3563 = vmatpush.bf16.msrb.mxu2 %v5370_v3  ;;  %v6903_v48 = vld [vmem:[#allocation5 + $0x524] sm:$0xf]  ;;  %v5191_v52 = vld [vmem:[#allocation5 + $0x530] sm:$0xf0]  ;;  %v5066_v58 = vor.u32 %v6871_v46, %v5063_v47 }
  0xd3   :  { %3576 = vmatpush.bf16.msrb.mxu3 %v5498_v7  ;;  %v6935_v53 = vld [vmem:[#allocation5 + $0x624] sm:$0xf]  ;;  %v5319_v54 = vld [vmem:[#allocation5 + $0x630] sm:$0xf0]  ;;  %v5194_v61 = vor.u32 %v6903_v48, %v5191_v52  ;;  %v3310_v7 = vadd.f32 %v3309_v2, %v3297_v57 }
  0xd4   :  { %3538 = vmatpush.bf16.msrb.mxu0 %v5098_v13  ;;  %v6967_v55 = vld [vmem:[#allocation5 + $0x724] sm:$0xf]  ;;  %v5447_v56 = vld [vmem:[#allocation5 + $0x730] sm:$0xf0]  ;;  %v5322_v62 = vor.u32 %v6935_v53, %v5319_v54  ;;  %v3324_v54 = vpop.f32.mrf.mxu3 }
  0xd5   :  { %3551 = vmatpush.bf16.msrb.mxu1 %v5226_v15  ;;  %v6867_v59 = vld [vmem:[#allocation5 + $0x404] sm:$0xf]  ;;  %v5047_v60 = vld [vmem:[#allocation5 + $0x410] sm:$0xf0]  ;;  %v5450_v3 = vor.u32 %v6967_v55, %v5447_v56  ;;  %v3285_v17 = vpop.f32.mrf.mxu0  ;;  %v3298_v32 = vpop.f32.mrf.mxu1 }
  0xd6   :  { %3564 = vmatpush.bf16.msrb.mxu2 %v5354_v16  ;;  %v6899_v63 = vld [vmem:[#allocation5 + $0x504] sm:$0xf]  ;;  %v5175_v0 = vld [vmem:[#allocation5 + $0x510] sm:$0xf0]  ;;  %v5050_v12 = vor.u32 %v6867_v59, %v5047_v60  ;;  %v7634_v16 = vadd.f32 %v3322_v8, %v3310_v7 }
  0xd7   :  { %3577 = vmatpush.bf16.msrb.mxu3 %v5482_v26  ;;  %v6931_v1 = vld [vmem:[#allocation5 + $0x604] sm:$0xf]  ;;  %v5303_v4 = vld [vmem:[#allocation5 + $0x610] sm:$0xf0]  ;;  %v5178_v21 = vor.u32 %v6899_v63, %v5175_v0 }
  0xd8   :  { %3539 = vmatpush.bf16.msrb.mxu0 %v5082_v39  ;;  %v6963_v5 = vld [vmem:[#allocation5 + $0x704] sm:$0xf]  ;;  %v5431_v6 = vld [vmem:[#allocation5 + $0x710] sm:$0xf0]  ;;  %v5306_v24 = vor.u32 %v6931_v1, %v5303_v4 }
  0xd9   :  { %3552 = vmatpush.bf16.msrb.mxu1 %v5210_v43  ;;  %v7023_v9 = vld [vmem:[#allocation5 + $0x8e4] sm:$0xf]  ;;  %v5671_v10 = vld [vmem:[#allocation5 + $0x8f0] sm:$0xf0]  ;;  %v5434_v34 = vor.u32 %v6963_v5, %v5431_v6  ;;  %v3311_v52 = vpop.f32.mrf.mxu2 }
  0xda   :  { %3565 = vmatpush.bf16.msrb.mxu2 %v5338_v45  ;;  %v7055_v11 = vld [vmem:[#allocation5 + $0x9e4] sm:$0xf]  ;;  %v5799_v13 = vld [vmem:[#allocation5 + $0x9f0] sm:$0xf0]  ;;  %v5674_v36 = vor.u32 %v7023_v9, %v5671_v10 }
  0xdb   :  { %3578 = vmatpush.bf16.msrb.mxu3 %v5466_v51  ;;  %v7087_v14 = vld [vmem:[#allocation5 + $0xae4] sm:$0xf]  ;;  %v5927_v15 = vld [vmem:[#allocation5 + $0xaf0] sm:$0xf0]  ;;  %v5802_v37 = vor.u32 %v7055_v11, %v5799_v13 }
  0xdc   :  { %3540 = vmatpush.bf16.msrb.mxu0 %v5066_v58  ;;  %v7119_v26 = vld [vmem:[#allocation5 + $0xbe4] sm:$0xf]  ;;  %v6055_v27 = vld [vmem:[#allocation5 + $0xbf0] sm:$0xf0]  ;;  %v5930_v39 = vor.u32 %v7087_v14, %v5927_v15 }
  0xdd   :  { %3553 = vmatpush.bf16.msrb.mxu1 %v5194_v61  ;;  %v7019_v40 = vld [vmem:[#allocation5 + $0x8c4] sm:$0xf]  ;;  %v5655_v43 = vld [vmem:[#allocation5 + $0x8d0] sm:$0xf0]  ;;  %v6058_v46 = vor.u32 %v7119_v26, %v6055_v27 }
  0xde   :  { %3566 = vmatpush.bf16.msrb.mxu2 %v5322_v62  ;;  %v7051_v45 = vld [vmem:[#allocation5 + $0x9c4] sm:$0xf]  ;;  %v5783_v47 = vld [vmem:[#allocation5 + $0x9d0] sm:$0xf0]  ;;  %v5658_v53 = vor.u32 %v7019_v40, %v5655_v43 }
  0xdf   :  { %3579 = vmatpush.bf16.msrb.mxu3 %v5450_v3  ;;  %v7083_v48 = vld [vmem:[#allocation5 + $0xac4] sm:$0xf]  ;;  %v5911_v49 = vld [vmem:[#allocation5 + $0xad0] sm:$0xf0]  ;;  %v5786_v55 = vor.u32 %v7051_v45, %v5783_v47 }
  0xe0   :  { %3541 = vmatpush.bf16.msrb.mxu0 %v5050_v12  ;;  %v7115_v50 = vld [vmem:[#allocation5 + $0xbc4] sm:$0xf]  ;;  %v6039_v51 = vld [vmem:[#allocation5 + $0xbd0] sm:$0xf0]  ;;  %v5914_v56 = vor.u32 %v7083_v48, %v5911_v49 }
  0xe1   :  { %3554 = vmatpush.bf16.msrb.mxu1 %v5178_v21  ;;  %v7015_v57 = vld [vmem:[#allocation5 + $0x8a4] sm:$0xf]  ;;  %v5639_v58 = vld [vmem:[#allocation5 + $0x8b0] sm:$0xf0]  ;;  %v6042_v60 = vor.u32 %v7115_v50, %v6039_v51  ;;  %v3335_v15 = vpop.f32.mrf.mxu0 }
  0xe2   :  { %3567 = vmatpush.bf16.msrb.mxu2 %v5306_v24  ;;  %v7047_v59 = vld [vmem:[#allocation5 + $0x9a4] sm:$0xf]  ;;  %v5767_v61 = vld [vmem:[#allocation5 + $0x9b0] sm:$0xf0]  ;;  %v5642_v2 = vor.u32 %v7015_v57, %v5639_v58  ;;  %v3336_v32 = vadd.f32 %v3335_v15, %v7634_v16 }
  0xe3   :  { %3580 = vmatpush.bf16.msrb.mxu3 %v5434_v34  ;;  %v7079_v62 = vld [vmem:[#allocation5 + $0xaa4] sm:$0xf]  ;;  %v5895_v63 = vld [vmem:[#allocation5 + $0xab0] sm:$0xf0]  ;;  %3542 = vmatmul.bf16.vlgmr.msrb.gmra.mxu0 %v7596_v41  ;;  %v5770_v3 = vor.u32 %v7047_v59, %v5767_v61  ;;  %v3348_v34 = vpop.f32.mrf.mxu1 }
  0xe4   :  { %3586 = vmatpush.bf16.msra.mxu0 %v5674_v36  ;;  %v7111_v0 = vld [vmem:[#allocation5 + $0xba4] sm:$0xf]  ;;  %v6023_v1 = vld [vmem:[#allocation5 + $0xbb0] sm:$0xf0]  ;;  %3555 = vmatmul.bf16.vlgmr.msrb.gmra.mxu1 %v7600_v44  ;;  %v5898_v4 = vor.u32 %v7079_v62, %v5895_v63 }
  0xe5   :  { %3599 = vmatpush.bf16.msra.mxu1 %v5802_v37  ;;  %3568 = vmatmul.bf16.vlgmr.msrb.gmra.mxu2 %v7594_v38  ;;  %v7011_v5 = vld [vmem:[#allocation5 + $0x884] sm:$0xf]  ;;  %v5623_v6 = vld [vmem:[#allocation5 + $0x890] sm:$0xf0]  ;;  %v6026_v8 = vor.u32 %v7111_v0, %v6023_v1 }
  0xe6   :  { %3612 = vmatpush.bf16.msra.mxu2 %v5930_v39  ;;  %3581 = vmatmul.bf16.vlgmr.msrb.gmra.mxu3 %v7598_v42  ;;  %v7043_v7 = vld [vmem:[#allocation5 + $0x984] sm:$0xf]  ;;  %v5751_v9 = vld [vmem:[#allocation5 + $0x990] sm:$0xf0]  ;;  %v5626_v14 = vor.u32 %v7011_v5, %v5623_v6 }
  0xe7   :  { %3625 = vmatpush.bf16.msra.mxu3 %v6058_v46  ;;  %v7075_v10 = vld [vmem:[#allocation5 + $0xa84] sm:$0xf]  ;;  %v5879_v11 = vld [vmem:[#allocation5 + $0xa90] sm:$0xf0]  ;;  %v5754_v17 = vor.u32 %v7043_v7, %v5751_v9  ;;  %v3349_v46 = vadd.f32 %v3348_v34, %v3336_v32 }
  0xe8   :  { %3587 = vmatpush.bf16.msra.mxu0 %v5658_v53  ;;  %v7107_v12 = vld [vmem:[#allocation5 + $0xb84] sm:$0xf]  ;;  %v6007_v13 = vld [vmem:[#allocation5 + $0xb90] sm:$0xf0]  ;;  %v5882_v21 = vor.u32 %v7075_v10, %v5879_v11  ;;  %v3361_v53 = vpop.f32.mrf.mxu2 }
  0xe9   :  { %3600 = vmatpush.bf16.msra.mxu1 %v5786_v55  ;;  %v7007_v24 = vld [vmem:[#allocation5 + $0x864] sm:$0xf]  ;;  %v5607_v26 = vld [vmem:[#allocation5 + $0x870] sm:$0xf0]  ;;  %v6010_v36 = vor.u32 %v7107_v12, %v6007_v13  ;;  %v3362_v57 = vadd.f32 %v3361_v53, %v3349_v46  ;;  %v3337_v63 = vpop.f32.mrf.mxu0 }
  0xea   :  { %3613 = vmatpush.bf16.msra.mxu2 %v5914_v56  ;;  %v7039_v27 = vld [vmem:[#allocation5 + $0x964] sm:$0xf]  ;;  %v5735_v37 = vld [vmem:[#allocation5 + $0x970] sm:$0xf0]  ;;  %v5610_v47 = vor.u32 %v7007_v24, %v5607_v26  ;;  %v3374_v58 = vpop.f32.mrf.mxu3 }
  0xeb   :  { %3626 = vmatpush.bf16.msra.mxu3 %v6042_v60  ;;  %v7071_v39 = vld [vmem:[#allocation5 + $0xa64] sm:$0xf]  ;;  %v5863_v40 = vld [vmem:[#allocation5 + $0xa70] sm:$0xf0]  ;;  %v5738_v48 = vor.u32 %v7039_v27, %v5735_v37  ;;  %v7641_v62 = vadd.f32 %v3374_v58, %v3362_v57  ;;  %v3350_v5 = vpop.f32.mrf.mxu1 }
  0xec   :  { %3588 = vmatpush.bf16.msra.mxu0 %v5642_v2  ;;  %v7103_v43 = vld [vmem:[#allocation5 + $0xb64] sm:$0xf]  ;;  %v5991_v45 = vld [vmem:[#allocation5 + $0xb70] sm:$0xf0]  ;;  %v5866_v49 = vor.u32 %v7071_v39, %v5863_v40 }
  0xed   :  { %3601 = vmatpush.bf16.msra.mxu1 %v5770_v3  ;;  %v7003_v50 = vld [vmem:[#allocation5 + $0x844] sm:$0xf]  ;;  %v5591_v51 = vld [vmem:[#allocation5 + $0x850] sm:$0xf0]  ;;  %v5994_v16 = vor.u32 %v7103_v43, %v5991_v45 }
  0xee   :  { %3614 = vmatpush.bf16.msra.mxu2 %v5898_v4  ;;  %v7035_v52 = vld [vmem:[#allocation5 + $0x944] sm:$0xf]  ;;  %v5719_v54 = vld [vmem:[#allocation5 + $0x950] sm:$0xf0]  ;;  %v5594_v61 = vor.u32 %v7003_v50, %v5591_v51 }
  0xef   :  { %3627 = vmatpush.bf16.msra.mxu3 %v6026_v8  ;;  %v7067_v55 = vld [vmem:[#allocation5 + $0xa44] sm:$0xf]  ;;  %v5847_v56 = vld [vmem:[#allocation5 + $0xa50] sm:$0xf0]  ;;  %v5722_v0 = vor.u32 %v7035_v52, %v5719_v54 }
  0xf0   :  { %3589 = vmatpush.bf16.msra.mxu0 %v5626_v14  ;;  %v7099_v59 = vld [vmem:[#allocation5 + $0xb44] sm:$0xf]  ;;  %v5975_v60 = vld [vmem:[#allocation5 + $0xb50] sm:$0xf0]  ;;  %v5850_v1 = vor.u32 %v7067_v55, %v5847_v56  ;;  %v3363_v27 = vpop.f32.mrf.mxu2 }
  0xf1   :  { %3602 = vmatpush.bf16.msra.mxu1 %v5754_v17  ;;  %v6999_v2 = vld [vmem:[#allocation5 + $0x824] sm:$0xf]  ;;  %v5575_v3 = vld [vmem:[#allocation5 + $0x830] sm:$0xf0]  ;;  %v5978_v6 = vor.u32 %v7099_v59, %v5975_v60 }
  0xf2   :  { %3615 = vmatpush.bf16.msra.mxu2 %v5882_v21  ;;  %v7031_v4 = vld [vmem:[#allocation5 + $0x924] sm:$0xf]  ;;  %v5703_v7 = vld [vmem:[#allocation5 + $0x930] sm:$0xf0]  ;;  %v5578_v12 = vor.u32 %v6999_v2, %v5575_v3  ;;  %v3376_v39 = vpop.f32.mrf.mxu3 }
  0xf3   :  { %3628 = vmatpush.bf16.msra.mxu3 %v6010_v36  ;;  %v7063_v8 = vld [vmem:[#allocation5 + $0xa24] sm:$0xf]  ;;  %v5831_v9 = vld [vmem:[#allocation5 + $0xa30] sm:$0xf0]  ;;  %v5706_v15 = vor.u32 %v7031_v4, %v5703_v7 }
  0xf4   :  { %3590 = vmatpush.bf16.msra.mxu0 %v5610_v47  ;;  %v7095_v10 = vld [vmem:[#allocation5 + $0xb24] sm:$0xf]  ;;  %v5959_v11 = vld [vmem:[#allocation5 + $0xb30] sm:$0xf0]  ;;  %v5834_v17 = vor.u32 %v7063_v8, %v5831_v9 }
  0xf5   :  { %3603 = vmatpush.bf16.msra.mxu1 %v5738_v48  ;;  %v6995_v13 = vld [vmem:[#allocation5 + $0x804] sm:$0xf]  ;;  %v5559_v14 = vld [vmem:[#allocation5 + $0x810] sm:$0xf0]  ;;  %v5962_v32 = vor.u32 %v7095_v10, %v5959_v11 }
  0xf6   :  { %3616 = vmatpush.bf16.msra.mxu2 %v5866_v49  ;;  %v7027_v21 = vld [vmem:[#allocation5 + $0x904] sm:$0xf]  ;;  %v5687_v24 = vld [vmem:[#allocation5 + $0x910] sm:$0xf0]  ;;  %v5562_v46 = vor.u32 %v6995_v13, %v5559_v14 }
  0xf7   :  { %3629 = vmatpush.bf16.msra.mxu3 %v5994_v16  ;;  %v7059_v26 = vld [vmem:[#allocation5 + $0xa04] sm:$0xf]  ;;  %v5815_v34 = vld [vmem:[#allocation5 + $0xa10] sm:$0xf0]  ;;  %v5690_v50 = vor.u32 %v7027_v21, %v5687_v24 }
  0xf8   :  { %3591 = vmatpush.bf16.msra.mxu0 %v5594_v61  ;;  %v7091_v36 = vld [vmem:[#allocation5 + $0xb04] sm:$0xf]  ;;  %v5943_v37 = vld [vmem:[#allocation5 + $0xb10] sm:$0xf0]  ;;  %v5818_v51 = vor.u32 %v7059_v26, %v5815_v34 }
  0xf9   :  { %3604 = vmatpush.bf16.msra.mxu1 %v5722_v0  ;;  %v7151_v40 = vld [vmem:[#allocation5 + $0xce4] sm:$0xf]  ;;  %v6183_v43 = vld [vmem:[#allocation5 + $0xcf0] sm:$0xf0]  ;;  %v5946_v16 = vor.u32 %v7091_v36, %v5943_v37 }
  0xfa   :  { %3617 = vmatpush.bf16.msra.mxu2 %v5850_v1  ;;  %v7183_v45 = vld [vmem:[#allocation5 + $0xde4] sm:$0xf]  ;;  %v6311_v47 = vld [vmem:[#allocation5 + $0xdf0] sm:$0xf0]  ;;  %v6186_v54 = vor.u32 %v7151_v40, %v6183_v43 }
  0xfb   :  { %3630 = vmatpush.bf16.msra.mxu3 %v5978_v6  ;;  %v7215_v48 = vld [vmem:[#allocation5 + $0xee4] sm:$0xf]  ;;  %v6439_v49 = vld [vmem:[#allocation5 + $0xef0] sm:$0xf0]  ;;  %v6314_v55 = vor.u32 %v7183_v45, %v6311_v47 }
  0xfc   :  { %3592 = vmatpush.bf16.msra.mxu0 %v5578_v12  ;;  %v7247_v52 = vld [vmem:[#allocation5 + $0xfe4] sm:$0xf]  ;;  %v6567_v53 = vld [vmem:[#allocation5 + $0xff0] sm:$0xf0]  ;;  %v6442_v56 = vor.u32 %v7215_v48, %v6439_v49 }
  0xfd   :  { %3605 = vmatpush.bf16.msra.mxu1 %v5706_v15  ;;  %v7147_v57 = vld [vmem:[#allocation5 + $0xcc4] sm:$0xf]  ;;  %v6167_v58 = vld [vmem:[#allocation5 + $0xcd0] sm:$0xf0]  ;;  %v6570_v60 = vor.u32 %v7247_v52, %v6567_v53 }
  0xfe   :  { %3618 = vmatpush.bf16.msra.mxu2 %v5834_v17  ;;  %v7179_v59 = vld [vmem:[#allocation5 + $0xdc4] sm:$0xf]  ;;  %v6295_v61 = vld [vmem:[#allocation5 + $0xdd0] sm:$0xf0]  ;;  %v6170_v3 = vor.u32 %v7147_v57, %v6167_v58 }
  0xff   :  { %3631 = vmatpush.bf16.msra.mxu3 %v5962_v32  ;;  %v7211_v63 = vld [vmem:[#allocation5 + $0xec4] sm:$0xf]  ;;  %v6423_v0 = vld [vmem:[#allocation5 + $0xed0] sm:$0xf0]  ;;  %v6298_v4 = vor.u32 %v7179_v59, %v6295_v61 }
 0x100   :  { %3593 = vmatpush.bf16.msra.mxu0 %v5562_v46  ;;  %v7243_v1 = vld [vmem:[#allocation5 + $0xfc4] sm:$0xf]  ;;  %v6551_v2 = vld [vmem:[#allocation5 + $0xfd0] sm:$0xf0]  ;;  %v6426_v5 = vor.u32 %v7211_v63, %v6423_v0 }
 0x101   :  { %3606 = vmatpush.bf16.msra.mxu1 %v5690_v50  ;;  %v7143_v6 = vld [vmem:[#allocation5 + $0xca4] sm:$0xf]  ;;  %v6151_v7 = vld [vmem:[#allocation5 + $0xcb0] sm:$0xf0]  ;;  %v6554_v9 = vor.u32 %v7243_v1, %v6551_v2 }
 0x102   :  { %3619 = vmatpush.bf16.msra.mxu2 %v5818_v51  ;;  %v7175_v8 = vld [vmem:[#allocation5 + $0xda4] sm:$0xf]  ;;  %v6279_v10 = vld [vmem:[#allocation5 + $0xdb0] sm:$0xf0]  ;;  %v6154_v15 = vor.u32 %v7143_v6, %v6151_v7  ;;  %v3387_v39 = vpop.f32.mrf.mxu0 }
 0x103   :  { %3632 = vmatpush.bf16.msra.mxu3 %v5946_v16  ;;  %3594 = vmatmul.bf16.vlgmr.msra.gmra.mxu0 %v7606_v25  ;;  %v7207_v11 = vld [vmem:[#allocation5 + $0xea4] sm:$0xf]  ;;  %v6407_v12 = vld [vmem:[#allocation5 + $0xeb0] sm:$0xf0]  ;;  %v6282_v17 = vor.u32 %v7175_v8, %v6279_v10  ;;  %v3388_v45 = vadd.f32 %v3387_v39, %v7641_v62  ;;  %v3400_v47 = vpop.f32.mrf.mxu1 }
 0x104   :  { %3638 = vmatpush.bf16.msrb.mxu0 %v6186_v54  ;;  %3607 = vmatmul.bf16.vlgmr.msra.gmra.mxu1 %v7610_v30  ;;  %v7239_v13 = vld [vmem:[#allocation5 + $0xfa4] sm:$0xf]  ;;  %v6535_v14 = vld [vmem:[#allocation5 + $0xfb0] sm:$0xf0]  ;;  %v6410_v21 = vor.u32 %v7207_v11, %v6407_v12 }
 0x105   :  { %3651 = vmatpush.bf16.msrb.mxu1 %v6314_v55  ;;  %3620 = vmatmul.bf16.vlgmr.msra.gmra.mxu2 %v7608_v29  ;;  %v7139_v24 = vld [vmem:[#allocation5 + $0xc84] sm:$0xf]  ;;  %v6135_v26 = vld [vmem:[#allocation5 + $0xc90] sm:$0xf0]  ;;  %v6538_v32 = vor.u32 %v7239_v13, %v6535_v14  ;;  %v3401_v16 = vadd.f32 %v3400_v47, %v3388_v45 }
 0x106   :  { %3664 = vmatpush.bf16.msrb.mxu2 %v6442_v56  ;;  %3633 = vmatmul.bf16.vlgmr.msra.gmra.mxu3 %v7612_v33  ;;  %v7171_v27 = vld [vmem:[#allocation5 + $0xd84] sm:$0xf]  ;;  %v6263_v34 = vld [vmem:[#allocation5 + $0xd90] sm:$0xf0]  ;;  %v6138_v46 = vor.u32 %v7139_v24, %v6135_v26 }
 0x107   :  { %3677 = vmatpush.bf16.msrb.mxu3 %v6570_v60  ;;  %v7203_v36 = vld [vmem:[#allocation5 + $0xe84] sm:$0xf]  ;;  %v6391_v37 = vld [vmem:[#allocation5 + $0xe90] sm:$0xf0]  ;;  %v6266_v48 = vor.u32 %v7171_v27, %v6263_v34  ;;  %v3413_v2 = vpop.f32.mrf.mxu2 }
 0x108   :  { %3639 = vmatpush.bf16.msrb.mxu0 %v6170_v3  ;;  %v7235_v40 = vld [vmem:[#allocation5 + $0xf84] sm:$0xf]  ;;  %v6519_v43 = vld [vmem:[#allocation5 + $0xf90] sm:$0xf0]  ;;  %v6394_v49 = vor.u32 %v7203_v36, %v6391_v37  ;;  %v3414_v6 = vadd.f32 %v3413_v2, %v3401_v16 }
 0x109   :  { %3652 = vmatpush.bf16.msrb.mxu1 %v6298_v4  ;;  %v7135_v50 = vld [vmem:[#allocation5 + $0xc64] sm:$0xf]  ;;  %v6119_v51 = vld [vmem:[#allocation5 + $0xc70] sm:$0xf0]  ;;  %v6522_v53 = vor.u32 %v7235_v40, %v6519_v43 }
 0x10a   :  { %3665 = vmatpush.bf16.msrb.mxu2 %v6426_v5  ;;  %v7167_v52 = vld [vmem:[#allocation5 + $0xd64] sm:$0xf]  ;;  %v6247_v54 = vld [vmem:[#allocation5 + $0xd70] sm:$0xf0]  ;;  %v6122_v59 = vor.u32 %v7135_v50, %v6119_v51  ;;  %v3389_v10 = vpop.f32.mrf.mxu0 }
 0x10b   :  { %3678 = vmatpush.bf16.msrb.mxu3 %v6554_v9  ;;  %v7199_v55 = vld [vmem:[#allocation5 + $0xe64] sm:$0xf]  ;;  %v6375_v56 = vld [vmem:[#allocation5 + $0xe70] sm:$0xf0]  ;;  %v6250_v62 = vor.u32 %v7167_v52, %v6247_v54  ;;  %v3426_v7 = vpop.f32.mrf.mxu3  ;;  %v3402_v12 = vpop.f32.mrf.mxu1  ;;  %v4653_v54 = vld [vmem:[#allocation5 + $0xe8] sm:$0xf] }
 0x10c   :  { %3640 = vmatpush.bf16.msrb.mxu0 %v6154_v15  ;;  %v7231_v57 = vld [vmem:[#allocation5 + $0xf64] sm:$0xf]  ;;  %v6503_v58 = vld [vmem:[#allocation5 + $0xf70] sm:$0xf0]  ;;  %v6378_v60 = vor.u32 %v7199_v55, %v6375_v56  ;;  %v7648_v13 = vadd.f32 %v3426_v7, %v3414_v6  ;;  %v6770_v55 = vld [vmem:[#allocation5 + $0xf4] sm:$0xf0] }
 0x10d   :  { %3653 = vmatpush.bf16.msrb.mxu1 %v6282_v17  ;;  %v7131_v61 = vld [vmem:[#allocation5 + $0xc44] sm:$0xf]  ;;  %v6103_v63 = vld [vmem:[#allocation5 + $0xc50] sm:$0xf0]  ;;  %v6506_v1 = vor.u32 %v7231_v57, %v6503_v58  ;;  %v4781_v56 = vld [vmem:[#allocation5 + $0x1e8] sm:$0xf] }
 0x10e   :  { %3666 = vmatpush.bf16.msrb.mxu2 %v6410_v21  ;;  %v7163_v0 = vld [vmem:[#allocation5 + $0xd44] sm:$0xf]  ;;  %v6231_v3 = vld [vmem:[#allocation5 + $0xd50] sm:$0xf0]  ;;  %v6106_v11 = vor.u32 %v7131_v61, %v6103_v63  ;;  %v4637_v6 = vld [vmem:[#allocation5 + $0xc8] sm:$0xf] }
 0x10f   :  { %3679 = vmatpush.bf16.msrb.mxu3 %v6538_v32  ;;  %v7195_v4 = vld [vmem:[#allocation5 + $0xe44] sm:$0xf]  ;;  %v6359_v5 = vld [vmem:[#allocation5 + $0xe50] sm:$0xf0]  ;;  %v6234_v14 = vor.u32 %v7163_v0, %v6231_v3  ;;  %v3415_v16 = vpop.f32.mrf.mxu2  ;;  %v5037_v0 = vld [vmem:[#allocation5 + $0x3e8] sm:$0xf]  ;;  %v4654_v3 = vor.u32 %v6770_v55, %v4653_v54 }
 0x110   :  { %3641 = vmatpush.bf16.msrb.mxu0 %v6138_v46  ;;  %v7227_v8 = vld [vmem:[#allocation5 + $0xf44] sm:$0xf]  ;;  %v6487_v9 = vld [vmem:[#allocation5 + $0xf50] sm:$0xf0]  ;;  %v6362_v15 = vor.u32 %v7195_v4, %v6359_v5  ;;  %v6766_v7 = vld [vmem:[#allocation5 + $0xd4] sm:$0xf0] }
 0x111   :  { %3654 = vmatpush.bf16.msrb.mxu1 %v6266_v48  ;;  %v7127_v17 = vld [vmem:[#allocation5 + $0xc24] sm:$0xf]  ;;  %v6087_v21 = vld [vmem:[#allocation5 + $0xc30] sm:$0xf0]  ;;  %v6490_v26 = vor.u32 %v7227_v8, %v6487_v9  ;;  %v4765_v8 = vld [vmem:[#allocation5 + $0x1c8] sm:$0xf] }
 0x112   :  { %3667 = vmatpush.bf16.msrb.mxu2 %v6394_v49  ;;  %v7159_v24 = vld [vmem:[#allocation5 + $0xd24] sm:$0xf]  ;;  %v6215_v27 = vld [vmem:[#allocation5 + $0xd30] sm:$0xf0]  ;;  %v6090_v39 = vor.u32 %v7127_v17, %v6087_v21  ;;  %v6798_v10 = vld [vmem:[#allocation5 + $0x1d4] sm:$0xf0]  ;;  %v4638_v17 = vor.u32 %v6766_v7, %v4637_v6 }
 0x113   :  { %3680 = vmatpush.bf16.msrb.mxu3 %v6522_v53  ;;  %v7191_v32 = vld [vmem:[#allocation5 + $0xe24] sm:$0xf]  ;;  %v6343_v34 = vld [vmem:[#allocation5 + $0xe30] sm:$0xf0]  ;;  %v6218_v45 = vor.u32 %v7159_v24, %v6215_v27  ;;  %v3428_v57 = vpop.f32.mrf.mxu3  ;;  %v6830_v12 = vld [vmem:[#allocation5 + $0x2d4] sm:$0xf0]  ;;  %v4766_v21 = vor.u32 %v6798_v10, %v4765_v8 }
 0x114   :  { %3642 = vmatpush.bf16.msrb.mxu0 %v6122_v59  ;;  %v7223_v36 = vld [vmem:[#allocation5 + $0xf24] sm:$0xf]  ;;  %v6471_v37 = vld [vmem:[#allocation5 + $0xf30] sm:$0xf0]  ;;  %v6346_v46 = vor.u32 %v7191_v32, %v6343_v34  ;;  %v6802_v59 = vld [vmem:[#allocation5 + $0x1f4] sm:$0xf0] }
 0x115   :  { %3655 = vmatpush.bf16.msrb.mxu1 %v6250_v62  ;;  %v7123_v40 = vld [vmem:[#allocation5 + $0xc04] sm:$0xf]  ;;  %v6071_v43 = vld [vmem:[#allocation5 + $0xc10] sm:$0xf0]  ;;  %v6474_v50 = vor.u32 %v7223_v36, %v6471_v37  ;;  %v4909_v62 = vld [vmem:[#allocation5 + $0x2e8] sm:$0xf]  ;;  %v4782_v4 = vor.u32 %v6802_v59, %v4781_v56 }
 0x116   :  { %3668 = vmatpush.bf16.msrb.mxu2 %v6378_v60  ;;  %v7155_v47 = vld [vmem:[#allocation5 + $0xd04] sm:$0xf]  ;;  %v6199_v48 = vld [vmem:[#allocation5 + $0xd10] sm:$0xf0]  ;;  %v6074_v58 = vor.u32 %v7123_v40, %v6071_v43  ;;  %v6834_v60 = vld [vmem:[#allocation5 + $0x2f4] sm:$0xf0] }
 0x117   :  { %3681 = vmatpush.bf16.msrb.mxu3 %v6506_v1  ;;  %v7187_v49 = vld [vmem:[#allocation5 + $0xe04] sm:$0xf]  ;;  %v6327_v51 = vld [vmem:[#allocation5 + $0xe10] sm:$0xf0]  ;;  %v6202_v61 = vor.u32 %v7155_v47, %v6199_v48  ;;  %v6866_v1 = vld [vmem:[#allocation5 + $0x3f4] sm:$0xf0]  ;;  %v4910_v5 = vor.u32 %v6834_v60, %v4909_v62 }
 0x118   :  { %3643 = vmatpush.bf16.msrb.mxu0 %v6106_v11  ;;  %v7219_v52 = vld [vmem:[#allocation5 + $0xf04] sm:$0xf]  ;;  %v6455_v53 = vld [vmem:[#allocation5 + $0xf10] sm:$0xf0]  ;;  %v6330_v63 = vor.u32 %v7187_v49, %v6327_v51  ;;  %v5038_v9 = vor.u32 %v6866_v1, %v5037_v0  ;;  %v4893_v11 = vld [vmem:[#allocation5 + $0x2c8] sm:$0xf] }
 0x119   :  { %3656 = vmatpush.bf16.msrb.mxu1 %v6234_v14  ;;  %v6458_v2 = vor.u32 %v7219_v52, %v6455_v53  ;;  %v5021_v14 = vld [vmem:[#allocation5 + $0x3c8] sm:$0xf]  ;;  %v4894_v24 = vor.u32 %v6830_v12, %v4893_v11  ;;  %v6762_v27 = vld [vmem:[#allocation5 + $0xb4] sm:$0xf0] }
 0x11a   :  { %3669 = vmatpush.bf16.msrb.mxu2 %v6362_v15  ;;  %v6862_v15 = vld [vmem:[#allocation5 + $0x3d4] sm:$0xf0]  ;;  %v4749_v32 = vld [vmem:[#allocation5 + $0x1a8] sm:$0xf] }
 0x11b   :  { %3682 = vmatpush.bf16.msrb.mxu3 %v6490_v26  ;;  %v4621_v26 = vld [vmem:[#allocation5 + $0xa8] sm:$0xf]  ;;  %v5022_v34 = vor.u32 %v6862_v15, %v5021_v14  ;;  %v6794_v36 = vld [vmem:[#allocation5 + $0x1b4] sm:$0xf0] }
 0x11c   :  { %3644 = vmatpush.bf16.msrb.mxu0 %v6090_v39  ;;  %v4877_v37 = vld [vmem:[#allocation5 + $0x2a8] sm:$0xf]  ;;  %v6826_v39 = vld [vmem:[#allocation5 + $0x2b4] sm:$0xf0] }
 0x11d   :  { %3657 = vmatpush.bf16.msrb.mxu1 %v6218_v45  ;;  %v5005_v40 = vld [vmem:[#allocation5 + $0x3a8] sm:$0xf]  ;;  %v6858_v43 = vld [vmem:[#allocation5 + $0x3b4] sm:$0xf0]  ;;  %v4622_v45 = vor.u32 %v6762_v27, %v4621_v26  ;;  %v4878_v47 = vor.u32 %v6826_v39, %v4877_v37 }
 0x11e   :  { %3670 = vmatpush.bf16.msrb.mxu2 %v6346_v46  ;;  %v4750_v46 = vor.u32 %v6794_v36, %v4749_v32  ;;  %v4605_v48 = vld [vmem:[#allocation5 + $0x88] sm:$0xf]  ;;  %v6758_v49 = vld [vmem:[#allocation5 + $0x94] sm:$0xf0]  ;;  %v5006_v51 = vor.u32 %v6858_v43, %v5005_v40 }
 0x11f   :  { %3683 = vmatpush.bf16.msrb.mxu3 %v6474_v50  ;;  %v4733_v50 = vld [vmem:[#allocation5 + $0x188] sm:$0xf]  ;;  %v6790_v52 = vld [vmem:[#allocation5 + $0x194] sm:$0xf0] }
 0x120   :  { %3645 = vmatpush.bf16.msrb.mxu0 %v6074_v58  ;;  %v4861_v53 = vld [vmem:[#allocation5 + $0x288] sm:$0xf]  ;;  %v6822_v16 = vld [vmem:[#allocation5 + $0x294] sm:$0xf0]  ;;  %v4606_v58 = vor.u32 %v6758_v49, %v4605_v48  ;;  %v4734_v62 = vor.u32 %v6790_v52, %v4733_v50 }
 0x121   :  { %3658 = vmatpush.bf16.msrb.mxu1 %v6202_v61  ;;  %v4989_v55 = vld [vmem:[#allocation5 + $0x388] sm:$0xf]  ;;  %v6854_v56 = vld [vmem:[#allocation5 + $0x394] sm:$0xf0]  ;;  %v3452_v59 = vpop.f32.mrf.mxu1  ;;  %v4862_v60 = vor.u32 %v6822_v16, %v4861_v53 }
 0x122   :  { %3671 = vmatpush.bf16.msrb.mxu2 %v6330_v63  ;;  %v3439_v54 = vpop.f32.mrf.mxu0  ;;  %v4589_v61 = vld [vmem:[#allocation5 + $0x68] sm:$0xf]  ;;  %v6754_v63 = vld [vmem:[#allocation5 + $0x74] sm:$0xf0]  ;;  %v4990_v1 = vor.u32 %v6854_v56, %v4989_v55 }
 0x123   :  { %3684 = vmatpush.bf16.msrb.mxu3 %v6458_v2  ;;  %3646 = vmatmul.bf16.vlgmr.msrb.gmra.mxu0 %v7618_v23  ;;  %v3440_v57 = vadd.f32 %v3439_v54, %v7648_v13  ;;  %v4717_v0 = vld [vmem:[#allocation5 + $0x168] sm:$0xf]  ;;  %v6850_v7 = vld [vmem:[#allocation5 + $0x374] sm:$0xf0]  ;;  %v4590_v8 = vor.u32 %v6754_v63, %v4589_v61 }
 0x124   :  { %3690 = vmatpush.bf16.msra.mxu0 %v4654_v3  ;;  %3659 = vmatmul.bf16.vlgmr.msrb.gmra.mxu1 %v7622_v31  ;;  %v6786_v3 = vld [vmem:[#allocation5 + $0x174] sm:$0xf0]  ;;  %v4973_v6 = vld [vmem:[#allocation5 + $0x368] sm:$0xf] }
 0x125   :  { %3703 = vmatpush.bf16.msra.mxu1 %v4782_v4  ;;  %3672 = vmatmul.bf16.vlgmr.msrb.gmra.mxu2 %v7620_v28  ;;  %v3453_v2 = vadd.f32 %v3452_v59, %v3440_v57  ;;  %v4845_v4 = vld [vmem:[#allocation5 + $0x268] sm:$0xf]  ;;  %v4718_v13 = vor.u32 %v6786_v3, %v4717_v0  ;;  %v6750_v11 = vld [vmem:[#allocation5 + $0x54] sm:$0xf0]  ;;  %v4974_v14 = vor.u32 %v6850_v7, %v4973_v6 }
 0x126   :  { %3716 = vmatpush.bf16.msra.mxu2 %v4910_v5  ;;  %3685 = vmatmul.bf16.vlgmr.msrb.gmra.mxu3 %v7624_v35  ;;  %v6818_v5 = vld [vmem:[#allocation5 + $0x274] sm:$0xf0]  ;;  %v4573_v10 = vld [vmem:[#allocation5 + $0x48] sm:$0xf] }
 0x127   :  { %3729 = vmatpush.bf16.msra.mxu3 %v5038_v9  ;;  %v4846_v9 = vor.u32 %v6818_v5, %v4845_v4  ;;  %v4701_v12 = vld [vmem:[#allocation5 + $0x148] sm:$0xf]  ;;  %v4574_v37 = vor.u32 %v6750_v11, %v4573_v10  ;;  %v6778_v50 = vld [vmem:[#allocation5 + $0x134] sm:$0xf0] }
 0x128   :  { %3691 = vmatpush.bf16.msra.mxu0 %v4638_v17  ;;  %v6782_v17 = vld [vmem:[#allocation5 + $0x154] sm:$0xf0]  ;;  %v4957_v32 = vld [vmem:[#allocation5 + $0x348] sm:$0xf] }
 0x129   :  { %3704 = vmatpush.bf16.msra.mxu1 %v4766_v21  ;;  %v4829_v21 = vld [vmem:[#allocation5 + $0x248] sm:$0xf]  ;;  %v3478_v27 = vpop.f32.mrf.mxu3  ;;  %v3454_v39 = vpop.f32.mrf.mxu1  ;;  %v4702_v43 = vor.u32 %v6782_v17, %v4701_v12  ;;  %v6810_v52 = vld [vmem:[#allocation5 + $0x234] sm:$0xf0] }
 0x12a   :  { %3717 = vmatpush.bf16.msra.mxu2 %v4894_v24  ;;  %v3465_v15 = vpop.f32.mrf.mxu2  ;;  %v6814_v24 = vld [vmem:[#allocation5 + $0x254] sm:$0xf0]  ;;  %v3441_v36 = vpop.f32.mrf.mxu0  ;;  %v4685_v48 = vld [vmem:[#allocation5 + $0x128] sm:$0xf] }
 0x12b   :  { %3730 = vmatpush.bf16.msra.mxu3 %v5022_v34  ;;  %v3466_v26 = vadd.f32 %v3465_v15, %v3453_v2  ;;  %v6846_v34 = vld [vmem:[#allocation5 + $0x354] sm:$0xf0]  ;;  %v4941_v53 = vld [vmem:[#allocation5 + $0x328] sm:$0xf]  ;;  %v4686_v57 = vor.u32 %v6778_v50, %v4685_v48 }
 0x12c   :  { %3692 = vmatpush.bf16.msra.mxu0 %v4622_v45  ;;  %v4830_v45 = vor.u32 %v6814_v24, %v4829_v21  ;;  %v4958_v49 = vor.u32 %v6846_v34, %v4957_v32  ;;  %v6842_v16 = vld [vmem:[#allocation5 + $0x334] sm:$0xf0]  ;;  %v4541_v55 = vld [vmem:[#allocation5 + $0x8] sm:$0xf] }
 0x12d   :  { %3705 = vmatpush.bf16.msra.mxu1 %v4750_v46  ;;  %v7655_v40 = vadd.f32 %v3478_v27, %v3466_v26  ;;  %v4557_v46 = vld [vmem:[#allocation5 + $0x28] sm:$0xf]  ;;  %v6742_v56 = vld [vmem:[#allocation5 + $0x14] sm:$0xf0]  ;;  %v4942_v61 = vor.u32 %v6842_v16, %v4941_v53 }
 0x12e   :  { %3718 = vmatpush.bf16.msra.mxu2 %v4878_v47  ;;  %v6746_v47 = vld [vmem:[#allocation5 + $0x34] sm:$0xf0]  ;;  %v4669_v59 = vld [vmem:[#allocation5 + $0x108] sm:$0xf]  ;;  %v4542_v7 = vor.u32 %v6742_v56, %v4541_v55 }
 0x12f   :  { %3731 = vmatpush.bf16.msra.mxu3 %v5006_v51  ;;  %v4813_v51 = vld [vmem:[#allocation5 + $0x228] sm:$0xf]  ;;  %v4558_v54 = vor.u32 %v6746_v47, %v4557_v46  ;;  %v6806_v63 = vld [vmem:[#allocation5 + $0x214] sm:$0xf0] }
 0x130   :  { %3693 = vmatpush.bf16.msra.mxu0 %v4606_v58  ;;  %v4814_v58 = vor.u32 %v6810_v52, %v4813_v51  ;;  %v4925_v0 = vld [vmem:[#allocation5 + $0x308] sm:$0xf]  ;;  %v6898_v4 = vld [vmem:[#allocation5 + $0x4f4] sm:$0xf0] }
 0x131   :  { %3706 = vmatpush.bf16.msra.mxu1 %v4734_v62  ;;  %v6774_v62 = vld [vmem:[#allocation5 + $0x114] sm:$0xf0]  ;;  %v5165_v3 = vld [vmem:[#allocation5 + $0x4e8] sm:$0xf]  ;;  %v3480_v6 = vpop.f32.mrf.mxu3 }
 0x132   :  { %3719 = vmatpush.bf16.msra.mxu2 %v4862_v60  ;;  %v4797_v60 = vld [vmem:[#allocation5 + $0x208] sm:$0xf]  ;;  %v3467_v2 = vpop.f32.mrf.mxu2  ;;  %v4670_v10 = vor.u32 %v6774_v62, %v4669_v59  ;;  %v5166_v17 = vor.u32 %v6898_v4, %v5165_v3  ;;  %v6894_v27 = vld [vmem:[#allocation5 + $0x4d4] sm:$0xf0] }
 0x133   :  { %3732 = vmatpush.bf16.msra.mxu3 %v4990_v1  ;;  %v6838_v1 = vld [vmem:[#allocation5 + $0x314] sm:$0xf0]  ;;  %v5293_v5 = vld [vmem:[#allocation5 + $0x5e8] sm:$0xf]  ;;  %v4798_v11 = vor.u32 %v6806_v63, %v4797_v60  ;;  %v7305_v63 = vld [vmem:[#allocation7] sm:$0xf] }
 0x134   :  { %3694 = vmatpush.bf16.msra.mxu0 %v4590_v8  ;;  %v6930_v8 = vld [vmem:[#allocation5 + $0x5f4] sm:$0xf0]  ;;  %v5549_v12 = vld [vmem:[#allocation5 + $0x7e8] sm:$0xf]  ;;  %v4926_v15 = vor.u32 %v6838_v1, %v4925_v0  ;;  %v651_v0 = vperm.slane %v7305_v63, 1 }
 0x135   :  { %3707 = vmatpush.bf16.msra.mxu1 %v4718_v13  ;;  %v5421_v13 = vld [vmem:[#allocation5 + $0x6e8] sm:$0xf]  ;;  %v5294_v21 = vor.u32 %v6930_v8, %v5293_v5  ;;  %v6926_v36 = vld [vmem:[#allocation5 + $0x5d4] sm:$0xf0] }
 0x136   :  { %3720 = vmatpush.bf16.msra.mxu2 %v4846_v9  ;;  %v6962_v9 = vld [vmem:[#allocation5 + $0x6f4] sm:$0xf0]  ;;  %v5149_v26 = vld [vmem:[#allocation5 + $0x4c8] sm:$0xf] }
 0x137   :  { %3733 = vmatpush.bf16.msra.mxu3 %v4974_v14  ;;  %v6994_v14 = vld [vmem:[#allocation5 + $0x7f4] sm:$0xf0]  ;;  %v5422_v24 = vor.u32 %v6962_v9, %v5421_v13  ;;  %v5277_v32 = vld [vmem:[#allocation5 + $0x5c8] sm:$0xf]  ;;  %v5150_v46 = vor.u32 %v6894_v27, %v5149_v26 }
 0x138   :  { %3695 = vmatpush.bf16.msra.mxu0 %v4574_v37  ;;  %v5550_v34 = vor.u32 %v6994_v14, %v5549_v12  ;;  %v5405_v37 = vld [vmem:[#allocation5 + $0x6c8] sm:$0xf]  ;;  %v6958_v39 = vld [vmem:[#allocation5 + $0x6d4] sm:$0xf0]  ;;  %v5278_v47 = vor.u32 %v6926_v36, %v5277_v32 }
 0x139   :  { %3708 = vmatpush.bf16.msra.mxu1 %v4702_v43  ;;  %v5533_v43 = vld [vmem:[#allocation5 + $0x7c8] sm:$0xf]  ;;  %v5406_v48 = vor.u32 %v6958_v39, %v5405_v37  ;;  %v6890_v50 = vld [vmem:[#allocation5 + $0x4b4] sm:$0xf0] }
 0x13a   :  { %3721 = vmatpush.bf16.msra.mxu2 %v4830_v45  ;;  %v6990_v45 = vld [vmem:[#allocation5 + $0x7d4] sm:$0xf0]  ;;  %v5261_v51 = vld [vmem:[#allocation5 + $0x5a8] sm:$0xf] }
 0x13b   :  { %3734 = vmatpush.bf16.msra.mxu3 %v4958_v49  ;;  %v5133_v49 = vld [vmem:[#allocation5 + $0x4a8] sm:$0xf]  ;;  %v5534_v52 = vor.u32 %v6990_v45, %v5533_v43  ;;  %v6922_v53 = vld [vmem:[#allocation5 + $0x5b4] sm:$0xf0] }
 0x13c   :  { %3696 = vmatpush.bf16.msra.mxu0 %v4558_v54  ;;  %v5389_v16 = vld [vmem:[#allocation5 + $0x6a8] sm:$0xf]  ;;  %v6954_v54 = vld [vmem:[#allocation5 + $0x6b4] sm:$0xf0]  ;;  %v5262_v59 = vor.u32 %v6922_v53, %v5261_v51 }
 0x13d   :  { %3709 = vmatpush.bf16.msra.mxu1 %v4686_v57  ;;  %v5517_v55 = vld [vmem:[#allocation5 + $0x7a8] sm:$0xf]  ;;  %v6986_v56 = vld [vmem:[#allocation5 + $0x7b4] sm:$0xf0]  ;;  %v5134_v57 = vor.u32 %v6890_v50, %v5133_v49  ;;  %v5390_v62 = vor.u32 %v6954_v54, %v5389_v16 }
 0x13e   :  { %3722 = vmatpush.bf16.msra.mxu2 %v4814_v58  ;;  %v5117_v58 = vld [vmem:[#allocation5 + $0x488] sm:$0xf]  ;;  %v6886_v60 = vld [vmem:[#allocation5 + $0x494] sm:$0xf0]  ;;  %v5518_v1 = vor.u32 %v6986_v56, %v5517_v55 }
 0x13f   :  { %3735 = vmatpush.bf16.msra.mxu3 %v4942_v61  ;;  %v5245_v61 = vld [vmem:[#allocation5 + $0x588] sm:$0xf]  ;;  %v6918_v2 = vld [vmem:[#allocation5 + $0x594] sm:$0xf0] }
 0x140   :  { %3697 = vmatpush.bf16.msra.mxu0 %v4542_v7  ;;  %v5373_v3 = vld [vmem:[#allocation5 + $0x688] sm:$0xf]  ;;  %v6950_v4 = vld [vmem:[#allocation5 + $0x694] sm:$0xf0]  ;;  %v5118_v7 = vor.u32 %v6886_v60, %v5117_v58  ;;  %v3491_v8 = vpop.f32.mrf.mxu0  ;;  %v5246_v13 = vor.u32 %v6918_v2, %v5245_v61 }
 0x141   :  { %3710 = vmatpush.bf16.msra.mxu1 %v4670_v10  ;;  %v5501_v5 = vld [vmem:[#allocation5 + $0x788] sm:$0xf]  ;;  %v6982_v6 = vld [vmem:[#allocation5 + $0x794] sm:$0xf0]  ;;  %v5374_v9 = vor.u32 %v6950_v4, %v5373_v3  ;;  %v3492_v14 = vadd.f32 %v3491_v8, %v651_v0 }
 0x142   :  { %3723 = vmatpush.bf16.msra.mxu2 %v4798_v11  ;;  %v5101_v10 = vld [vmem:[#allocation5 + $0x468] sm:$0xf]  ;;  %v6882_v11 = vld [vmem:[#allocation5 + $0x474] sm:$0xf0] }
 0x143   :  { %3736 = vmatpush.bf16.msra.mxu3 %v4926_v15  ;;  %3698 = vmatmul.bf16.vlgmr.msra.gmra.mxu0 %v7584_v19  ;;  %v5229_v12 = vld [vmem:[#allocation5 + $0x568] sm:$0xf]  ;;  %v3504_v15 = vpop.f32.mrf.mxu1  ;;  %v6946_v26 = vld [vmem:[#allocation5 + $0x674] sm:$0xf0]  ;;  %v5102_v36 = vor.u32 %v6882_v11, %v5101_v10 }
 0x144   :  { %3742 = vmatpush.bf16.msrb.mxu0 %v5166_v17  ;;  %3711 = vmatmul.bf16.vlgmr.msra.gmra.mxu1 %v7588_v22  ;;  %v5502_v17 = vor.u32 %v6982_v6, %v5501_v5  ;;  %v5485_v27 = vld [vmem:[#allocation5 + $0x768] sm:$0xf]  ;;  %v6978_v32 = vld [vmem:[#allocation5 + $0x774] sm:$0xf0] }
 0x145   :  { %3755 = vmatpush.bf16.msrb.mxu1 %v5294_v21  ;;  %3724 = vmatmul.bf16.vlgmr.msra.gmra.mxu2 %v7582_v18  ;;  %v6914_v21 = vld [vmem:[#allocation5 + $0x574] sm:$0xf0]  ;;  %v5085_v43 = vld [vmem:[#allocation5 + $0x448] sm:$0xf] }
 0x146   :  { %3768 = vmatpush.bf16.msrb.mxu2 %v5422_v24  ;;  %3737 = vmatmul.bf16.vlgmr.msra.gmra.mxu3 %v7586_v20  ;;  %v5357_v24 = vld [vmem:[#allocation5 + $0x668] sm:$0xf]  ;;  %v5230_v37 = vor.u32 %v6914_v21, %v5229_v12  ;;  %v6878_v45 = vld [vmem:[#allocation5 + $0x454] sm:$0xf0] }
 0x147   :  { %3781 = vmatpush.bf16.msrb.mxu3 %v5550_v34  ;;  %v3505_v34 = vadd.f32 %v3504_v15, %v3492_v14  ;;  %v5358_v39 = vor.u32 %v6946_v26, %v5357_v24  ;;  %v6910_v49 = vld [vmem:[#allocation5 + $0x554] sm:$0xf0]  ;;  %v5341_v50 = vld [vmem:[#allocation5 + $0x648] sm:$0xf]  ;;  %v5086_v55 = vor.u32 %v6878_v45, %v5085_v43 }
 0x148   :  { %3743 = vmatpush.bf16.msrb.mxu0 %v5150_v46  ;;  %v5213_v46 = vld [vmem:[#allocation5 + $0x548] sm:$0xf]  ;;  %v6942_v51 = vld [vmem:[#allocation5 + $0x654] sm:$0xf0] }
 0x149   :  { %3756 = vmatpush.bf16.msrb.mxu1 %v5278_v47  ;;  %v3517_v47 = vpop.f32.mrf.mxu2  ;;  %v3530_v53 = vpop.f32.mrf.mxu3  ;;  %v5469_v16 = vld [vmem:[#allocation5 + $0x748] sm:$0xf]  ;;  %v6974_v54 = vld [vmem:[#allocation5 + $0x754] sm:$0xf0]  ;;  %v5214_v58 = vor.u32 %v6910_v49, %v5213_v46 }
 0x14a   :  { %3769 = vmatpush.bf16.msrb.mxu2 %v5406_v48  ;;  %v5486_v48 = vor.u32 %v6978_v32, %v5485_v27  ;;  %v6874_v60 = vld [vmem:[#allocation5 + $0x434] sm:$0xf0]  ;;  %v5197_v61 = vld [vmem:[#allocation5 + $0x528] sm:$0xf]  ;;  %v5470_v0 = vor.u32 %v6974_v54, %v5469_v16 }
 0x14b   :  { %3782 = vmatpush.bf16.msrb.mxu3 %v5534_v52  ;;  %v3518_v52 = vadd.f32 %v3517_v47, %v3505_v34  ;;  %v3506_v63 = vpop.f32.mrf.mxu1  ;;  %v5325_v2 = vld [vmem:[#allocation5 + $0x628] sm:$0xf]  ;;  %v6938_v3 = vld [vmem:[#allocation5 + $0x634] sm:$0xf0] }
 0x14c   :  { %3744 = vmatpush.bf16.msrb.mxu0 %v5134_v57  ;;  %v3493_v57 = vpop.f32.mrf.mxu0  ;;  %v5453_v4 = vld [vmem:[#allocation5 + $0x728] sm:$0xf]  ;;  %v6970_v5 = vld [vmem:[#allocation5 + $0x734] sm:$0xf0] }
 0x14d   :  { %3757 = vmatpush.bf16.msrb.mxu1 %v5262_v59  ;;  %v7661_v56 = vadd.f32 %v3530_v53, %v3518_v52  ;;  %v5342_v59 = vor.u32 %v6942_v51, %v5341_v50  ;;  %v6870_v8 = vld [vmem:[#allocation5 + $0x414] sm:$0xf0]  ;;  %v5181_v10 = vld [vmem:[#allocation5 + $0x508] sm:$0xf]  ;;  %v5454_v15 = vor.u32 %v6970_v5, %v5453_v4 }
 0x14e   :  { %3770 = vmatpush.bf16.msrb.mxu2 %v5390_v62  ;;  %v5069_v62 = vld [vmem:[#allocation5 + $0x428] sm:$0xf]  ;;  %v6902_v11 = vld [vmem:[#allocation5 + $0x514] sm:$0xf0] }
 0x14f   :  { %3783 = vmatpush.bf16.msrb.mxu3 %v5518_v1  ;;  %v6906_v1 = vld [vmem:[#allocation5 + $0x534] sm:$0xf0]  ;;  %v5070_v6 = vor.u32 %v6874_v60, %v5069_v62  ;;  %v5309_v12 = vld [vmem:[#allocation5 + $0x608] sm:$0xf]  ;;  %v5182_v45 = vor.u32 %v6902_v11, %v5181_v10 }
 0x150   :  { %3745 = vmatpush.bf16.msrb.mxu0 %v5118_v7  ;;  %v5053_v7 = vld [vmem:[#allocation5 + $0x408] sm:$0xf]  ;;  %v6966_v24 = vld [vmem:[#allocation5 + $0x714] sm:$0xf0] }
 0x151   :  { %3758 = vmatpush.bf16.msrb.mxu1 %v5246_v13  ;;  %v5198_v13 = vor.u32 %v6906_v1, %v5197_v61  ;;  %v3519_v14 = vpop.f32.mrf.mxu2  ;;  %v5437_v21 = vld [vmem:[#allocation5 + $0x708] sm:$0xf]  ;;  %v3532_v26 = vpop.f32.mrf.mxu3  ;;  %v7026_v32 = vld [vmem:[#allocation5 + $0x8f4] sm:$0xf0] }
 0x152   :  { %3771 = vmatpush.bf16.msrb.mxu2 %v5374_v9  ;;  %v5326_v9 = vor.u32 %v6938_v3, %v5325_v2  ;;  %v5677_v27 = vld [vmem:[#allocation5 + $0x8e8] sm:$0xf]  ;;  %v7090_v43 = vld [vmem:[#allocation5 + $0xaf4] sm:$0xf0]  ;;  %v5438_v49 = vor.u32 %v6966_v24, %v5437_v21 }
 0x153   :  { %3784 = vmatpush.bf16.msrb.mxu3 %v5502_v17  ;;  %v6934_v17 = vld [vmem:[#allocation5 + $0x614] sm:$0xf0]  ;;  %v5805_v34 = vld [vmem:[#allocation5 + $0x9e8] sm:$0xf]  ;;  %v5678_v50 = vor.u32 %v7026_v32, %v5677_v27 }
 0x154   :  { %3746 = vmatpush.bf16.msrb.mxu0 %v5102_v36  ;;  %v5054_v36 = vor.u32 %v6870_v8, %v5053_v7  ;;  %v5310_v46 = vor.u32 %v6934_v17, %v5309_v12  ;;  %v6061_v47 = vld [vmem:[#allocation5 + $0xbe8] sm:$0xf]  ;;  %v7022_v16 = vld [vmem:[#allocation5 + $0x8d4] sm:$0xf0] }
 0x155   :  { %3759 = vmatpush.bf16.msrb.mxu1 %v5230_v37  ;;  %v7058_v37 = vld [vmem:[#allocation5 + $0x9f4] sm:$0xf0]  ;;  %v5661_v53 = vld [vmem:[#allocation5 + $0x8c8] sm:$0xf] }
 0x156   :  { %3772 = vmatpush.bf16.msrb.mxu2 %v5358_v39  ;;  %v5933_v39 = vld [vmem:[#allocation5 + $0xae8] sm:$0xf]  ;;  %v5806_v51 = vor.u32 %v7058_v37, %v5805_v34  ;;  %v7054_v57 = vld [vmem:[#allocation5 + $0x9d4] sm:$0xf0]  ;;  %v5662_v61 = vor.u32 %v7022_v16, %v5661_v53 }
 0x157   :  { %3785 = vmatpush.bf16.msrb.mxu3 %v5486_v48  ;;  %v7122_v48 = vld [vmem:[#allocation5 + $0xbf4] sm:$0xf0]  ;;  %v5934_v52 = vor.u32 %v7090_v43, %v5933_v39  ;;  %v5789_v54 = vld [vmem:[#allocation5 + $0x9c8] sm:$0xf] }
 0x158   :  { %3747 = vmatpush.bf16.msrb.mxu0 %v5086_v55  ;;  %v6062_v55 = vor.u32 %v7122_v48, %v6061_v47  ;;  %v6045_v62 = vld [vmem:[#allocation5 + $0xbc8] sm:$0xf]  ;;  %v7118_v60 = vld [vmem:[#allocation5 + $0xbd4] sm:$0xf0]  ;;  %v5790_v63 = vor.u32 %v7054_v57, %v5789_v54 }
 0x159   :  { %3760 = vmatpush.bf16.msrb.mxu1 %v5214_v58  ;;  %v5917_v58 = vld [vmem:[#allocation5 + $0xac8] sm:$0xf]  ;;  %v7018_v2 = vld [vmem:[#allocation5 + $0x8b4] sm:$0xf0]  ;;  %v6046_v4 = vor.u32 %v7118_v60, %v6045_v62 }
 0x15a   :  { %3773 = vmatpush.bf16.msrb.mxu2 %v5342_v59  ;;  %v7086_v59 = vld [vmem:[#allocation5 + $0xad4] sm:$0xf0]  ;;  %v5645_v1 = vld [vmem:[#allocation5 + $0x8a8] sm:$0xf] }
 0x15b   :  { %3786 = vmatpush.bf16.msrb.mxu3 %v5470_v0  ;;  %v5918_v0 = vor.u32 %v7086_v59, %v5917_v58  ;;  %v5773_v3 = vld [vmem:[#allocation5 + $0x9a8] sm:$0xf]  ;;  %v7050_v5 = vld [vmem:[#allocation5 + $0x9b4] sm:$0xf0] }
 0x15c   :  { %3748 = vmatpush.bf16.msrb.mxu0 %v5070_v6  ;;  %v5901_v6 = vld [vmem:[#allocation5 + $0xaa8] sm:$0xf]  ;;  %v7082_v7 = vld [vmem:[#allocation5 + $0xab4] sm:$0xf0]  ;;  %v5774_v10 = vor.u32 %v7050_v5, %v5773_v3 }
 0x15d   :  { %3761 = vmatpush.bf16.msrb.mxu1 %v5198_v13  ;;  %v6029_v8 = vld [vmem:[#allocation5 + $0xba8] sm:$0xf]  ;;  %v7114_v13 = vld [vmem:[#allocation5 + $0xbb4] sm:$0xf0]  ;;  %v5902_v11 = vor.u32 %v7082_v7, %v5901_v6 }
 0x15e   :  { %3774 = vmatpush.bf16.msrb.mxu2 %v5326_v9  ;;  %v5646_v9 = vor.u32 %v7018_v2, %v5645_v1  ;;  %v5629_v12 = vld [vmem:[#allocation5 + $0x888] sm:$0xf]  ;;  %v7014_v14 = vld [vmem:[#allocation5 + $0x894] sm:$0xf0]  ;;  %v6030_v17 = vor.u32 %v7114_v13, %v6029_v8 }
 0x15f   :  { %3787 = vmatpush.bf16.msrb.mxu3 %v5454_v15  ;;  %v5757_v15 = vld [vmem:[#allocation5 + $0x988] sm:$0xf]  ;;  %v7046_v21 = vld [vmem:[#allocation5 + $0x994] sm:$0xf0]  ;;  %v5630_v34 = vor.u32 %v7014_v14, %v5629_v12 }
 0x160   :  { %3749 = vmatpush.bf16.msrb.mxu0 %v5054_v36  ;;  %v5885_v24 = vld [vmem:[#allocation5 + $0xa88] sm:$0xf]  ;;  %v7078_v26 = vld [vmem:[#allocation5 + $0xa94] sm:$0xf0]  ;;  %v3543_v36 = vpop.f32.mrf.mxu0  ;;  %v5758_v37 = vor.u32 %v7046_v21, %v5757_v15 }
 0x161   :  { %3762 = vmatpush.bf16.msrb.mxu1 %v5182_v45  ;;  %v6013_v27 = vld [vmem:[#allocation5 + $0xb88] sm:$0xf]  ;;  %v7110_v32 = vld [vmem:[#allocation5 + $0xb94] sm:$0xf0]  ;;  %v5886_v39 = vor.u32 %v7078_v26, %v5885_v24  ;;  %v3544_v47 = vadd.f32 %v3543_v36, %v7661_v56  ;;  %v3556_v48 = vpop.f32.mrf.mxu1 }
 0x162   :  { %3775 = vmatpush.bf16.msrb.mxu2 %v5310_v46  ;;  %v5613_v43 = vld [vmem:[#allocation5 + $0x868] sm:$0xf]  ;;  %v7010_v45 = vld [vmem:[#allocation5 + $0x874] sm:$0xf0] }
 0x163   :  { %3788 = vmatpush.bf16.msrb.mxu3 %v5438_v49  ;;  %3750 = vmatmul.bf16.vlgmr.msrb.gmra.mxu0 %v7596_v41  ;;  %v5741_v46 = vld [vmem:[#allocation5 + $0x968] sm:$0xf]  ;;  %v6014_v49 = vor.u32 %v7110_v32, %v6013_v27  ;;  %v7106_v16 = vld [vmem:[#allocation5 + $0xb74] sm:$0xf0]  ;;  %v3557_v54 = vadd.f32 %v3556_v48, %v3544_v47 }
 0x164   :  { %3794 = vmatpush.bf16.msra.mxu0 %v5678_v50  ;;  %3763 = vmatmul.bf16.vlgmr.msrb.gmra.mxu1 %v7600_v44  ;;  %v7042_v50 = vld [vmem:[#allocation5 + $0x974] sm:$0xf0]  ;;  %v5997_v53 = vld [vmem:[#allocation5 + $0xb68] sm:$0xf] }
 0x165   :  { %3807 = vmatpush.bf16.msra.mxu1 %v5806_v51  ;;  %3776 = vmatmul.bf16.vlgmr.msrb.gmra.mxu2 %v7594_v38  ;;  %v5869_v51 = vld [vmem:[#allocation5 + $0xa68] sm:$0xf]  ;;  %v5742_v57 = vor.u32 %v7042_v50, %v5741_v46  ;;  %v7006_v62 = vld [vmem:[#allocation5 + $0x854] sm:$0xf0]  ;;  %v5998_v56 = vor.u32 %v7106_v16, %v5997_v53 }
 0x166   :  { %3820 = vmatpush.bf16.msra.mxu2 %v5934_v52  ;;  %3789 = vmatmul.bf16.vlgmr.msrb.gmra.mxu3 %v7598_v42  ;;  %v7074_v52 = vld [vmem:[#allocation5 + $0xa74] sm:$0xf0]  ;;  %v5597_v59 = vld [vmem:[#allocation5 + $0x848] sm:$0xf] }
 0x167   :  { %3833 = vmatpush.bf16.msra.mxu3 %v6062_v55  ;;  %v5614_v55 = vor.u32 %v7010_v45, %v5613_v43  ;;  %v5870_v58 = vor.u32 %v7074_v52, %v5869_v51  ;;  %v5725_v60 = vld [vmem:[#allocation5 + $0x948] sm:$0xf]  ;;  %v7070_v1 = vld [vmem:[#allocation5 + $0xa54] sm:$0xf0]  ;;  %v5598_v6 = vor.u32 %v7006_v62, %v5597_v59 }
 0x168   :  { %3795 = vmatpush.bf16.msra.mxu0 %v5662_v61  ;;  %v3569_v61 = vpop.f32.mrf.mxu2  ;;  %v7102_v5 = vld [vmem:[#allocation5 + $0xb54] sm:$0xf0]  ;;  %v3545_v8 = vpop.f32.mrf.mxu0  ;;  %v5709_v12 = vld [vmem:[#allocation5 + $0x928] sm:$0xf] }
 0x169   :  { %3808 = vmatpush.bf16.msra.mxu1 %v5790_v63  ;;  %v7038_v63 = vld [vmem:[#allocation5 + $0x954] sm:$0xf0]  ;;  %v3570_v2 = vadd.f32 %v3569_v61, %v3557_v54  ;;  %v3582_v3 = vpop.f32.mrf.mxu3  ;;  %v3558_v14 = vpop.f32.mrf.mxu1  ;;  %v5837_v21 = vld [vmem:[#allocation5 + $0xa28] sm:$0xf] }
 0x16a   :  { %3821 = vmatpush.bf16.msra.mxu2 %v5918_v0  ;;  %v5853_v0 = vld [vmem:[#allocation5 + $0xa48] sm:$0xf]  ;;  %v5726_v13 = vor.u32 %v7038_v63, %v5725_v60  ;;  %v7066_v24 = vld [vmem:[#allocation5 + $0xa34] sm:$0xf0] }
 0x16b   :  { %3834 = vmatpush.bf16.msra.mxu3 %v6046_v4  ;;  %v5981_v4 = vld [vmem:[#allocation5 + $0xb48] sm:$0xf]  ;;  %v7668_v7 = vadd.f32 %v3582_v3, %v3570_v2  ;;  %v7098_v27 = vld [vmem:[#allocation5 + $0xb34] sm:$0xf0] }
 0x16c   :  { %3796 = vmatpush.bf16.msra.mxu0 %v5646_v9  ;;  %v5854_v9 = vor.u32 %v7070_v1, %v5853_v0  ;;  %v5982_v15 = vor.u32 %v7102_v5, %v5981_v4  ;;  %v5965_v26 = vld [vmem:[#allocation5 + $0xb28] sm:$0xf]  ;;  %v6998_v36 = vld [vmem:[#allocation5 + $0x814] sm:$0xf0] }
 0x16d   :  { %3809 = vmatpush.bf16.msra.mxu1 %v5774_v10  ;;  %v5581_v10 = vld [vmem:[#allocation5 + $0x828] sm:$0xf]  ;;  %v7030_v45 = vld [vmem:[#allocation5 + $0x914] sm:$0xf0]  ;;  %v5966_v48 = vor.u32 %v7098_v27, %v5965_v26 }
 0x16e   :  { %3822 = vmatpush.bf16.msra.mxu2 %v5902_v11  ;;  %v7002_v11 = vld [vmem:[#allocation5 + $0x834] sm:$0xf0]  ;;  %v5693_v43 = vld [vmem:[#allocation5 + $0x908] sm:$0xf] }
 0x16f   :  { %3835 = vmatpush.bf16.msra.mxu3 %v6030_v17  ;;  %v7034_v17 = vld [vmem:[#allocation5 + $0x934] sm:$0xf0]  ;;  %v5582_v32 = vor.u32 %v7002_v11, %v5581_v10  ;;  %v5821_v46 = vld [vmem:[#allocation5 + $0xa08] sm:$0xf]  ;;  %v5694_v62 = vor.u32 %v7030_v45, %v5693_v43 }
 0x170   :  { %3797 = vmatpush.bf16.msra.mxu0 %v5630_v34  ;;  %v5565_v34 = vld [vmem:[#allocation5 + $0x808] sm:$0xf]  ;;  %v3571_v47 = vpop.f32.mrf.mxu2  ;;  %v7094_v51 = vld [vmem:[#allocation5 + $0xb14] sm:$0xf0] }
 0x171   :  { %3810 = vmatpush.bf16.msra.mxu1 %v5758_v37  ;;  %v5710_v37 = vor.u32 %v7034_v17, %v5709_v12  ;;  %v5949_v50 = vld [vmem:[#allocation5 + $0xb08] sm:$0xf]  ;;  %v3584_v52 = vpop.f32.mrf.mxu3  ;;  %v7154_v16 = vld [vmem:[#allocation5 + $0xcf4] sm:$0xf0] }
 0x172   :  { %3823 = vmatpush.bf16.msra.mxu2 %v5886_v39  ;;  %v5838_v39 = vor.u32 %v7066_v24, %v5837_v21  ;;  %v6189_v53 = vld [vmem:[#allocation5 + $0xce8] sm:$0xf]  ;;  %v7218_v59 = vld [vmem:[#allocation5 + $0xef4] sm:$0xf0]  ;;  %v5950_v63 = vor.u32 %v7094_v51, %v5949_v50 }
 0x173   :  { %3836 = vmatpush.bf16.msra.mxu3 %v6014_v49  ;;  %v7062_v49 = vld [vmem:[#allocation5 + $0xa14] sm:$0xf0]  ;;  %v6317_v54 = vld [vmem:[#allocation5 + $0xde8] sm:$0xf]  ;;  %v6190_v0 = vor.u32 %v7154_v16, %v6189_v53 }
 0x174   :  { %3798 = vmatpush.bf16.msra.mxu0 %v5614_v55  ;;  %v5566_v55 = vor.u32 %v6998_v36, %v5565_v34  ;;  %v5822_v60 = vor.u32 %v7062_v49, %v5821_v46  ;;  %v6573_v61 = vld [vmem:[#allocation5 + $0xfe8] sm:$0xf]  ;;  %v7150_v4 = vld [vmem:[#allocation5 + $0xcd4] sm:$0xf0] }
 0x175   :  { %3811 = vmatpush.bf16.msra.mxu1 %v5742_v57  ;;  %v7186_v57 = vld [vmem:[#allocation5 + $0xdf4] sm:$0xf0]  ;;  %v6173_v3 = vld [vmem:[#allocation5 + $0xcc8] sm:$0xf] }
 0x176   :  { %3824 = vmatpush.bf16.msra.mxu2 %v5870_v58  ;;  %v6445_v58 = vld [vmem:[#allocation5 + $0xee8] sm:$0xf]  ;;  %v6318_v1 = vor.u32 %v7186_v57, %v6317_v54  ;;  %v7182_v8 = vld [vmem:[#allocation5 + $0xdd4] sm:$0xf0]  ;;  %v6174_v12 = vor.u32 %v7150_v4, %v6173_v3 }
 0x177   :  { %3837 = vmatpush.bf16.msra.mxu3 %v5998_v56  ;;  %v7250_v56 = vld [vmem:[#allocation5 + $0xff4] sm:$0xf0]  ;;  %v6446_v2 = vor.u32 %v7218_v59, %v6445_v58  ;;  %v6301_v5 = vld [vmem:[#allocation5 + $0xdc8] sm:$0xf] }
 0x178   :  { %3799 = vmatpush.bf16.msra.mxu0 %v5598_v6  ;;  %v6574_v6 = vor.u32 %v7250_v56, %v6573_v61  ;;  %v6557_v10 = vld [vmem:[#allocation5 + $0xfc8] sm:$0xf]  ;;  %v7246_v11 = vld [vmem:[#allocation5 + $0xfd4] sm:$0xf0]  ;;  %v6302_v14 = vor.u32 %v7182_v8, %v6301_v5 }
 0x179   :  { %3812 = vmatpush.bf16.msra.mxu1 %v5726_v13  ;;  %v6429_v13 = vld [vmem:[#allocation5 + $0xec8] sm:$0xf]  ;;  %v7146_v21 = vld [vmem:[#allocation5 + $0xcb4] sm:$0xf0]  ;;  %v6558_v26 = vor.u32 %v7246_v11, %v6557_v10 }
 0x17a   :  { %3825 = vmatpush.bf16.msra.mxu2 %v5854_v9  ;;  %v7214_v9 = vld [vmem:[#allocation5 + $0xed4] sm:$0xf0]  ;;  %v6157_v17 = vld [vmem:[#allocation5 + $0xca8] sm:$0xf] }
 0x17b   :  { %3838 = vmatpush.bf16.msra.mxu3 %v5982_v15  ;;  %v6430_v15 = vor.u32 %v7214_v9, %v6429_v13  ;;  %v6285_v24 = vld [vmem:[#allocation5 + $0xda8] sm:$0xf]  ;;  %v7178_v27 = vld [vmem:[#allocation5 + $0xdb4] sm:$0xf0] }
 0x17c   :  { %3800 = vmatpush.bf16.msra.mxu0 %v5582_v32  ;;  %v6413_v32 = vld [vmem:[#allocation5 + $0xea8] sm:$0xf]  ;;  %v7210_v34 = vld [vmem:[#allocation5 + $0xeb4] sm:$0xf0]  ;;  %v6286_v43 = vor.u32 %v7178_v27, %v6285_v24 }
 0x17d   :  { %3813 = vmatpush.bf16.msra.mxu1 %v5710_v37  ;;  %v6541_v36 = vld [vmem:[#allocation5 + $0xfa8] sm:$0xf]  ;;  %v7242_v37 = vld [vmem:[#allocation5 + $0xfb4] sm:$0xf0]  ;;  %v6414_v45 = vor.u32 %v7210_v34, %v6413_v32 }
 0x17e   :  { %3826 = vmatpush.bf16.msra.mxu2 %v5838_v39  ;;  %v6158_v39 = vor.u32 %v7146_v21, %v6157_v17  ;;  %v6141_v46 = vld [vmem:[#allocation5 + $0xc88] sm:$0xf]  ;;  %v7142_v47 = vld [vmem:[#allocation5 + $0xc94] sm:$0xf0]  ;;  %v6542_v49 = vor.u32 %v7242_v37, %v6541_v36 }
 0x17f   :  { %3839 = vmatpush.bf16.msra.mxu3 %v5966_v48  ;;  %v6269_v48 = vld [vmem:[#allocation5 + $0xd88] sm:$0xf]  ;;  %v7174_v50 = vld [vmem:[#allocation5 + $0xd94] sm:$0xf0]  ;;  %v6142_v57 = vor.u32 %v7142_v47, %v6141_v46 }
 0x180   :  { %3801 = vmatpush.bf16.msra.mxu0 %v5566_v55  ;;  %v6397_v51 = vld [vmem:[#allocation5 + $0xe88] sm:$0xf]  ;;  %v7206_v52 = vld [vmem:[#allocation5 + $0xe94] sm:$0xf0]  ;;  %v3595_v53 = vpop.f32.mrf.mxu0  ;;  %v6270_v59 = vor.u32 %v7174_v50, %v6269_v48 }
 0x181   :  { %3814 = vmatpush.bf16.msra.mxu1 %v5694_v62  ;;  %v6525_v16 = vld [vmem:[#allocation5 + $0xf88] sm:$0xf]  ;;  %v7238_v54 = vld [vmem:[#allocation5 + $0xf94] sm:$0xf0]  ;;  %v3596_v55 = vadd.f32 %v3595_v53, %v7668_v7  ;;  %v3608_v58 = vpop.f32.mrf.mxu1  ;;  %v6398_v62 = vor.u32 %v7206_v52, %v6397_v51 }
 0x182   :  { %3827 = vmatpush.bf16.msra.mxu2 %v5822_v60  ;;  %v6125_v60 = vld [vmem:[#allocation5 + $0xc68] sm:$0xf]  ;;  %v7138_v61 = vld [vmem:[#allocation5 + $0xc74] sm:$0xf0] }
 0x183   :  { %3840 = vmatpush.bf16.msra.mxu3 %v5950_v63  ;;  %3802 = vmatmul.bf16.vlgmr.msra.gmra.mxu0 %v7606_v25  ;;  %v6253_v56 = vld [vmem:[#allocation5 + $0xd68] sm:$0xf]  ;;  %v6526_v63 = vor.u32 %v7238_v54, %v6525_v16  ;;  %v7202_v3 = vld [vmem:[#allocation5 + $0xe74] sm:$0xf0] }
 0x184   :  { %3846 = vmatpush.bf16.msrb.mxu0 %v6190_v0  ;;  %3815 = vmatmul.bf16.vlgmr.msra.gmra.mxu1 %v7610_v30  ;;  %v3609_v0 = vadd.f32 %v3608_v58, %v3596_v55  ;;  %v6509_v4 = vld [vmem:[#allocation5 + $0xf68] sm:$0xf]  ;;  %v7234_v5 = vld [vmem:[#allocation5 + $0xf74] sm:$0xf0] }
 0x185   :  { %3859 = vmatpush.bf16.msrb.mxu1 %v6318_v1  ;;  %3828 = vmatmul.bf16.vlgmr.msra.gmra.mxu2 %v7608_v29  ;;  %v7170_v1 = vld [vmem:[#allocation5 + $0xd74] sm:$0xf0]  ;;  %v6109_v13 = vld [vmem:[#allocation5 + $0xc48] sm:$0xf]  ;;  %v6510_v11 = vor.u32 %v7234_v5, %v6509_v4  ;;  %v6800_v4 = vld [vmem:[#allocation5 + $0x1ec] sm:$0xf] }
 0x186   :  { %3872 = vmatpush.bf16.msrb.mxu2 %v6446_v2  ;;  %3841 = vmatmul.bf16.vlgmr.msra.gmra.mxu3 %v7612_v33  ;;  %v6381_v2 = vld [vmem:[#allocation5 + $0xe68] sm:$0xf]  ;;  %v6254_v7 = vor.u32 %v7170_v1, %v6253_v56  ;;  %v7134_v9 = vld [vmem:[#allocation5 + $0xc54] sm:$0xf0] }
 0x187   :  { %3885 = vmatpush.bf16.msrb.mxu3 %v6574_v6  ;;  %v6126_v6 = vor.u32 %v7138_v61, %v6125_v60  ;;  %v6382_v8 = vor.u32 %v7202_v3, %v6381_v2  ;;  %v6237_v10 = vld [vmem:[#allocation5 + $0xd48] sm:$0xf]  ;;  %v7198_v17 = vld [vmem:[#allocation5 + $0xe54] sm:$0xf0]  ;;  %v6110_v34 = vor.u32 %v7134_v9, %v6109_v13  ;;  %v6768_v2 = vld [vmem:[#allocation5 + $0xec] sm:$0xf] }
 0x188   :  { %3847 = vmatpush.bf16.msrb.mxu0 %v6174_v12  ;;  %v3621_v12 = vpop.f32.mrf.mxu2  ;;  %v7230_v27 = vld [vmem:[#allocation5 + $0xf54] sm:$0xf0]  ;;  %v3597_v32 = vpop.f32.mrf.mxu0  ;;  %v6221_v47 = vld [vmem:[#allocation5 + $0xd28] sm:$0xf]  ;;  %v4655_v3 = vld [vmem:[#allocation5 + $0xf8] sm:$0xf0] }
 0x189   :  { %3860 = vmatpush.bf16.msrb.mxu1 %v6302_v14  ;;  %v7166_v14 = vld [vmem:[#allocation5 + $0xd54] sm:$0xf0]  ;;  %v3622_v21 = vadd.f32 %v3621_v12, %v3609_v0  ;;  %v3634_v24 = vpop.f32.mrf.mxu3  ;;  %v3610_v36 = vpop.f32.mrf.mxu1  ;;  %v6349_v50 = vld [vmem:[#allocation5 + $0xe28] sm:$0xf]  ;;  %v4911_v13 = vld [vmem:[#allocation5 + $0x2f8] sm:$0xf0] }
 0x18a   :  { %3873 = vmatpush.bf16.msrb.mxu2 %v6430_v15  ;;  %v6365_v15 = vld [vmem:[#allocation5 + $0xe48] sm:$0xf]  ;;  %v7130_v46 = vld [vmem:[#allocation5 + $0xc34] sm:$0xf0]  ;;  %v5039_v12 = vld [vmem:[#allocation5 + $0x3f8] sm:$0xf0] }
 0x18b   :  { %3886 = vmatpush.bf16.msrb.mxu3 %v6558_v26  ;;  %v6493_v26 = vld [vmem:[#allocation5 + $0xf48] sm:$0xf]  ;;  %v7675_v37 = vadd.f32 %v3634_v24, %v3622_v21  ;;  %v7194_v51 = vld [vmem:[#allocation5 + $0xe34] sm:$0xf0]  ;;  %v6764_v24 = vld [vmem:[#allocation5 + $0xcc] sm:$0xf] }
 0x18c   :  { %3848 = vmatpush.bf16.msrb.mxu0 %v6158_v39  ;;  %v6238_v39 = vor.u32 %v7166_v14, %v6237_v10  ;;  %v6494_v48 = vor.u32 %v7230_v27, %v6493_v26  ;;  %v6477_v52 = vld [vmem:[#allocation5 + $0xf28] sm:$0xf]  ;;  %v7226_v53 = vld [vmem:[#allocation5 + $0xf34] sm:$0xf0]  ;;  %v6350_v58 = vor.u32 %v7194_v51, %v6349_v50  ;;  %v4639_v26 = vld [vmem:[#allocation5 + $0xd8] sm:$0xf0] }
 0x18d   :  { %3861 = vmatpush.bf16.msrb.mxu1 %v6286_v43  ;;  %v6366_v43 = vor.u32 %v7198_v17, %v6365_v15  ;;  %v6077_v54 = vld [vmem:[#allocation5 + $0xc08] sm:$0xf]  ;;  %v7126_v55 = vld [vmem:[#allocation5 + $0xc14] sm:$0xf0]  ;;  %v6478_v61 = vor.u32 %v7226_v53, %v6477_v52  ;;  %v4658_v15 = vor.u32 %v6768_v2, %v4655_v3  ;;  %v6796_v27 = vld [vmem:[#allocation5 + $0x1cc] sm:$0xf] }
 0x18e   :  { %3874 = vmatpush.bf16.msrb.mxu2 %v6414_v45  ;;  %v6093_v45 = vld [vmem:[#allocation5 + $0xc28] sm:$0xf]  ;;  %v7190_v56 = vld [vmem:[#allocation5 + $0xe14] sm:$0xf0]  ;;  %v6828_v36 = vld [vmem:[#allocation5 + $0x2cc] sm:$0xf] }
 0x18f   :  { %3887 = vmatpush.bf16.msrb.mxu3 %v6542_v49  ;;  %v7162_v49 = vld [vmem:[#allocation5 + $0xd34] sm:$0xf0]  ;;  %v6094_v16 = vor.u32 %v7130_v46, %v6093_v45  ;;  %v6333_v60 = vld [vmem:[#allocation5 + $0xe08] sm:$0xf]  ;;  %v5023_v45 = vld [vmem:[#allocation5 + $0x3d8] sm:$0xf0]  ;;  %v4642_v46 = vor.u32 %v6764_v24, %v4639_v26 }
 0x190   :  { %3849 = vmatpush.bf16.msrb.mxu0 %v6142_v57  ;;  %v6222_v57 = vor.u32 %v7162_v49, %v6221_v47  ;;  %v7222_v0 = vld [vmem:[#allocation5 + $0xf14] sm:$0xf0]  ;;  %v3623_v1 = vpop.f32.mrf.mxu2  ;;  %v6334_v10 = vor.u32 %v7190_v56, %v6333_v60  ;;  %v6760_v49 = vld [vmem:[#allocation5 + $0xac] sm:$0xf]  ;;  %v4623_v50 = vld [vmem:[#allocation5 + $0xb8] sm:$0xf0] }
 0x191   :  { %3862 = vmatpush.bf16.msrb.mxu1 %v6270_v59  ;;  %v6205_v59 = vld [vmem:[#allocation5 + $0xd08] sm:$0xf]  ;;  %v3636_v5 = vpop.f32.mrf.mxu3  ;;  %v6792_v51 = vld [vmem:[#allocation5 + $0x1ac] sm:$0xf]  ;;  %v4751_v53 = vld [vmem:[#allocation5 + $0x1b8] sm:$0xf0] }
 0x192   :  { %3875 = vmatpush.bf16.msrb.mxu2 %v6398_v62  ;;  %v7158_v62 = vld [vmem:[#allocation5 + $0xd14] sm:$0xf0]  ;;  %v6756_v60 = vld [vmem:[#allocation5 + $0x8c] sm:$0xf]  ;;  %v4863_v2 = vld [vmem:[#allocation5 + $0x298] sm:$0xf0] }
 0x193   :  { %3888 = vmatpush.bf16.msrb.mxu3 %v6526_v63  ;;  %v6461_v63 = vld [vmem:[#allocation5 + $0xf08] sm:$0xf]  ;;  %v6206_v9 = vor.u32 %v7158_v62, %v6205_v59  ;;  %v4754_v59 = vor.u32 %v6792_v51, %v4751_v53  ;;  %v6788_v56 = vld [vmem:[#allocation5 + $0x18c] sm:$0xf]  ;;  %v4991_v5 = vld [vmem:[#allocation5 + $0x398] sm:$0xf0] }
 0x194   :  { %3850 = vmatpush.bf16.msrb.mxu0 %v6126_v6  ;;  %v6078_v6 = vor.u32 %v7126_v55, %v6077_v54  ;;  %v6462_v14 = vor.u32 %v7222_v0, %v6461_v63  ;;  %v4879_v54 = vld [vmem:[#allocation5 + $0x2b8] sm:$0xf0]  ;;  %v6856_v55 = vld [vmem:[#allocation5 + $0x3ac] sm:$0xf] }
 0x195   :  { %3863 = vmatpush.bf16.msrb.mxu1 %v6254_v7  ;;  %v4783_v7 = vld [vmem:[#allocation5 + $0x1f8] sm:$0xf0]  ;;  %v6820_v1 = vld [vmem:[#allocation5 + $0x28c] sm:$0xf] }
 0x196   :  { %3876 = vmatpush.bf16.msrb.mxu2 %v6382_v8  ;;  %v6832_v8 = vld [vmem:[#allocation5 + $0x2ec] sm:$0xf]  ;;  %v4786_v17 = vor.u32 %v6800_v4, %v4783_v7  ;;  %v4735_v0 = vld [vmem:[#allocation5 + $0x198] sm:$0xf0] }
 0x197   :  { %3889 = vmatpush.bf16.msrb.mxu3 %v6510_v11  ;;  %v6864_v11 = vld [vmem:[#allocation5 + $0x3ec] sm:$0xf]  ;;  %v4914_v21 = vor.u32 %v6832_v8, %v4911_v13  ;;  %v4738_v13 = vor.u32 %v6788_v56, %v4735_v0  ;;  %v4847_v24 = vld [vmem:[#allocation5 + $0x278] sm:$0xf0] }
 0x198   :  { %3851 = vmatpush.bf16.msrb.mxu0 %v6110_v34  ;;  %v5042_v32 = vor.u32 %v6864_v11, %v5039_v12  ;;  %v4767_v34 = vld [vmem:[#allocation5 + $0x1d8] sm:$0xf0]  ;;  %v6852_v4 = vld [vmem:[#allocation5 + $0x38c] sm:$0xf] }
 0x199   :  { %3864 = vmatpush.bf16.msrb.mxu1 %v6238_v39  ;;  %v4895_v39 = vld [vmem:[#allocation5 + $0x2d8] sm:$0xf0]  ;;  %v4770_v47 = vor.u32 %v6796_v27, %v4767_v34  ;;  %v6784_v12 = vld [vmem:[#allocation5 + $0x16c] sm:$0xf] }
 0x19a   :  { %3877 = vmatpush.bf16.msrb.mxu2 %v6366_v43  ;;  %v6860_v43 = vld [vmem:[#allocation5 + $0x3cc] sm:$0xf]  ;;  %v4591_v11 = vld [vmem:[#allocation5 + $0x78] sm:$0xf0] }
 0x19b   :  { %3890 = vmatpush.bf16.msrb.mxu3 %v6494_v48  ;;  %v4898_v48 = vor.u32 %v6828_v36, %v4895_v39  ;;  %v5026_v52 = vor.u32 %v6860_v43, %v5023_v45  ;;  %v6848_v26 = vld [vmem:[#allocation5 + $0x36c] sm:$0xf]  ;;  %v4975_v27 = vld [vmem:[#allocation5 + $0x378] sm:$0xf0] }
 0x19c   :  { %3852 = vmatpush.bf16.msrb.mxu0 %v6094_v16  ;;  %v6824_v16 = vld [vmem:[#allocation5 + $0x2ac] sm:$0xf]  ;;  %v4575_v39 = vld [vmem:[#allocation5 + $0x58] sm:$0xf0]  ;;  %v4978_v45 = vor.u32 %v6848_v26, %v4975_v27 }
 0x19d   :  { %3865 = vmatpush.bf16.msrb.mxu1 %v6222_v57  ;;  %v5007_v57 = vld [vmem:[#allocation5 + $0x3b8] sm:$0xf0]  ;;  %v4882_v62 = vor.u32 %v6824_v16, %v4879_v54  ;;  %v6748_v36 = vld [vmem:[#allocation5 + $0x4c] sm:$0xf] }
 0x19e   :  { %3878 = vmatpush.bf16.msrb.mxu2 %v6350_v58  ;;  %v4626_v58 = vor.u32 %v6760_v49, %v4623_v50  ;;  %v5010_v63 = vor.u32 %v6856_v55, %v5007_v57  ;;  %v6780_v43 = vld [vmem:[#allocation5 + $0x14c] sm:$0xf]  ;;  %v4831_v49 = vld [vmem:[#allocation5 + $0x258] sm:$0xf0]  ;;  %v4578_v54 = vor.u32 %v6748_v36, %v4575_v39 }
 0x19f   :  { %3891 = vmatpush.bf16.msrb.mxu3 %v6478_v61  ;;  %v4607_v61 = vld [vmem:[#allocation5 + $0x98] sm:$0xf0]  ;;  %v6808_v0 = vld [vmem:[#allocation5 + $0x22c] sm:$0xf] }
 0x1a0   :  { %3853 = vmatpush.bf16.msrb.mxu0 %v6078_v6  ;;  %v3647_v3 = vpop.f32.mrf.mxu0  ;;  %v4610_v7 = vor.u32 %v6756_v60, %v4607_v61  ;;  %v4959_v53 = vld [vmem:[#allocation5 + $0x358] sm:$0xf0]  ;;  %v6776_v61 = vld [vmem:[#allocation5 + $0x12c] sm:$0xf] }
 0x1a1   :  { %3866 = vmatpush.bf16.msrb.mxu1 %v6206_v9  ;;  %v3648_v6 = vadd.f32 %v3647_v3, %v7675_v37  ;;  %v3660_v8 = vpop.f32.mrf.mxu1  ;;  %v4866_v9 = vor.u32 %v6820_v1, %v4863_v2  ;;  %v4559_v60 = vld [vmem:[#allocation5 + $0x38] sm:$0xf0]  ;;  %v6840_v2 = vld [vmem:[#allocation5 + $0x32c] sm:$0xf] }
 0x1a2   :  { %3879 = vmatpush.bf16.msrb.mxu2 %v6334_v10  ;;  %v6752_v10 = vld [vmem:[#allocation5 + $0x6c] sm:$0xf]  ;;  %v4815_v1 = vld [vmem:[#allocation5 + $0x238] sm:$0xf0] }
 0x1a3   :  { %3892 = vmatpush.bf16.msrb.mxu3 %v6462_v14  ;;  %3854 = vmatmul.bf16.vlgmr.msrb.gmra.mxu0 %v7618_v23  ;;  %v4994_v14 = vor.u32 %v6852_v4, %v4991_v5  ;;  %v4943_v3 = vld [vmem:[#allocation5 + $0x338] sm:$0xf0]  ;;  %v6740_v5 = vld [vmem:[#allocation5 + $0xc] sm:$0xf] }
 0x1a4   :  { %3898 = vmatpush.bf16.msra.mxu0 %v4658_v15  ;;  %3867 = vmatmul.bf16.vlgmr.msrb.gmra.mxu1 %v7622_v31  ;;  %v3661_v15 = vadd.f32 %v3660_v8, %v3648_v6  ;;  %v4543_v6 = vld [vmem:[#allocation5 + $0x18] sm:$0xf0]  ;;  %v4818_v8 = vor.u32 %v6808_v0, %v4815_v1  ;;  %v6928_v26 = vld [vmem:[#allocation5 + $0x5ec] sm:$0xf] }
 0x1a5   :  { %3911 = vmatpush.bf16.msra.mxu1 %v4786_v17  ;;  %3880 = vmatmul.bf16.vlgmr.msrb.gmra.mxu2 %v7620_v28  ;;  %v4719_v17 = vld [vmem:[#allocation5 + $0x178] sm:$0xf0]  ;;  %v6920_v1 = vld [vmem:[#allocation5 + $0x5ac] sm:$0xf] }
 0x1a6   :  { %3924 = vmatpush.bf16.msra.mxu2 %v4914_v21  ;;  %3893 = vmatmul.bf16.vlgmr.msrb.gmra.mxu3 %v7624_v35  ;;  %v6816_v21 = vld [vmem:[#allocation5 + $0x26c] sm:$0xf]  ;;  %v4722_v37 = vor.u32 %v6784_v12, %v4719_v17  ;;  %v4799_v12 = vld [vmem:[#allocation5 + $0x218] sm:$0xf0] }
 0x1a7   :  { %3937 = vmatpush.bf16.msra.mxu3 %v5042_v32  ;;  %v4594_v32 = vor.u32 %v6752_v10, %v4591_v11  ;;  %v4850_v34 = vor.u32 %v6816_v21, %v4847_v24  ;;  %v6804_v10 = vld [vmem:[#allocation5 + $0x20c] sm:$0xf]  ;;  %v4946_v11 = vor.u32 %v6840_v2, %v4943_v3  ;;  %v5167_v24 = vld [vmem:[#allocation5 + $0x4f8] sm:$0xf0] }
 0x1a8   :  { %3899 = vmatpush.bf16.msra.mxu0 %v4642_v46  ;;  %v3673_v46 = vpop.f32.mrf.mxu2  ;;  %v3649_v16 = vpop.f32.mrf.mxu0  ;;  %v6896_v21 = vld [vmem:[#allocation5 + $0x4ec] sm:$0xf]  ;;  %v5423_v36 = vld [vmem:[#allocation5 + $0x6f8] sm:$0xf0] }
 0x1a9   :  { %3912 = vmatpush.bf16.msra.mxu1 %v4770_v47  ;;  %v4703_v47 = vld [vmem:[#allocation5 + $0x158] sm:$0xf0]  ;;  %v3674_v50 = vadd.f32 %v3673_v46, %v3661_v15  ;;  %v3686_v51 = vpop.f32.mrf.mxu3  ;;  %v3662_v55 = vpop.f32.mrf.mxu1 }
 0x1aa   :  { %3925 = vmatpush.bf16.msra.mxu2 %v4898_v48  ;;  %v6812_v48 = vld [vmem:[#allocation5 + $0x24c] sm:$0xf]  ;;  %v4927_v15 = vld [vmem:[#allocation5 + $0x318] sm:$0xf0] }
 0x1ab   :  { %3938 = vmatpush.bf16.msra.mxu3 %v5026_v52  ;;  %v6844_v52 = vld [vmem:[#allocation5 + $0x34c] sm:$0xf]  ;;  %v7682_v57 = vadd.f32 %v3686_v51, %v3674_v50  ;;  %v5551_v46 = vld [vmem:[#allocation5 + $0x7f8] sm:$0xf0] }
 0x1ac   :  { %3900 = vmatpush.bf16.msra.mxu0 %v4626_v58  ;;  %v4706_v58 = vor.u32 %v6780_v43, %v4703_v47  ;;  %v4962_v56 = vor.u32 %v6844_v52, %v4959_v53  ;;  %v4802_v43 = vor.u32 %v6804_v10, %v4799_v12  ;;  %v6892_v51 = vld [vmem:[#allocation5 + $0x4cc] sm:$0xf]  ;;  %v5151_v52 = vld [vmem:[#allocation5 + $0x4d8] sm:$0xf0] }
 0x1ad   :  { %3913 = vmatpush.bf16.msra.mxu1 %v4754_v59  ;;  %v4834_v59 = vor.u32 %v6812_v48, %v4831_v49  ;;  %v5170_v48 = vor.u32 %v6896_v21, %v5167_v24  ;;  %v6924_v53 = vld [vmem:[#allocation5 + $0x5cc] sm:$0xf]  ;;  %v5135_v0 = vld [vmem:[#allocation5 + $0x4b8] sm:$0xf0] }
 0x1ae   :  { %3926 = vmatpush.bf16.msra.mxu2 %v4882_v62  ;;  %v6744_v62 = vld [vmem:[#allocation5 + $0x2c] sm:$0xf]  ;;  %v5263_v3 = vld [vmem:[#allocation5 + $0x5b8] sm:$0xf0] }
 0x1af   :  { %3939 = vmatpush.bf16.msra.mxu3 %v5010_v63  ;;  %v4687_v63 = vld [vmem:[#allocation5 + $0x138] sm:$0xf0]  ;;  %v4562_v4 = vor.u32 %v6744_v62, %v4559_v60  ;;  %v6956_v55 = vld [vmem:[#allocation5 + $0x6cc] sm:$0xf]  ;;  %v5154_v60 = vor.u32 %v6892_v51, %v5151_v52 }
 0x1b0   :  { %3901 = vmatpush.bf16.msra.mxu0 %v4610_v7  ;;  %v4690_v7 = vor.u32 %v6776_v61, %v4687_v63  ;;  %v3675_v17 = vpop.f32.mrf.mxu2  ;;  %v5535_v62 = vld [vmem:[#allocation5 + $0x7d8] sm:$0xf0]  ;;  %v6888_v63 = vld [vmem:[#allocation5 + $0x4ac] sm:$0xf] }
 0x1b1   :  { %3914 = vmatpush.bf16.msra.mxu1 %v4738_v13  ;;  %v6772_v13 = vld [vmem:[#allocation5 + $0x10c] sm:$0xf]  ;;  %v3688_v27 = vpop.f32.mrf.mxu3  ;;  %v5503_v24 = vld [vmem:[#allocation5 + $0x798] sm:$0xf0] }
 0x1b2   :  { %3927 = vmatpush.bf16.msra.mxu2 %v4866_v9  ;;  %v4671_v9 = vld [vmem:[#allocation5 + $0x118] sm:$0xf0]  ;;  %v6916_v12 = vld [vmem:[#allocation5 + $0x58c] sm:$0xf] }
 0x1b3   :  { %3940 = vmatpush.bf16.msra.mxu3 %v4994_v14  ;;  %v6836_v14 = vld [vmem:[#allocation5 + $0x30c] sm:$0xf]  ;;  %v4674_v39 = vor.u32 %v6772_v13, %v4671_v9  ;;  %v5266_v9 = vor.u32 %v6920_v1, %v5263_v3 }
 0x1b4   :  { %3902 = vmatpush.bf16.msra.mxu0 %v4594_v32  ;;  %v4546_v32 = vor.u32 %v6740_v5, %v4543_v6  ;;  %v4930_v47 = vor.u32 %v6836_v14, %v4927_v15  ;;  %v5391_v5 = vld [vmem:[#allocation5 + $0x6b8] sm:$0xf0]  ;;  %v6984_v6 = vld [vmem:[#allocation5 + $0x7ac] sm:$0xf]  ;;  %v7688_v14 = vld [vmem:[#allocation7] sm:$0xf] }
 0x1b5   :  { %3915 = vmatpush.bf16.msra.mxu1 %v4722_v37  ;;  %v5295_v37 = vld [vmem:[#allocation5 + $0x5f8] sm:$0xf0]  ;;  %v6884_v13 = vld [vmem:[#allocation5 + $0x48c] sm:$0xf] }
 0x1b6   :  { %3928 = vmatpush.bf16.msra.mxu2 %v4850_v34  ;;  %v6960_v34 = vld [vmem:[#allocation5 + $0x6ec] sm:$0xf]  ;;  %v5298_v49 = vor.u32 %v6928_v26, %v5295_v37 }
 0x1b7   :  { %3941 = vmatpush.bf16.msra.mxu3 %v4978_v45  ;;  %v6992_v45 = vld [vmem:[#allocation5 + $0x7ec] sm:$0xf]  ;;  %v5426_v50 = vor.u32 %v6960_v34, %v5423_v36  ;;  %v5103_v34 = vld [vmem:[#allocation5 + $0x478] sm:$0xf0] }
 0x1b8   :  { %3903 = vmatpush.bf16.msra.mxu0 %v4578_v54  ;;  %v5554_v16 = vor.u32 %v6992_v45, %v5551_v46  ;;  %v5279_v54 = vld [vmem:[#allocation5 + $0x5d8] sm:$0xf0]  ;;  %v6948_v17 = vld [vmem:[#allocation5 + $0x68c] sm:$0xf] }
 0x1b9   :  { %3916 = vmatpush.bf16.msra.mxu1 %v4706_v58  ;;  %v5407_v58 = vld [vmem:[#allocation5 + $0x6d8] sm:$0xf0]  ;;  %v5282_v61 = vor.u32 %v6924_v53, %v5279_v54  ;;  %v6980_v21 = vld [vmem:[#allocation5 + $0x78c] sm:$0xf] }
 0x1ba   :  { %3929 = vmatpush.bf16.msra.mxu2 %v4834_v59  ;;  %v6988_v59 = vld [vmem:[#allocation5 + $0x7cc] sm:$0xf]  ;;  %v5506_v45 = vor.u32 %v6980_v21, %v5503_v24  ;;  %v5231_v46 = vld [vmem:[#allocation5 + $0x578] sm:$0xf0] }
 0x1bb   :  { %3942 = vmatpush.bf16.msra.mxu3 %v4962_v56  ;;  %v5410_v56 = vor.u32 %v6956_v55, %v5407_v58  ;;  %v5538_v2 = vor.u32 %v6988_v59, %v5535_v62  ;;  %v6880_v37 = vld [vmem:[#allocation5 + $0x46c] sm:$0xf]  ;;  %v5087_v55 = vld [vmem:[#allocation5 + $0x458] sm:$0xf0] }
 0x1bc   :  { %3904 = vmatpush.bf16.msra.mxu0 %v4562_v4  ;;  %v6952_v4 = vld [vmem:[#allocation5 + $0x6ac] sm:$0xf]  ;;  %v5106_v52 = vor.u32 %v6880_v37, %v5103_v34  ;;  %v5055_v24 = vld [vmem:[#allocation5 + $0x418] sm:$0xf0] }
 0x1bd   :  { %3917 = vmatpush.bf16.msra.mxu1 %v4690_v7  ;;  %v5519_v7 = vld [vmem:[#allocation5 + $0x7b8] sm:$0xf0]  ;;  %v5394_v10 = vor.u32 %v6952_v4, %v5391_v5  ;;  %v6912_v36 = vld [vmem:[#allocation5 + $0x56c] sm:$0xf] }
 0x1be   :  { %3930 = vmatpush.bf16.msra.mxu2 %v4818_v8  ;;  %v5138_v8 = vor.u32 %v6888_v63, %v5135_v0  ;;  %v5522_v15 = vor.u32 %v6984_v6, %v5519_v7  ;;  %v5234_v53 = vor.u32 %v6912_v36, %v5231_v46  ;;  %v6876_v54 = vld [vmem:[#allocation5 + $0x44c] sm:$0xf] }
 0x1bf   :  { %3943 = vmatpush.bf16.msra.mxu3 %v4946_v11  ;;  %v5119_v11 = vld [vmem:[#allocation5 + $0x498] sm:$0xf0]  ;;  %v6908_v58 = vld [vmem:[#allocation5 + $0x54c] sm:$0xf]  ;;  %v5090_v3 = vor.u32 %v6876_v54, %v5087_v55 }
 0x1c0   :  { %3905 = vmatpush.bf16.msra.mxu0 %v4546_v32  ;;  %v5122_v26 = vor.u32 %v6884_v13, %v5119_v11  ;;  %v6972_v1 = vld [vmem:[#allocation5 + $0x74c] sm:$0xf]  ;;  %v5071_v13 = vld [vmem:[#allocation5 + $0x438] sm:$0xf0] }
 0x1c1   :  { %3918 = vmatpush.bf16.msra.mxu1 %v4674_v39  ;;  %v6868_v21 = vld [vmem:[#allocation5 + $0x40c] sm:$0xf] }
 0x1c2   :  { %3931 = vmatpush.bf16.msra.mxu2 %v4802_v43  ;;  %v3712_v43 = vpop.f32.mrf.mxu1  ;;  %v6932_v37 = vld [vmem:[#allocation5 + $0x60c] sm:$0xf] }
 0x1c3   :  { %3944 = vmatpush.bf16.msra.mxu3 %v4930_v47  ;;  %3906 = vmatmul.bf16.vlgmr.msra.gmra.mxu0 %v7584_v19  ;;  %v5247_v19 = vld [vmem:[#allocation5 + $0x598] sm:$0xf0]  ;;  %v6944_v47 = vld [vmem:[#allocation5 + $0x66c] sm:$0xf] }
 0x1c4   :  { %3950 = vmatpush.bf16.msrb.mxu0 %v5170_v48  ;;  %3919 = vmatmul.bf16.vlgmr.msra.gmra.mxu1 %v7588_v22  ;;  %v3699_v22 = vpop.f32.mrf.mxu0  ;;  %v5250_v27 = vor.u32 %v6916_v12, %v5247_v19  ;;  %v5359_v48 = vld [vmem:[#allocation5 + $0x678] sm:$0xf0]  ;;  %v6968_v19 = vld [vmem:[#allocation5 + $0x72c] sm:$0xf] }
 0x1c5   :  { %3963 = vmatpush.bf16.msrb.mxu1 %v5298_v49  ;;  %3932 = vmatmul.bf16.vlgmr.msra.gmra.mxu2 %v7582_v18  ;;  %v652_v18 = vperm.slane %v7688_v14, 2  ;;  %v6976_v49 = vld [vmem:[#allocation5 + $0x76c] sm:$0xf]  ;;  %v5199_v12 = vld [vmem:[#allocation5 + $0x538] sm:$0xf0] }
 0x1c6   :  { %3976 = vmatpush.bf16.msrb.mxu2 %v5426_v50  ;;  %3945 = vmatmul.bf16.vlgmr.msra.gmra.mxu3 %v7586_v20  ;;  %v5375_v20 = vld [vmem:[#allocation5 + $0x698] sm:$0xf0]  ;;  %v7120_v55 = vld [vmem:[#allocation5 + $0xbec] sm:$0xf] }
 0x1c7   :  { %3989 = vmatpush.bf16.msrb.mxu3 %v5554_v16  ;;  %v5378_v32 = vor.u32 %v6948_v17, %v5375_v20  ;;  %v3700_v39 = vadd.f32 %v3699_v22, %v652_v18  ;;  %v5487_v50 = vld [vmem:[#allocation5 + $0x778] sm:$0xf0]  ;;  %v5362_v16 = vor.u32 %v6944_v47, %v5359_v48  ;;  %v6936_v18 = vld [vmem:[#allocation5 + $0x62c] sm:$0xf] }
 0x1c8   :  { %3951 = vmatpush.bf16.msrb.mxu0 %v5154_v60  ;;  %v3725_v59 = vpop.f32.mrf.mxu2  ;;  %v5490_v62 = vor.u32 %v6976_v49, %v5487_v50  ;;  %v5215_v60 = vld [vmem:[#allocation5 + $0x558] sm:$0xf0]  ;;  %v7024_v47 = vld [vmem:[#allocation5 + $0x8ec] sm:$0xf]  ;;  %v5058_v50 = vor.u32 %v6868_v21, %v5055_v24 }
 0x1c9   :  { %3964 = vmatpush.bf16.msrb.mxu1 %v5282_v61  ;;  %v3713_v51 = vadd.f32 %v3712_v43, %v3700_v39  ;;  %v6940_v61 = vld [vmem:[#allocation5 + $0x64c] sm:$0xf]  ;;  %v3738_v0 = vpop.f32.mrf.mxu3  ;;  %v5218_v6 = vor.u32 %v6908_v58, %v5215_v60  ;;  %v5455_v17 = vld [vmem:[#allocation5 + $0x738] sm:$0xf0] }
 0x1ca   :  { %3977 = vmatpush.bf16.msrb.mxu2 %v5410_v56  ;;  %v5343_v56 = vld [vmem:[#allocation5 + $0x658] sm:$0xf0]  ;;  %v5458_v36 = vor.u32 %v6968_v19, %v5455_v17  ;;  %v6964_v43 = vld [vmem:[#allocation5 + $0x70c] sm:$0xf] }
 0x1cb   :  { %3990 = vmatpush.bf16.msrb.mxu3 %v5538_v2  ;;  %v3726_v63 = vadd.f32 %v3725_v59, %v3713_v51  ;;  %v5471_v2 = vld [vmem:[#allocation5 + $0x758] sm:$0xf0]  ;;  %v5346_v7 = vor.u32 %v6940_v61, %v5343_v56  ;;  %v7056_v49 = vld [vmem:[#allocation5 + $0x9ec] sm:$0xf] }
 0x1cc   :  { %3952 = vmatpush.bf16.msrb.mxu0 %v5138_v8  ;;  %v3701_v5 = vpop.f32.mrf.mxu0  ;;  %v6872_v8 = vld [vmem:[#allocation5 + $0x42c] sm:$0xf]  ;;  %v5474_v11 = vor.u32 %v6972_v1, %v5471_v2  ;;  %v5311_v39 = vld [vmem:[#allocation5 + $0x618] sm:$0xf0] }
 0x1cd   :  { %3965 = vmatpush.bf16.msrb.mxu1 %v5266_v9  ;;  %v7691_v4 = vadd.f32 %v3738_v0, %v3726_v63  ;;  %v6904_v9 = vld [vmem:[#allocation5 + $0x52c] sm:$0xf]  ;;  %v5074_v20 = vor.u32 %v6872_v8, %v5071_v13  ;;  %v5679_v48 = vld [vmem:[#allocation5 + $0x8f8] sm:$0xf0]  ;;  %v5314_v54 = vor.u32 %v6932_v37, %v5311_v39 }
 0x1ce   :  { %3978 = vmatpush.bf16.msrb.mxu2 %v5394_v10  ;;  %v3714_v10 = vpop.f32.mrf.mxu1  ;;  %v5807_v51 = vld [vmem:[#allocation5 + $0x9f8] sm:$0xf0]  ;;  %v7020_v56 = vld [vmem:[#allocation5 + $0x8cc] sm:$0xf] }
 0x1cf   :  { %3991 = vmatpush.bf16.msrb.mxu3 %v5522_v15  ;;  %v5327_v15 = vld [vmem:[#allocation5 + $0x638] sm:$0xf0]  ;;  %v5810_v60 = vor.u32 %v7056_v49, %v5807_v51  ;;  %v7052_v0 = vld [vmem:[#allocation5 + $0x9cc] sm:$0xf] }
 0x1d0   :  { %3953 = vmatpush.bf16.msrb.mxu0 %v5122_v26  ;;  %v5202_v26 = vor.u32 %v6904_v9, %v5199_v12  ;;  %v5330_v22 = vor.u32 %v6936_v18, %v5327_v15  ;;  %v3727_v34 = vpop.f32.mrf.mxu2  ;;  %v6063_v58 = vld [vmem:[#allocation5 + $0xbf8] sm:$0xf0]  ;;  %v7016_v10 = vld [vmem:[#allocation5 + $0x8ac] sm:$0xf] }
 0x1d1   :  { %3966 = vmatpush.bf16.msrb.mxu1 %v5250_v27  ;;  %v6900_v27 = vld [vmem:[#allocation5 + $0x50c] sm:$0xf]  ;;  %v3740_v46 = vpop.f32.mrf.mxu3  ;;  %v5663_v63 = vld [vmem:[#allocation5 + $0x8d8] sm:$0xf0]  ;;  %v6066_v1 = vor.u32 %v7120_v55, %v6063_v58 }
 0x1d2   :  { %3979 = vmatpush.bf16.msrb.mxu2 %v5378_v32  ;;  %v5183_v32 = vld [vmem:[#allocation5 + $0x518] sm:$0xf0]  ;;  %v5666_v8 = vor.u32 %v7020_v56, %v5663_v63  ;;  %v7048_v12 = vld [vmem:[#allocation5 + $0x9ac] sm:$0xf] }
 0x1d3   :  { %3992 = vmatpush.bf16.msrb.mxu3 %v5506_v45  ;;  %v5439_v45 = vld [vmem:[#allocation5 + $0x718] sm:$0xf0]  ;;  %v7080_v19 = vld [vmem:[#allocation5 + $0xaac] sm:$0xf] }
 0x1d4   :  { %3954 = vmatpush.bf16.msrb.mxu0 %v5106_v52  ;;  %v7088_v52 = vld [vmem:[#allocation5 + $0xaec] sm:$0xf]  ;;  %v5442_v59 = vor.u32 %v6964_v43, %v5439_v45  ;;  %v5791_v2 = vld [vmem:[#allocation5 + $0x9d8] sm:$0xf0] }
 0x1d5   :  { %3967 = vmatpush.bf16.msrb.mxu1 %v5234_v53  ;;  %v5935_v53 = vld [vmem:[#allocation5 + $0xaf8] sm:$0xf0]  ;;  %v5794_v13 = vor.u32 %v7052_v0, %v5791_v2  ;;  %v7108_v43 = vld [vmem:[#allocation5 + $0xb8c] sm:$0xf] }
 0x1d6   :  { %3980 = vmatpush.bf16.msrb.mxu2 %v5362_v16  ;;  %v5186_v16 = vor.u32 %v6900_v27, %v5183_v32  ;;  %v5938_v61 = vor.u32 %v7088_v52, %v5935_v53  ;;  %v5919_v5 = vld [vmem:[#allocation5 + $0xad8] sm:$0xf0]  ;;  %v7012_v27 = vld [vmem:[#allocation5 + $0x88c] sm:$0xf] }
 0x1d7   :  { %3993 = vmatpush.bf16.msrb.mxu3 %v5490_v62  ;;  %v5682_v62 = vor.u32 %v7024_v47, %v5679_v48  ;;  %v5775_v15 = vld [vmem:[#allocation5 + $0x9b8] sm:$0xf0]  ;;  %v7008_v47 = vld [vmem:[#allocation5 + $0x86c] sm:$0xf] }
 0x1d8   :  { %3955 = vmatpush.bf16.msrb.mxu0 %v5090_v3  ;;  %v7084_v3 = vld [vmem:[#allocation5 + $0xacc] sm:$0xf]  ;;  %v5903_v17 = vld [vmem:[#allocation5 + $0xab8] sm:$0xf0] }
 0x1d9   :  { %3968 = vmatpush.bf16.msrb.mxu1 %v5218_v6  ;;  %v7116_v6 = vld [vmem:[#allocation5 + $0xbcc] sm:$0xf]  ;;  %v5922_v9 = vor.u32 %v7084_v3, %v5919_v5  ;;  %v6031_v21 = vld [vmem:[#allocation5 + $0xbb8] sm:$0xf0] }
 0x1da   :  { %3981 = vmatpush.bf16.msrb.mxu2 %v5346_v7  ;;  %v6047_v7 = vld [vmem:[#allocation5 + $0xbd8] sm:$0xf0]  ;;  %v7040_v49 = vld [vmem:[#allocation5 + $0x96c] sm:$0xf] }
 0x1db   :  { %3994 = vmatpush.bf16.msrb.mxu3 %v5474_v11  ;;  %v5647_v11 = vld [vmem:[#allocation5 + $0x8b8] sm:$0xf0]  ;;  %v6050_v18 = vor.u32 %v7116_v6, %v6047_v7  ;;  %v7072_v53 = vld [vmem:[#allocation5 + $0xa6c] sm:$0xf] }
 0x1dc   :  { %3956 = vmatpush.bf16.msrb.mxu0 %v5074_v20  ;;  %v7112_v20 = vld [vmem:[#allocation5 + $0xbac] sm:$0xf]  ;;  %v5650_v24 = vor.u32 %v7016_v10, %v5647_v11  ;;  %v5631_v32 = vld [vmem:[#allocation5 + $0x898] sm:$0xf0] }
 0x1dd   :  { %3969 = vmatpush.bf16.msrb.mxu1 %v5202_v26  ;;  %v5778_v26 = vor.u32 %v7048_v12, %v5775_v15  ;;  %v6034_v37 = vor.u32 %v7112_v20, %v6031_v21  ;;  %v5759_v34 = vld [vmem:[#allocation5 + $0x998] sm:$0xf0]  ;;  %v7036_v56 = vld [vmem:[#allocation5 + $0x94c] sm:$0xf] }
 0x1de   :  { %3982 = vmatpush.bf16.msrb.mxu2 %v5330_v22  ;;  %v5906_v22 = vor.u32 %v7080_v19, %v5903_v17  ;;  %v5887_v39 = vld [vmem:[#allocation5 + $0xa98] sm:$0xf0]  ;;  %v7068_v2 = vld [vmem:[#allocation5 + $0xa4c] sm:$0xf] }
 0x1df   :  { %3995 = vmatpush.bf16.msrb.mxu3 %v5458_v36  ;;  %v7076_v36 = vld [vmem:[#allocation5 + $0xa8c] sm:$0xf]  ;;  %v5615_v48 = vld [vmem:[#allocation5 + $0x878] sm:$0xf0] }
 0x1e0   :  { %3957 = vmatpush.bf16.msrb.mxu0 %v5058_v50  ;;  %v7697_v45 = vpop.f32.mrf.mxu0  ;;  %v5890_v46 = vor.u32 %v7076_v36, %v5887_v39  ;;  %v5743_v52 = vld [vmem:[#allocation5 + $0x978] sm:$0xf0]  ;;  %v5618_v58 = vor.u32 %v7008_v47, %v5615_v48  ;;  %v7100_v6 = vld [vmem:[#allocation5 + $0xb4c] sm:$0xf] }
 0x1e1   :  { %3970 = vmatpush.bf16.msrb.mxu1 %v5186_v16  ;;  %v7699_v50 = vpop.f32.mrf.mxu1  ;;  %v5871_v16 = vld [vmem:[#allocation5 + $0xa78] sm:$0xf0]  ;;  %v7000_v11 = vld [vmem:[#allocation5 + $0x82c] sm:$0xf] }
 0x1e2   :  { %3983 = vmatpush.bf16.msrb.mxu2 %v5314_v54  ;;  %v7104_v54 = vld [vmem:[#allocation5 + $0xb6c] sm:$0xf]  ;;  %v5999_v55 = vld [vmem:[#allocation5 + $0xb78] sm:$0xf0] }
 0x1e3   :  { %3996 = vmatpush.bf16.msrb.mxu3 %v5442_v59  ;;  %3958 = vmatmul.bf16.vlgmr.msrb.gmra.mxu0 %v7596_v41  ;;  %v6015_v41 = vld [vmem:[#allocation5 + $0xb98] sm:$0xf0]  ;;  %v5746_v59 = vor.u32 %v7040_v49, %v5743_v52  ;;  %v6002_v0 = vor.u32 %v7104_v54, %v5999_v55  ;;  %v7064_v20 = vld [vmem:[#allocation5 + $0xa2c] sm:$0xf] }
 0x1e4   :  { %4002 = vmatpush.bf16.msra.mxu0 %v5682_v62  ;;  %3971 = vmatmul.bf16.vlgmr.msrb.gmra.mxu1 %v7600_v44  ;;  %v6018_v51 = vor.u32 %v7108_v43, %v6015_v41  ;;  %v5874_v62 = vor.u32 %v7072_v53, %v5871_v16  ;;  %v5855_v3 = vld [vmem:[#allocation5 + $0xa58] sm:$0xf0]  ;;  %v7060_v39 = vld [vmem:[#allocation5 + $0xa0c] sm:$0xf] }
 0x1e5   :  { %4015 = vmatpush.bf16.msra.mxu1 %v5810_v60  ;;  %3984 = vmatmul.bf16.vlgmr.msrb.gmra.mxu2 %v7594_v38  ;;  %v7044_v38 = vld [vmem:[#allocation5 + $0x98c] sm:$0xf]  ;;  %v5983_v7 = vld [vmem:[#allocation5 + $0xb58] sm:$0xf0]  ;;  %v5858_v10 = vor.u32 %v7068_v2, %v5855_v3 }
 0x1e6   :  { %4028 = vmatpush.bf16.msra.mxu2 %v5938_v61  ;;  %3997 = vmatmul.bf16.vlgmr.msrb.gmra.mxu3 %v7598_v42  ;;  %v5634_v42 = vor.u32 %v7012_v27, %v5631_v32  ;;  %v5762_v44 = vor.u32 %v7044_v38, %v5759_v34  ;;  %v7004_v60 = vld [vmem:[#allocation5 + $0x84c] sm:$0xf]  ;;  %v5599_v61 = vld [vmem:[#allocation5 + $0x858] sm:$0xf0]  ;;  %v5986_v19 = vor.u32 %v7100_v6, %v5983_v7 }
 0x1e7   :  { %4041 = vmatpush.bf16.msra.mxu3 %v6066_v1  ;;  %v5727_v1 = vld [vmem:[#allocation5 + $0x958] sm:$0xf0]  ;;  %v6996_v27 = vld [vmem:[#allocation5 + $0x80c] sm:$0xf] }
 0x1e8   :  { %4003 = vmatpush.bf16.msra.mxu0 %v5666_v8  ;;  %v7701_v63 = vpop.f32.mrf.mxu2  ;;  %v5602_v8 = vor.u32 %v7004_v60, %v5599_v61  ;;  %v5583_v12 = vld [vmem:[#allocation5 + $0x838] sm:$0xf0]  ;;  %v7028_v34 = vld [vmem:[#allocation5 + $0x90c] sm:$0xf] }
 0x1e9   :  { %4016 = vmatpush.bf16.msra.mxu1 %v5794_v13  ;;  %v7703_v5 = vpop.f32.mrf.mxu3  ;;  %v3753_v13 = vpop.f32.mrf.mxu0  ;;  %v5711_v17 = vld [vmem:[#allocation5 + $0x938] sm:$0xf0]  ;;  %v7152_v48 = vld [vmem:[#allocation5 + $0xcec] sm:$0xf] }
 0x1ea   :  { %4029 = vmatpush.bf16.msra.mxu2 %v5922_v9  ;;  %v5730_v9 = vor.u32 %v7036_v56, %v5727_v1  ;;  %v3766_v15 = vpop.f32.mrf.mxu1  ;;  %v5839_v21 = vld [vmem:[#allocation5 + $0xa38] sm:$0xf0]  ;;  %v7216_v16 = vld [vmem:[#allocation5 + $0xeec] sm:$0xf] }
 0x1eb   :  { %4042 = vmatpush.bf16.msra.mxu3 %v6050_v18  ;;  %v7032_v18 = vld [vmem:[#allocation5 + $0x92c] sm:$0xf]  ;;  %v5567_v32 = vld [vmem:[#allocation5 + $0x818] sm:$0xf0] }
 0x1ec   :  { %4004 = vmatpush.bf16.msra.mxu0 %v5650_v24  ;;  %v7096_v24 = vld [vmem:[#allocation5 + $0xb2c] sm:$0xf]  ;;  %v5714_v38 = vor.u32 %v7032_v18, %v5711_v17  ;;  %v5695_v36 = vld [vmem:[#allocation5 + $0x918] sm:$0xf0]  ;;  %v5570_v52 = vor.u32 %v6996_v27, %v5567_v32 }
 0x1ed   :  { %4017 = vmatpush.bf16.msra.mxu1 %v5778_v26  ;;  %v5967_v26 = vld [vmem:[#allocation5 + $0xb38] sm:$0xf0]  ;;  %v5698_v55 = vor.u32 %v7028_v34, %v5695_v36  ;;  %v7148_v1 = vld [vmem:[#allocation5 + $0xccc] sm:$0xf] }
 0x1ee   :  { %4030 = vmatpush.bf16.msra.mxu2 %v5906_v22  ;;  %v5586_v22 = vor.u32 %v7000_v11, %v5583_v12  ;;  %v5970_v41 = vor.u32 %v7096_v24, %v5967_v26  ;;  %v6191_v49 = vld [vmem:[#allocation5 + $0xcf8] sm:$0xf0]  ;;  %v7180_v3 = vld [vmem:[#allocation5 + $0xdcc] sm:$0xf] }
 0x1ef   :  { %4043 = vmatpush.bf16.msra.mxu3 %v6034_v37  ;;  %v5842_v37 = vor.u32 %v7064_v20, %v5839_v21  ;;  %v6319_v53 = vld [vmem:[#allocation5 + $0xdf8] sm:$0xf0]  ;;  %v6194_v61 = vor.u32 %v7152_v48, %v6191_v49  ;;  %v7144_v15 = vld [vmem:[#allocation5 + $0xcac] sm:$0xf] }
 0x1f0   :  { %4005 = vmatpush.bf16.msra.mxu0 %v5634_v42  ;;  %v3779_v43 = vpop.f32.mrf.mxu2  ;;  %v5823_v42 = vld [vmem:[#allocation5 + $0xa18] sm:$0xf0]  ;;  %v7176_v17 = vld [vmem:[#allocation5 + $0xdac] sm:$0xf] }
 0x1f1   :  { %4018 = vmatpush.bf16.msra.mxu1 %v5762_v44  ;;  %v7092_v44 = vld [vmem:[#allocation5 + $0xb0c] sm:$0xf]  ;;  %v3792_v47 = vpop.f32.mrf.mxu3  ;;  %v6447_v54 = vld [vmem:[#allocation5 + $0xef8] sm:$0xf0] }
 0x1f2   :  { %4031 = vmatpush.bf16.msra.mxu2 %v5890_v46  ;;  %v5951_v46 = vld [vmem:[#allocation5 + $0xb18] sm:$0xf0]  ;;  %v7208_v24 = vld [vmem:[#allocation5 + $0xeac] sm:$0xf] }
 0x1f3   :  { %4044 = vmatpush.bf16.msra.mxu3 %v6018_v51  ;;  %v7184_v51 = vld [vmem:[#allocation5 + $0xdec] sm:$0xf]  ;;  %v5954_v60 = vor.u32 %v7092_v44, %v5951_v46  ;;  %v6175_v2 = vld [vmem:[#allocation5 + $0xcd8] sm:$0xf0] }
 0x1f4   :  { %4006 = vmatpush.bf16.msra.mxu0 %v5618_v58  ;;  %v5826_v58 = vor.u32 %v7060_v39, %v5823_v42  ;;  %v6322_v56 = vor.u32 %v7184_v51, %v6319_v53  ;;  %v6303_v7 = vld [vmem:[#allocation5 + $0xdd8] sm:$0xf0]  ;;  %v6178_v11 = vor.u32 %v7148_v1, %v6175_v2  ;;  %v7140_v34 = vld [vmem:[#allocation5 + $0xc8c] sm:$0xf] }
 0x1f5   :  { %4019 = vmatpush.bf16.msra.mxu1 %v5746_v59  ;;  %v7248_v59 = vld [vmem:[#allocation5 + $0xfec] sm:$0xf]  ;;  %v6431_v13 = vld [vmem:[#allocation5 + $0xed8] sm:$0xf0]  ;;  %v6306_v12 = vor.u32 %v7180_v3, %v6303_v7 }
 0x1f6   :  { %4032 = vmatpush.bf16.msra.mxu2 %v5874_v62  ;;  %v6575_v62 = vld [vmem:[#allocation5 + $0xff8] sm:$0xf0]  ;;  %v7172_v36 = vld [vmem:[#allocation5 + $0xd8c] sm:$0xf] }
 0x1f7   :  { %4045 = vmatpush.bf16.msra.mxu3 %v6002_v0  ;;  %v6450_v0 = vor.u32 %v7216_v16, %v6447_v54  ;;  %v6578_v6 = vor.u32 %v7248_v59, %v6575_v62  ;;  %v6287_v21 = vld [vmem:[#allocation5 + $0xdb8] sm:$0xf0]  ;;  %v7136_v49 = vld [vmem:[#allocation5 + $0xc6c] sm:$0xf] }
 0x1f8   :  { %4007 = vmatpush.bf16.msra.mxu0 %v5602_v8  ;;  %v7212_v8 = vld [vmem:[#allocation5 + $0xecc] sm:$0xf]  ;;  %v6415_v26 = vld [vmem:[#allocation5 + $0xeb8] sm:$0xf0] }
 0x1f9   :  { %4020 = vmatpush.bf16.msra.mxu1 %v5730_v9  ;;  %v7244_v9 = vld [vmem:[#allocation5 + $0xfcc] sm:$0xf]  ;;  %v6434_v18 = vor.u32 %v7212_v8, %v6431_v13  ;;  %v6543_v27 = vld [vmem:[#allocation5 + $0xfb8] sm:$0xf0] }
 0x1fa   :  { %4033 = vmatpush.bf16.msra.mxu2 %v5858_v10  ;;  %v6559_v10 = vld [vmem:[#allocation5 + $0xfd8] sm:$0xf0]  ;;  %v7200_v54 = vld [vmem:[#allocation5 + $0xe6c] sm:$0xf] }
 0x1fb   :  { %4046 = vmatpush.bf16.msra.mxu3 %v5986_v19  ;;  %v6159_v19 = vld [vmem:[#allocation5 + $0xcb8] sm:$0xf0]  ;;  %v6562_v20 = vor.u32 %v7244_v9, %v6559_v10  ;;  %v7164_v1 = vld [vmem:[#allocation5 + $0xd4c] sm:$0xf] }
 0x1fc   :  { %4008 = vmatpush.bf16.msra.mxu0 %v5586_v22  ;;  %v7240_v22 = vld [vmem:[#allocation5 + $0xfac] sm:$0xf]  ;;  %v6162_v32 = vor.u32 %v7144_v15, %v6159_v19  ;;  %v6271_v43 = vld [vmem:[#allocation5 + $0xd98] sm:$0xf0] }
 0x1fd   :  { %4021 = vmatpush.bf16.msra.mxu1 %v5714_v38  ;;  %v6290_v38 = vor.u32 %v7176_v17, %v6287_v21  ;;  %v6546_v39 = vor.u32 %v7240_v22, %v6543_v27  ;;  %v6527_v44 = vld [vmem:[#allocation5 + $0xf98] sm:$0xf0]  ;;  %v6274_v47 = vor.u32 %v7172_v36, %v6271_v43  ;;  %v7196_v7 = vld [vmem:[#allocation5 + $0xe4c] sm:$0xf] }
 0x1fe   :  { %4034 = vmatpush.bf16.msra.mxu2 %v5842_v37  ;;  %v6418_v37 = vor.u32 %v7208_v24, %v6415_v26  ;;  %v6127_v51 = vld [vmem:[#allocation5 + $0xc78] sm:$0xf0]  ;;  %v7228_v9 = vld [vmem:[#allocation5 + $0xf4c] sm:$0xf] }
 0x1ff   :  { %4047 = vmatpush.bf16.msra.mxu3 %v5970_v41  ;;  %v7204_v41 = vld [vmem:[#allocation5 + $0xe8c] sm:$0xf]  ;;  %v6255_v16 = vld [vmem:[#allocation5 + $0xd78] sm:$0xf0]  ;;  %v6130_v62 = vor.u32 %v7136_v49, %v6127_v51 }
 0x200   :  { %4009 = vmatpush.bf16.msra.mxu0 %v5570_v52  ;;  %v7709_v42 = vpop.f32.mrf.mxu0  ;;  %v7168_v52 = vld [vmem:[#allocation5 + $0xd6c] sm:$0xf]  ;;  %v6511_v59 = vld [vmem:[#allocation5 + $0xf78] sm:$0xf0] }
 0x201   :  { %4022 = vmatpush.bf16.msra.mxu1 %v5698_v55  ;;  %v7711_v46 = vpop.f32.mrf.mxu1  ;;  %v6383_v55 = vld [vmem:[#allocation5 + $0xe78] sm:$0xf0]  ;;  %v7160_v24 = vld [vmem:[#allocation5 + $0xd2c] sm:$0xf] }
 0x202   :  { %4035 = vmatpush.bf16.msra.mxu2 %v5826_v58  ;;  %v7232_v58 = vld [vmem:[#allocation5 + $0xf6c] sm:$0xf]  ;;  %v6367_v8 = vld [vmem:[#allocation5 + $0xe58] sm:$0xf0] }
 0x203   :  { %4048 = vmatpush.bf16.msra.mxu3 %v5954_v60  ;;  %4010 = vmatmul.bf16.vlgmr.msra.gmra.mxu0 %v7606_v25  ;;  %v6143_v25 = vld [vmem:[#allocation5 + $0xc98] sm:$0xf0]  ;;  %v6258_v60 = vor.u32 %v7168_v52, %v6255_v16  ;;  %v6514_v2 = vor.u32 %v7232_v58, %v6511_v59  ;;  %v6370_v17 = vor.u32 %v7196_v7, %v6367_v8  ;;  %v7192_v27 = vld [vmem:[#allocation5 + $0xe2c] sm:$0xf] }
 0x204   :  { %4054 = vmatpush.bf16.msrb.mxu0 %v6194_v61  ;;  %4023 = vmatmul.bf16.vlgmr.msra.gmra.mxu1 %v7610_v30  ;;  %v7236_v30 = vld [vmem:[#allocation5 + $0xf8c] sm:$0xf]  ;;  %v6386_v61 = vor.u32 %v7200_v54, %v6383_v55  ;;  %v6495_v10 = vld [vmem:[#allocation5 + $0xf58] sm:$0xf0] }
 0x205   :  { %4067 = vmatpush.bf16.msrb.mxu1 %v6322_v56  ;;  %4036 = vmatmul.bf16.vlgmr.msra.gmra.mxu2 %v7608_v29  ;;  %v6399_v29 = vld [vmem:[#allocation5 + $0xe98] sm:$0xf0]  ;;  %v6530_v53 = vor.u32 %v7236_v30, %v6527_v44  ;;  %v7132_v56 = vld [vmem:[#allocation5 + $0xc4c] sm:$0xf]  ;;  %v6498_v26 = vor.u32 %v7228_v9, %v6495_v10 }
 0x206   :  { %4080 = vmatpush.bf16.msrb.mxu2 %v6450_v0  ;;  %4049 = vmatmul.bf16.vlgmr.msra.gmra.mxu3 %v7612_v33  ;;  %v6146_v33 = vor.u32 %v7140_v34, %v6143_v25  ;;  %v6402_v48 = vor.u32 %v7204_v41, %v6399_v29  ;;  %v6111_v0 = vld [vmem:[#allocation5 + $0xc58] sm:$0xf0]  ;;  %v7124_v36 = vld [vmem:[#allocation5 + $0xc0c] sm:$0xf] }
 0x207   :  { %4093 = vmatpush.bf16.msrb.mxu3 %v6578_v6  ;;  %v6239_v6 = vld [vmem:[#allocation5 + $0xd58] sm:$0xf0]  ;;  %v7156_v43 = vld [vmem:[#allocation5 + $0xd0c] sm:$0xf] }
 0x208   :  { %4055 = vmatpush.bf16.msrb.mxu0 %v6178_v11  ;;  %v7713_v3 = vpop.f32.mrf.mxu2  ;;  %v3805_v11 = vpop.f32.mrf.mxu0  ;;  %v6242_v19 = vor.u32 %v7164_v1, %v6239_v6  ;;  %v6095_v21 = vld [vmem:[#allocation5 + $0xc38] sm:$0xf0]  ;;  %v7188_v30 = vld [vmem:[#allocation5 + $0xe0c] sm:$0xf]  ;;  %v7255_v6 = vld [vmem:[#allocation8 + $0x20] sm:$0xff] }
 0x209   :  { %4068 = vmatpush.bf16.msrb.mxu1 %v6306_v12  ;;  %v7715_v13 = vpop.f32.mrf.mxu3  ;;  %v3752_v12 = vadd.f32 %v7697_v45, %v7691_v4  ;;  %v3818_v15 = vpop.f32.mrf.mxu1  ;;  %v6223_v22 = vld [vmem:[#allocation5 + $0xd38] sm:$0xf0] }
 0x20a   :  { %4081 = vmatpush.bf16.msrb.mxu2 %v6434_v18  ;;  %v6114_v18 = vor.u32 %v7132_v56, %v6111_v0  ;;  %v6226_v45 = vor.u32 %v7160_v24, %v6223_v22  ;;  %v6207_v29 = vld [vmem:[#allocation5 + $0xd18] sm:$0xf0]  ;;  %v7256_v56 = vld [vmem:[#allocation8 + $0x28] sm:$0xff] }
 0x20b   :  { %4094 = vmatpush.bf16.msrb.mxu3 %v6562_v20  ;;  %v7128_v20 = vld [vmem:[#allocation5 + $0xc2c] sm:$0xf]  ;;  %v3765_v34 = vadd.f32 %v7699_v50, %v3752_v12  ;;  %v6335_v44 = vld [vmem:[#allocation5 + $0xe18] sm:$0xf0]  ;;  %v6210_v52 = vor.u32 %v7156_v43, %v6207_v29  ;;  %v653_v43 = vperm.slane %v7688_v14, 3  ;;  %v7281_v14 = vld [vmem:[#allocation8 + $0xf0] sm:$0xff] }
 0x20c   :  { %4056 = vmatpush.bf16.msrb.mxu0 %v6162_v32  ;;  %v6351_v32 = vld [vmem:[#allocation5 + $0xe38] sm:$0xf0]  ;;  %v6098_v4 = vor.u32 %v7128_v20, %v6095_v21  ;;  %v7272_v0 = vld [vmem:[#allocation8 + $0xa8] sm:$0xff] }
 0x20d   :  { %4069 = vmatpush.bf16.msrb.mxu1 %v6290_v38  ;;  %v7224_v38 = vld [vmem:[#allocation5 + $0xf2c] sm:$0xf]  ;;  %v6354_v25 = vor.u32 %v7192_v27, %v6351_v32  ;;  %v3778_v50 = vadd.f32 %v7701_v63, %v3765_v34  ;;  %v7258_v54 = vld [vmem:[#allocation8 + $0x38] sm:$0xff]  ;;  %v7257_v63 = vld [vmem:[#allocation8 + $0x30] sm:$0xff] }
 0x20e   :  { %4082 = vmatpush.bf16.msrb.mxu2 %v6418_v37  ;;  %v6479_v37 = vld [vmem:[#allocation5 + $0xf38] sm:$0xf0]  ;;  %v7260_v21 = vld [vmem:[#allocation8 + $0x48] sm:$0xff]  ;;  %v7251_v32 = vld [vmem:[#allocation8] sm:$0xff] }
 0x20f   :  { %4095 = vmatpush.bf16.msrb.mxu3 %v6546_v39  ;;  %v6079_v39 = vld [vmem:[#allocation5 + $0xc18] sm:$0xf0]  ;;  %v6482_v41 = vor.u32 %v7224_v38, %v6479_v37  ;;  %v3791_v59 = vadd.f32 %v7703_v5, %v3778_v50  ;;  %v7268_v24 = vld [vmem:[#allocation8 + $0x88] sm:$0xff]  ;;  %v4106_v38 = vmax.f32 %v7655_v40, 0.0  ;;  %v7259_v37 = vld [vmem:[#allocation8 + $0x40] sm:$0xff] }
 0x210   :  { %4057 = vmatpush.bf16.msrb.mxu0 %v6146_v33  ;;  %v3831_v33 = vpop.f32.mrf.mxu2  ;;  %v6082_v51 = vor.u32 %v7124_v36, %v6079_v39  ;;  %v7266_v55 = vld [vmem:[#allocation8 + $0x78] sm:$0xff]  ;;  %v7267_v34 = vld [vmem:[#allocation8 + $0x80] sm:$0xff] }
 0x211   :  { %4070 = vmatpush.bf16.msrb.mxu1 %v6274_v47  ;;  %v7220_v47 = vld [vmem:[#allocation5 + $0xf0c] sm:$0xf]  ;;  %v3844_v49 = vpop.f32.mrf.mxu3  ;;  %v7274_v58 = vld [vmem:[#allocation8 + $0xb8] sm:$0xff] }
 0x212   :  { %4083 = vmatpush.bf16.msrb.mxu2 %v6402_v48  ;;  %v6463_v48 = vld [vmem:[#allocation5 + $0xf18] sm:$0xf0] }
 0x213   :  { %4096 = vmatpush.bf16.msrb.mxu3 %v6530_v53  ;;  %v6338_v53 = vor.u32 %v7188_v30, %v6335_v44  ;;  %v6466_v16 = vor.u32 %v7220_v47, %v6463_v48  ;;  %v7262_v8 = vld [vmem:[#allocation8 + $0x58] sm:$0xff] }
 0x214   :  { %4058 = vmatpush.bf16.msrb.mxu0 %v6130_v62  ;;  %v3804_v62 = vadd.f32 %v7709_v42, %v3791_v59  ;;  %v7264_v42 = vld [vmem:[#allocation8 + $0x68] sm:$0xff]  ;;  %v7270_v9 = vld [vmem:[#allocation8 + $0x98] sm:$0xff] }
 0x215   :  { %4071 = vmatpush.bf16.msrb.mxu1 %v6258_v60  ;;  %v7265_v60 = vld [vmem:[#allocation8 + $0x70] sm:$0xff] }
 0x216   :  { %4084 = vmatpush.bf16.msrb.mxu2 %v6386_v61  ;;  %v7273_v61 = vld [vmem:[#allocation8 + $0xb0] sm:$0xff]  ;;  %v3817_v5 = vadd.f32 %v7711_v46, %v3804_v62  ;;  %v7254_v46 = vld [vmem:[#allocation8 + $0x18] sm:$0xff] }
 0x217   :  { %4097 = vmatpush.bf16.msrb.mxu3 %v6514_v2 }
 0x218   :  { %4059 = vmatpush.bf16.msrb.mxu0 %v6114_v18  ;;  %v3830_v1 = vadd.f32 %v7713_v3, %v3817_v5  ;;  %v7253_v18 = vld [vmem:[#allocation8 + $0x10] sm:$0xff]  ;;  %v7278_v5 = vld [vmem:[#allocation8 + $0xd8] sm:$0xff] }
 0x219   :  { %4072 = vmatpush.bf16.msrb.mxu1 %v6242_v19  ;;  %v7261_v19 = vld [vmem:[#allocation8 + $0x50] sm:$0xff] }
 0x21a   :  { %4085 = vmatpush.bf16.msrb.mxu2 %v6370_v17  ;;  %v7269_v17 = vld [vmem:[#allocation8 + $0x90] sm:$0xff] }
 0x21b   :  { %4098 = vmatpush.bf16.msrb.mxu3 %v6498_v26 }
 0x21c   :  { %4060 = vmatpush.bf16.msrb.mxu0 %v6098_v4  ;;  %v4107_v4 = vmax.f32 %v7682_v57, 0.0 }
 0x21d   :  { %4073 = vmatpush.bf16.msrb.mxu1 %v6226_v45 }
 0x21e   :  { %4086 = vmatpush.bf16.msrb.mxu2 %v6354_v25  ;;  %v4110_v25 = vpack.c.bf16 %v4106_v38, %v4106_v38  ;;  %v4111_v36 = vpack.c.bf16 %v4107_v4, %v4107_v4  ;;  %v7290_v38 = vld [vmem:[#allocation11 + $0x38] sm:$0xff] }
 0x21f   :  { %4099 = vmatpush.bf16.msrb.mxu3 %v6482_v41 }
 0x220   :  { %4061 = vmatpush.bf16.msrb.mxu0 %v6082_v51  ;;  %v3855_v2 = vpop.f32.mrf.mxu0 }
 0x221   :  { %4074 = vmatpush.bf16.msrb.mxu1 %v6210_v52 }
 0x222   :  { %4087 = vmatpush.bf16.msrb.mxu2 %v6338_v53 }
 0x223   :  { %4100 = vmatpush.bf16.msrb.mxu3 %v6466_v16  ;;  %4062 = vmatmul.bf16.vlgmr.msrb.gmra.mxu0 %v7618_v23  ;;  %v3868_v23 = vpop.f32.mrf.mxu1 }
 0x224   :  { %4374 = vmatpush.bf16.msra.mxu0 %v7258_v54  ;;  %4075 = vmatmul.bf16.vlgmr.msrb.gmra.mxu1 %v7622_v31  ;;  %v7263_v31 = vld [vmem:[#allocation8 + $0x60] sm:$0xff] }
 0x225   :  { %4387 = vmatpush.bf16.msra.mxu1 %v7266_v55  ;;  %4088 = vmatmul.bf16.vlgmr.msrb.gmra.mxu2 %v7620_v28  ;;  %v7271_v28 = vld [vmem:[#allocation8 + $0xa0] sm:$0xff]  ;;  %v7282_v55 = vld [vmem:[#allocation8 + $0xf8] sm:$0xff] }
 0x226   :  { %4400 = vmatpush.bf16.msra.mxu2 %v7274_v58  ;;  %4101 = vmatmul.bf16.vlgmr.msrb.gmra.mxu3 %v7624_v35  ;;  %v3843_v35 = vadd.f32 %v7715_v13, %v3830_v1  ;;  %v7252_v13 = vld [vmem:[#allocation8 + $0x8] sm:$0xff] }
 0x227   :  { %4413 = vmatpush.bf16.msra.mxu3 %v7282_v55  ;;  %v7276_v1 = vld [vmem:[#allocation8 + $0xc8] sm:$0xff] }
 0x228   :  { %4375 = vmatpush.bf16.msra.mxu0 %v7257_v63  ;;  %v3856_v7 = vadd.f32 %v3855_v2, %v3843_v35  ;;  %v3881_v10 = vpop.f32.mrf.mxu2  ;;  %v3857_v3 = vpop.f32.mrf.mxu0  ;;  %v7280_v63 = vld [vmem:[#allocation8 + $0xe8] sm:$0xff]  ;;  %v7275_v35 = vld [vmem:[#allocation8 + $0xc0] sm:$0xff] }
 0x229   :  { %4388 = vmatpush.bf16.msra.mxu1 %v7265_v60  ;;  %v3894_v11 = vpop.f32.mrf.mxu3 }
 0x22a   :  { %4401 = vmatpush.bf16.msra.mxu2 %v7273_v61  ;;  %v3869_v12 = vadd.f32 %v3868_v23, %v3856_v7  ;;  %v7279_v61 = vld [vmem:[#allocation8 + $0xe0] sm:$0xff] }
 0x22b   :  { %v3870_v15 = vpop.f32.mrf.mxu1  ;;  %4414 = vmatpush.bf16.msra.mxu3 %v7281_v14 }
 0x22c   :  { %4376 = vmatpush.bf16.msra.mxu0 %v7256_v56  ;;  %v3882_v20 = vadd.f32 %v3881_v10, %v3869_v12 }
 0x22d   :  { %4389 = vmatpush.bf16.msra.mxu1 %v7264_v42 }
 0x22e   :  { %4402 = vmatpush.bf16.msra.mxu2 %v7272_v0  ;;  %v3895_v26 = vadd.f32 %v3894_v11, %v3882_v20  ;;  %v7277_v0 = vld [vmem:[#allocation8 + $0xd0] sm:$0xff] }
 0x22f   :  { %4415 = vmatpush.bf16.msra.mxu3 %v7280_v63 }
 0x230   :  { %4377 = vmatpush.bf16.msra.mxu0 %v7255_v6  ;;  %v3883_v22 = vpop.f32.mrf.mxu2  ;;  %v4108_v45 = vmax.f32 %v3895_v26, 0.0 }
 0x231   :  { %4390 = vmatpush.bf16.msra.mxu1 %v7263_v31  ;;  %v3896_v27 = vpop.f32.mrf.mxu3 }
 0x232   :  { %4403 = vmatpush.bf16.msra.mxu2 %v7271_v28  ;;  %v4112_v39 = vpack.c.bf16 %v4108_v45, %v4108_v45 }
 0x233   :  { %4416 = vmatpush.bf16.msra.mxu3 %v7279_v61 }
 0x234   :  { %4378 = vmatpush.bf16.msra.mxu0 %v7254_v46 }
 0x235   :  { %4391 = vmatpush.bf16.msra.mxu1 %v7262_v8 }
 0x236   :  { %4404 = vmatpush.bf16.msra.mxu2 %v7270_v9 }
 0x237   :  { %4417 = vmatpush.bf16.msra.mxu3 %v7278_v5 }
 0x238   :  { %4379 = vmatpush.bf16.msra.mxu0 %v7253_v18 }
 0x239   :  { %4392 = vmatpush.bf16.msra.mxu1 %v7261_v19 }
 0x23a   :  { %4405 = vmatpush.bf16.msra.mxu2 %v7269_v17 }
 0x23b   :  { %4418 = vmatpush.bf16.msra.mxu3 %v7277_v0 }
 0x23c   :  { %4380 = vmatpush.bf16.msra.mxu0 %v7252_v13 }
 0x23d   :  { %4393 = vmatpush.bf16.msra.mxu1 %v7260_v21 }
 0x23e   :  { %4406 = vmatpush.bf16.msra.mxu2 %v7268_v24 }
 0x23f   :  { %4419 = vmatpush.bf16.msra.mxu3 %v7276_v1 }
 0x240   :  { %4381 = vmatpush.bf16.msra.mxu0 %v7251_v32  ;;  %v3907_v41 = vpop.f32.mrf.mxu0 }
 0x241   :  { %4394 = vmatpush.bf16.msra.mxu1 %v7259_v37  ;;  %v3908_v40 = vadd.f32 %v3907_v41, %v653_v43  ;;  %v3920_v29 = vpop.f32.mrf.mxu1  ;;  %v7286_v43 = vld [vmem:[#allocation11 + $0x18] sm:$0xff] }
 0x242   :  { %4407 = vmatpush.bf16.msra.mxu2 %v7267_v34  ;;  %v7289_v34 = vld [vmem:[#allocation11 + $0x30] sm:$0xff] }
 0x243   :  { %4382 = vmatmul.bf16.vlgmr.msra.gmra.mxu0 %v4110_v25  ;;  %v3921_v30 = vadd.f32 %v3920_v29, %v3908_v40  ;;  %4420 = vmatpush.bf16.msra.mxu3 %v7275_v35  ;;  %v7288_v25 = vld [vmem:[#allocation11 + $0x28] sm:$0xff] }
 0x244   :  { %4395 = vmatmul.bf16.vlgmr.msra.gmra.mxu1 %v4111_v36  ;;  %4496 = vmatpush.bf16.msrb.mxu0 %v7290_v38  ;;  %v7287_v36 = vld [vmem:[#allocation11 + $0x20] sm:$0xff] }
 0x245   :  { %4408 = vmatmul.bf16.vlgmr.msra.gmra.mxu2 %v4112_v39  ;;  %v7303_v39 = vld [vmem:[#allocation10] ss:$0 sm:$0xff] }
 0x248   :  { %v3933_v44 = vpop.f32.mrf.mxu2  ;;  %v3909_v48 = vpop.f32.mrf.mxu0  ;;  %4497 = vmatpush.bf16.msrb.mxu0 %v7289_v34 }
 0x249   :  { %v3934_v33 = vadd.f32 %v3933_v44, %v3921_v30  ;;  %v3946_v47 = vpop.f32.mrf.mxu3  ;;  %v3922_v49 = vpop.f32.mrf.mxu1  ;;  %v7285_v30 = vld [vmem:[#allocation11 + $0x10] sm:$0xff] }
 0x24b   :  { %v3947_v57 = vadd.f32 %v3946_v47, %v3934_v33 }
 0x24c   :  { %4498 = vmatpush.bf16.msrb.mxu0 %v7288_v25 }
 0x250   :  { %v3935_v50 = vpop.f32.mrf.mxu2  ;;  %4499 = vmatpush.bf16.msrb.mxu0 %v7287_v36 }
 0x251   :  { %v3948_v51 = vpop.f32.mrf.mxu3  ;;  %v7284_v50 = vld [vmem:[#allocation11 + $0x8] sm:$0xff] }
 0x252   :  { %v7283_v51 = vld [vmem:[#allocation11] sm:$0xff] }
 0x254   :  { %4500 = vmatpush.bf16.msrb.mxu0 %v7286_v43 }
 0x258   :  { %4501 = vmatpush.bf16.msrb.mxu0 %v7285_v30 }
 0x25c   :  { %4502 = vmatpush.bf16.msrb.mxu0 %v7284_v50 }
 0x260   :  { %v3959_v52 = vpop.f32.mrf.mxu0  ;;  %4503 = vmatpush.bf16.msrb.mxu0 %v7283_v51 }
 0x261   :  { %v3972_v53 = vpop.f32.mrf.mxu1  ;;  %v3960_v2 = vadd.f32 %v3959_v52, %v3947_v57 }
 0x263   :  { %v3973_v7 = vadd.f32 %v3972_v53, %v3960_v2 }
 0x268   :  { %v3985_v16 = vpop.f32.mrf.mxu2  ;;  %v3961_v58 = vpop.f32.mrf.mxu0 }
 0x269   :  { %v3998_v54 = vpop.f32.mrf.mxu3  ;;  %v3974_v59 = vpop.f32.mrf.mxu1  ;;  %v3986_v46 = vadd.f32 %v3985_v16, %v3973_v7  ;;  %v7304_v58 = vld [vmem:[#allocation13] ss:$0 sm:$0xff] }
 0x26b   :  { %v3999_v10 = vadd.f32 %v3998_v54, %v3986_v46 }
 0x270   :  { %v3987_v62 = vpop.f32.mrf.mxu2 }
 0x271   :  { %v4000_v60 = vpop.f32.mrf.mxu3 }
 0x280   :  { %v4011_v56 = vpop.f32.mrf.mxu0 }
 0x281   :  { %v4024_v42 = vpop.f32.mrf.mxu1  ;;  %v4012_v11 = vadd.f32 %v4011_v56, %v3999_v10 }
 0x283   :  { %v4025_v3 = vadd.f32 %v4024_v42, %v4012_v11 }
 0x288   :  { %v4037_v6 = vpop.f32.mrf.mxu2  ;;  %v4013_v31 = vpop.f32.mrf.mxu0 }
 0x289   :  { %v4050_v23 = vpop.f32.mrf.mxu3  ;;  %v4026_v28 = vpop.f32.mrf.mxu1  ;;  %v4038_v12 = vadd.f32 %v4037_v6, %v4025_v3 }
 0x28b   :  { %v4051_v18 = vadd.f32 %v4050_v23, %v4038_v12 }
 0x290   :  { %v4039_v8 = vpop.f32.mrf.mxu2 }
 0x291   :  { %v4052_v9 = vpop.f32.mrf.mxu3 }
 0x2a0   :  { %v4063_v15 = vpop.f32.mrf.mxu0 }
 0x2a1   :  { %v4076_v19 = vpop.f32.mrf.mxu1  ;;  %v4064_v17 = vadd.f32 %v4063_v15, %v4051_v18 }
 0x2a3   :  { %v4077_v20 = vadd.f32 %v4076_v19, %v4064_v17 }
 0x2a8   :  { %v4089_v13 = vpop.f32.mrf.mxu2  ;;  %v4065_v26 = vpop.f32.mrf.mxu0 }
 0x2a9   :  { %v4102_v21 = vpop.f32.mrf.mxu3  ;;  %v4090_v24 = vadd.f32 %v4089_v13, %v4077_v20  ;;  %v4078_v22 = vpop.f32.mrf.mxu1 }
 0x2ab   :  { %v4103_v27 = vadd.f32 %v4102_v21, %v4090_v24 }
 0x2ad   :  { %v4109_v32 = vmax.f32 %v4103_v27, 0.0 }
 0x2af   :  { %v4113_v37 = vpack.c.bf16 %v4109_v32, %v4109_v32 }
 0x2b0   :  { %v4091_v4 = vpop.f32.mrf.mxu2 }
 0x2b1   :  { %v4104_v45 = vpop.f32.mrf.mxu3  ;;  %4421 = vmatmul.bf16.vlgmr.msra.gmra.mxu3 %v4113_v37 }
 0x2c0   :  { %v4383_v41 = vpop.f32.mrf.mxu0 }
 0x2c1   :  { %v4384_v40 = vadd.f32 %v7303_v39, %v4383_v41  ;;  %v4396_v29 = vpop.f32.mrf.mxu1 }
 0x2c3   :  { %v4397_v44 = vadd.f32 %v4396_v29, %v4384_v40 }
 0x2c8   :  { %v4409_v33 = vpop.f32.mrf.mxu2  ;;  %v4385_v57 = vpop.f32.mrf.mxu0 }
 0x2c9   :  { %v4410_v47 = vadd.f32 %v4409_v33, %v4397_v44  ;;  %v4398_v48 = vpop.f32.mrf.mxu1 }
 0x2d0   :  { %v4411_v49 = vpop.f32.mrf.mxu2 }
 0x334   :  { %v4422_v52 = vpop.f32.mrf.mxu3 }
 0x335   :  { %v4423_v53 = vadd.f32 %v4422_v52, %v4410_v47 }
 0x337   :  { %v4426_v16 = vmax.f32 %v4423_v53, 0.0 }
 0x339   :  { %v4427_v54 = vpack.c.bf16 %v4426_v16, %v4426_v16 }
 0x33b   :  { %4504 = vmatmul.bf16.vlgmr.msrb.gmra.mxu0 %v4427_v54 }
 0x33c   :  { %v4424_v55 = vpop.f32.mrf.mxu3 }
 0x3b8   :  { %v4505_v59 = vpop.f32.mrf.mxu0 }
 0x3b9   :  { %v4506_v14 = vadd.f32 %v7304_v58, %v4505_v59 }
 0x3bb   :  { %v4509_v62 = vpack.c.bf16 %v4506_v14, %v4506_v14 }
 0x3bd   :  { %4510 = vst [vmem:[#allocation14] sm:$0xf] %v4509_v62 }
 0x3be   :  { %4521 = dma.vmem_to_hbm [thread:$0]  %s4517_s6, 64, %s4519_s14, [#allocation4]  }
 0x3c0   :  { %v4507_v63 = vpop.f32.mrf.mxu0 }
 0x3c1   :  { %7507 = dma.done.wait [#allocation4], 64  }
 0x3c2   :  { %7508 = vsyncadd [#allocation4], 4294967232 }
 0x3c3   :  { %4526 = vsyncpa [#allocation3], 1 }
 0x3c4   :  { %4527 = vsyncpa [#allocation6], 1 }
 0x3c5   :  { %4528 = vsyncpa [#allocation9], 1 }
 0x3c6   :  { %4529 = vsyncpa [#allocation12], 1 }
 0x3c7   :  { %4530 = vsyncpa [#allocation4], 1 }

</bundles_post_ra>
